<compile_context>
chip_gen: v6e
topology: v6e:2x2x1
jax: 0.10.0
libtpu: 0.0.40
codegen_flags: <defaults>
</compile_context>

<pallas_src>
import functools

import jax
import jax.numpy as jnp
from jax.experimental import pallas as pl
from jax.experimental.pallas import tpu as pltpu

EPS = 1e-5


def dense_block_kernel(x_ref, gamma_ref, beta_ref, w_ref, b_ref,
                       out_ref, ypad_ref, stats_ref, *, mxu_dtype):
    """One DenseBlock conv-block per grid step (grid axis = block index).

    x_ref:     (N, H, W, c_in)          raw input (only read at step 0)
    gamma_ref: (1, 1, C)                BN gamma for this block, zero beyond in_c
    beta_ref:  (1, 1, C)                BN beta  for this block, zero beyond in_c
    w_ref:     (1, 3, 3*C, C)           conv weights (row-major taps), zero outside
                                        the real in/out channel slots, mxu_dtype
    b_ref:     (1, 1, C)                bias in this block's output-channel lanes
    out_ref:   (N, H, W, C)             running dense-concat buffer (VMEM resident)
    ypad_ref:  (N, H+2, W+2, C) scratch zero-padded BN+ReLU activations
    stats_ref: (2, C) scratch           cached per-channel [sum; sum of squares]
    """
    N, H, W, C = out_ref.shape
    c_in = x_ref.shape[-1]
    NHW = N * H * W
    inv_nhw = 1.0 / float(NHW)

    @pl.when(pl.program_id(0) == 0)
    def _init():
        # Seed the concat buffer with the input (first c_in lanes), zeros elsewhere.
        out_ref[...] = jnp.zeros_like(out_ref)
        out_ref[:, :, :, :c_in] = x_ref[...]
        # Zero the padded scratch once; the 1-wide halo stays zero for all blocks.
        ypad_ref[...] = jnp.zeros_like(ypad_ref)
        # Per-channel running sum / sum-of-squares (lanes beyond c_in are zero).
        seed = out_ref[...].reshape(NHW, C)
        stats_ref[0:1, :] = jnp.sum(seed, axis=0, keepdims=True)
        stats_ref[1:2, :] = jnp.sum(seed * seed, axis=0, keepdims=True)

    # ---- BatchNorm (training-mode batch stats, biased variance) + ReLU ----------
    # gamma/beta are zero for not-yet-populated lanes -> scale = shift = 0 -> y = 0,
    # so unused lanes (and the halo) of ypad stay exactly zero.
    act = out_ref[...]                                     # (N, H, W, C)
    mean = stats_ref[0:1, :] * inv_nhw                     # (1, C)
    var = stats_ref[1:2, :] * inv_nhw - mean * mean        # biased variance
    scale = gamma_ref[0] * jax.lax.rsqrt(var + EPS)        # (1, C)
    shift = beta_ref[0] - mean * scale
    y = jnp.maximum(act * scale + shift, 0.0)
    ypad_ref[:, 1:H + 1, 1:W + 1, :] = y

    # ---- 3x3 conv: one MXU dot per kernel row (K = 3*C), f32 accumulation -------
    w_blk = w_ref[0]                                       # (3, 3*C, C), mxu_dtype
    conv = None
    for dy in range(3):
        taps = [ypad_ref[:, dy:dy + H, dx:dx + W, :]
                .reshape(NHW, C).astype(mxu_dtype) for dx in range(3)]
        lhs = jnp.concatenate(taps, axis=-1)               # (NHW, 3*C)
        d = jnp.dot(lhs, w_blk[dy], preferred_element_type=jnp.float32)
        conv = d if conv is None else conv + d
    delta = conv + b_ref[0]                                # (NHW, C); zero in old lanes

    # ---- Dense concat + incremental stats update (lane-dense, unmasked stores) --
    out_ref[...] = act + delta.reshape(N, H, W, C)
    stats_ref[0:1, :] += jnp.sum(delta, axis=0, keepdims=True)
    stats_ref[1:2, :] += jnp.sum(delta * delta, axis=0, keepdims=True)


def _round_up(x, m):
    return ((x + m - 1) // m) * m


def _pick_vmem_limit_bytes():
    """75% of physical VMEM (~96 MiB on v5e/v6e, ~48 MiB on v7x); safe fallback."""
    cap = None
    try:
        cap = getattr(pltpu.get_tpu_info(), "vmem_capacity_bytes", None)
    except Exception:
        cap = None
    if not cap:
        cap = 64 * 1024 * 1024
    return int(cap) * 3 // 4


def _pack_params(params, c_pad, mxu_dtype):
    """Host-side packing of per-block params into padded, MXU-ready layouts."""
    gammas, betas, weights, biases = [], [], [], []
    for (gamma, beta, w, b) in params:
        in_c, out_c = w.shape[2], w.shape[3]
        g = jnp.zeros((1, c_pad), jnp.float32).at[0, :in_c].set(
            gamma.astype(jnp.float32))
        bt = jnp.zeros((1, c_pad), jnp.float32).at[0, :in_c].set(
            beta.astype(jnp.float32))
        wk = jnp.zeros((3, 3 * c_pad, c_pad), jnp.float32)
        for dy in range(3):
            for dx in range(3):
                wk = wk.at[dy, dx * c_pad:dx * c_pad + in_c,
                           in_c:in_c + out_c].set(w[dy, dx].astype(jnp.float32))
        bias = jnp.zeros((1, c_pad), jnp.float32).at[0, in_c:in_c + out_c].set(
            b.astype(jnp.float32))
        gammas.append(g); betas.append(bt)
        weights.append(wk.astype(mxu_dtype)); biases.append(bias)
    return (jnp.stack(gammas), jnp.stack(betas),
            jnp.stack(weights), jnp.stack(biases))


def dense_block_forward_nhwc(x_nhwc, params, *, mxu_dtype=jnp.bfloat16):
    """DenseBlock.forward in NHWC (channels-last = lane dim), one fused kernel."""
    num_convs = len(params)
    N, H, W, c_in = x_nhwc.shape
    out_c = params[0][3].shape[0]
    c_total = c_in + num_convs * out_c
    c_pad = max(128, _round_up(c_total, 128))              # lane-dense channel dim

    gammas, betas, weights, biases = _pack_params(params, c_pad, mxu_dtype)

    out = pl.pallas_call(
        functools.partial(dense_block_kernel, mxu_dtype=mxu_dtype),
        out_shape=jax.ShapeDtypeStruct((N, H, W, c_pad), jnp.float32),
        grid=(num_convs,),
        in_specs=[
            pl.BlockSpec((N, H, W, c_in), lambda i: (0, 0, 0, 0)),          # x (resident)
            pl.BlockSpec((1, 1, c_pad), lambda i: (i, 0, 0)),               # gamma[i]
            pl.BlockSpec((1, 1, c_pad), lambda i: (i, 0, 0)),               # beta[i]
            pl.BlockSpec((1, 3, 3 * c_pad, c_pad), lambda i: (i, 0, 0, 0)),  # w[i]
            pl.BlockSpec((1, 1, c_pad), lambda i: (i, 0, 0)),               # bias[i]
        ],
        out_specs=pl.BlockSpec((N, H, W, c_pad), lambda i: (0, 0, 0, 0)),
        scratch_shapes=[
            pltpu.VMEM((N, H + 2, W + 2, c_pad), jnp.float32),  # zero-padded BN+ReLU
            pltpu.VMEM((2, c_pad), jnp.float32),                # cached sum / sumsq
        ],
        compiler_params=pltpu.CompilerParams(
            dimension_semantics=("arbitrary",),
            vmem_limit_bytes=_pick_vmem_limit_bytes()),
    )(x_nhwc.astype(jnp.float32), gammas, betas, weights, biases)

    return out[..., :c_total]                              # drop lane padding


def dense_block_forward(x_nchw, params, *, mxu_dtype=jnp.bfloat16):
    """NCHW wrapper matching the PyTorch module exactly.  Prefer the NHWC entry
    point when the surrounding graph is channels-last (saves two HBM transposes)."""
    x = jnp.transpose(x_nchw, (0, 2, 3, 1))                # NCHW -> NHWC
    out = dense_block_forward_nhwc(x, params, mxu_dtype=mxu_dtype)
    return jnp.transpose(out, (0, 3, 1, 2))                # NHWC -> NCHW


def init_dense_block_params(key, num_convs, in_channels, out_channels):
    """Deterministic parameter init. Conv weights stored as (3, 3, Cin, Cout)."""
    params = []
    for i in range(num_convs):
        in_c = in_channels + i * out_channels
        key, kw, kb = jax.random.split(key, 3)
        gamma = jnp.ones((in_c,), jnp.float32)             # BatchNorm2d default init
        beta = jnp.zeros((in_c,), jnp.float32)
        w = 0.05 * jax.random.normal(kw, (3, 3, in_c, out_channels), jnp.float32)
        b = 0.05 * jax.random.normal(kb, (out_channels,), jnp.float32)
        params.append((gamma, beta, w, b))
    return params


def dense_block_reference(x_nchw, params):
    """Pure-JAX reference (NCHW) for numerical validation."""
    x = x_nchw
    for (gamma, beta, w, b) in params:
        mean = x.mean(axis=(0, 2, 3), keepdims=True)
        var = jnp.square(x - mean).mean(axis=(0, 2, 3), keepdims=True)
        y = (x - mean) / jnp.sqrt(var + EPS)
        y = y * gamma.reshape(1, -1, 1, 1) + beta.reshape(1, -1, 1, 1)
        y = jnp.maximum(y, 0.0)
        w_oihw = jnp.transpose(w, (3, 2, 0, 1))            # (Cout, Cin, 3, 3)
        y = jax.lax.conv_general_dilated(
            y, w_oihw, window_strides=(1, 1), padding="SAME",
            dimension_numbers=("NCHW", "OIHW", "NCHW"))
        y = y + b.reshape(1, -1, 1, 1)
        x = jnp.concatenate([x, y], axis=1)
    return x


if __name__ == "__main__":
    key = jax.random.PRNGKey(0)
    kx, kp = jax.random.split(key)

    # Small shapes consistent with the module: NCHW input, 2 conv blocks, growth=8.
    batch, in_channels, spatial = 2, 4, 16
    num_convs, growth = 2, 8

    x = jax.random.uniform(kx, (batch, in_channels, spatial, spatial), jnp.float32)
    params = init_dense_block_params(kp, num_convs, in_channels, growth)

    out = dense_block_forward(x, params)                   # default: bf16 MXU operands
    out = jax.block_until_ready(out)

    expected_channels = in_channels + num_convs * growth
    assert out.shape == (batch, expected_channels, spatial, spatial), out.shape

    ref = dense_block_reference(x, params)
    err_bf16 = float(jnp.max(jnp.abs(out - ref)))
    assert err_bf16 < 5e-2, err_bf16                       # bf16 operands, f32 accum

    # Bit-tight check of the kernel math with f32 MXU operands.
    out_f32 = jax.block_until_ready(
        dense_block_forward(x, params, mxu_dtype=jnp.float32))
    err_f32 = float(jnp.max(jnp.abs(out_f32 - ref)))
    assert err_f32 < 1e-3, err_f32

    print("KERNEL_OK")
</pallas_src>

<mosaic_0001>
module attributes {stable_mosaic.version = 11 : i64} {
  func.func @dense_block_kernel(%arg0: i32, %arg1: memref<2x16x16x4xf32, #tpu.memory_space<vmem>>, %arg2: memref<1x1x128xf32, #tpu.memory_space<vmem>>, %arg3: memref<1x1x128xf32, #tpu.memory_space<vmem>>, %arg4: memref<1x3x384x128xbf16, #tpu.memory_space<vmem>>, %arg5: memref<1x1x128xf32, #tpu.memory_space<vmem>>, %arg6: memref<2x16x16x128xf32, #tpu.memory_space<vmem>>, %arg7: memref<2x18x18x128xf32, #tpu.memory_space<vmem>>, %arg8: memref<2x128xf32, #tpu.memory_space<vmem>>) attributes {dimension_semantics = [#tpu.dimension_semantics<arbitrary>], iteration_bounds = array<i64: 2>, scalar_prefetch = 0 : i64, scratch_operands = 2 : i64, tpu.core_type = #tpu.core_type<tc>, window_params = [{pipeline_mode = #tpu.pipeline_mode<synchronous>, transform_indices = @transform_0, window_bounds = array<i64: 2, 16, 16, 4>}, {transform_indices = @transform_1, window_bounds = array<i64: 1, 1, 128>}, {transform_indices = @transform_2, window_bounds = array<i64: 1, 1, 128>}, {transform_indices = @transform_3, window_bounds = array<i64: 1, 3, 384, 128>}, {transform_indices = @transform_4, window_bounds = array<i64: 1, 1, 128>}, {pipeline_mode = #tpu.pipeline_mode<synchronous>, transform_indices = @transform_5, window_bounds = array<i64: 2, 16, 16, 128>}]} {
    %c0_i32 = arith.constant 0 : i32
    %0 = arith.cmpi eq, %arg0, %c0_i32 : i32
    %1 = arith.extui %0 : i1 to i32
    %c0_i32_0 = arith.constant 0 : i32
    %2 = arith.cmpi ne, %1, %c0_i32_0 : i32
    scf.if %2 {
      %cst_79 = arith.constant 0.000000e+00 : f32
      %92 = vector.broadcast %cst_79 : f32 to vector<2x16x16x128xf32>
      %c0_80 = arith.constant 0 : index
      %c0_81 = arith.constant 0 : index
      %c0_82 = arith.constant 0 : index
      %c0_83 = arith.constant 0 : index
      %93 = vector.load %arg6[%c0_80, %c0_81, %c0_82, %c0_83] : memref<2x16x16x128xf32, #tpu.memory_space<vmem>>, vector<2x16x16x128xf32>
      tpu.vector_store %arg6[%c0_80, %c0_81, %c0_82, %c0_83], %92 {strides = array<i32>} : memref<2x16x16x128xf32, #tpu.memory_space<vmem>>, vector<2x16x16x128xf32>,
      %c0_84 = arith.constant 0 : index
      %c0_85 = arith.constant 0 : index
      %c0_86 = arith.constant 0 : index
      %c0_87 = arith.constant 0 : index
      %94 = vector.load %arg1[%c0_84, %c0_85, %c0_86, %c0_87] : memref<2x16x16x4xf32, #tpu.memory_space<vmem>>, vector<2x16x16x4xf32>
      %c0_88 = arith.constant 0 : index
      %c0_89 = arith.constant 0 : index
      %c0_90 = arith.constant 0 : index
      %c0_91 = arith.constant 0 : index
      %95 = vector.load %arg6[%c0_88, %c0_89, %c0_90, %c0_91] : memref<2x16x16x128xf32, #tpu.memory_space<vmem>>, vector<2x16x16x4xf32>
      tpu.vector_store %arg6[%c0_88, %c0_89, %c0_90, %c0_91], %94 {strides = array<i32>} : memref<2x16x16x128xf32, #tpu.memory_space<vmem>>, vector<2x16x16x4xf32>,
      %cst_92 = arith.constant 0.000000e+00 : f32
      %96 = vector.broadcast %cst_92 : f32 to vector<2x18x18x128xf32>
      %c0_93 = arith.constant 0 : index
      %c0_94 = arith.constant 0 : index
      %c0_95 = arith.constant 0 : index
      %c0_96 = arith.constant 0 : index
      %97 = vector.load %arg7[%c0_93, %c0_94, %c0_95, %c0_96] : memref<2x18x18x128xf32, #tpu.memory_space<vmem>>, vector<2x18x18x128xf32>
      tpu.vector_store %arg7[%c0_93, %c0_94, %c0_95, %c0_96], %96 {strides = array<i32>} : memref<2x18x18x128xf32, #tpu.memory_space<vmem>>, vector<2x18x18x128xf32>,
      %c0_97 = arith.constant 0 : index
      %c0_98 = arith.constant 0 : index
      %c0_99 = arith.constant 0 : index
      %c0_100 = arith.constant 0 : index
      %98 = vector.load %arg6[%c0_97, %c0_98, %c0_99, %c0_100] : memref<2x16x16x128xf32, #tpu.memory_space<vmem>>, vector<2x16x16x128xf32>
      %99 = vector.shape_cast %98 : vector<2x16x16x128xf32> to vector<512x128xf32>
      %cst_101 = arith.constant dense<0.000000e+00> : vector<128xf32>
      %100 = vector.multi_reduction <add>, %99, %cst_101 [0] : vector<512x128xf32> to vector<128xf32>
      %101 = vector.shape_cast %100 : vector<128xf32> to vector<1x128xf32>
      %c0_102 = arith.constant 0 : index
      %c0_103 = arith.constant 0 : index
      %102 = vector.load %arg8[%c0_102, %c0_103] : memref<2x128xf32, #tpu.memory_space<vmem>>, vector<1x128xf32>
      tpu.vector_store %arg8[%c0_102, %c0_103], %101 {strides = array<i32>} : memref<2x128xf32, #tpu.memory_space<vmem>>, vector<1x128xf32>,
      %103 = arith.mulf %99, %99 : vector<512x128xf32>
      %cst_104 = arith.constant dense<0.000000e+00> : vector<128xf32>
      %104 = vector.multi_reduction <add>, %103, %cst_104 [0] : vector<512x128xf32> to vector<128xf32>
      %105 = vector.shape_cast %104 : vector<128xf32> to vector<1x128xf32>
      %c1_105 = arith.constant 1 : index
      %c0_106 = arith.constant 0 : index
      %106 = vector.load %arg8[%c1_105, %c0_106] : memref<2x128xf32, #tpu.memory_space<vmem>>, vector<1x128xf32>
      tpu.vector_store %arg8[%c1_105, %c0_106], %105 {strides = array<i32>} : memref<2x128xf32, #tpu.memory_space<vmem>>, vector<1x128xf32>,
    } else {
    }
    %c0 = arith.constant 0 : index
    %c0_1 = arith.constant 0 : index
    %c0_2 = arith.constant 0 : index
    %c0_3 = arith.constant 0 : index
    %3 = vector.load %arg6[%c0, %c0_1, %c0_2, %c0_3] : memref<2x16x16x128xf32, #tpu.memory_space<vmem>>, vector<2x16x16x128xf32>
    %c0_4 = arith.constant 0 : index
    %c0_5 = arith.constant 0 : index
    %4 = vector.load %arg8[%c0_4, %c0_5] : memref<2x128xf32, #tpu.memory_space<vmem>>, vector<1x128xf32>
    %cst = arith.constant 0.001953125 : f32
    %5 = vector.broadcast %cst : f32 to vector<1x128xf32>
    %6 = arith.mulf %4, %5 : vector<1x128xf32>
    %c1 = arith.constant 1 : index
    %c0_6 = arith.constant 0 : index
    %7 = vector.load %arg8[%c1, %c0_6] : memref<2x128xf32, #tpu.memory_space<vmem>>, vector<1x128xf32>
    %cst_7 = arith.constant 0.001953125 : f32
    %8 = vector.broadcast %cst_7 : f32 to vector<1x128xf32>
    %9 = arith.mulf %7, %8 : vector<1x128xf32>
    %10 = arith.mulf %6, %6 : vector<1x128xf32>
    %11 = arith.subf %9, %10 : vector<1x128xf32>
    %c0_8 = arith.constant 0 : index
    %c0_9 = arith.constant 0 : index
    %c0_10 = arith.constant 0 : index
    %12 = vector.load %arg2[%c0_8, %c0_9, %c0_10] : memref<1x1x128xf32, #tpu.memory_space<vmem>>, vector<1x1x128xf32>
    %13 = vector.shape_cast %12 : vector<1x1x128xf32> to vector<1x128xf32>
    %cst_11 = arith.constant 9.99999974E-6 : f32
    %14 = vector.broadcast %cst_11 : f32 to vector<1x128xf32>
    %15 = arith.addf %11, %14 : vector<1x128xf32>
    %16 = math.rsqrt %15 : vector<1x128xf32>
    %17 = arith.mulf %13, %16 : vector<1x128xf32>
    %c0_12 = arith.constant 0 : index
    %c0_13 = arith.constant 0 : index
    %c0_14 = arith.constant 0 : index
    %18 = vector.load %arg3[%c0_12, %c0_13, %c0_14] : memref<1x1x128xf32, #tpu.memory_space<vmem>>, vector<1x1x128xf32>
    %19 = vector.shape_cast %18 : vector<1x1x128xf32> to vector<1x128xf32>
    %20 = arith.mulf %6, %17 : vector<1x128xf32>
    %21 = arith.subf %19, %20 : vector<1x128xf32>
    %22 = vector.shape_cast %17 : vector<1x128xf32> to vector<1x1x1x128xf32>
    %23 = vector.broadcast %22 : vector<1x1x1x128xf32> to vector<2x16x16x128xf32>
    %24 = arith.mulf %3, %23 : vector<2x16x16x128xf32>
    %25 = vector.shape_cast %21 : vector<1x128xf32> to vector<1x1x1x128xf32>
    %26 = vector.broadcast %25 : vector<1x1x1x128xf32> to vector<2x16x16x128xf32>
    %27 = arith.addf %24, %26 : vector<2x16x16x128xf32>
    %cst_15 = arith.constant 0.000000e+00 : f32
    %28 = vector.broadcast %cst_15 : f32 to vector<2x16x16x128xf32>
    %29 = arith.maximumf %27, %28 : vector<2x16x16x128xf32>
    %c0_16 = arith.constant 0 : index
    %c1_17 = arith.constant 1 : index
    %c1_18 = arith.constant 1 : index
    %c0_19 = arith.constant 0 : index
    %30 = vector.load %arg7[%c0_16, %c1_17, %c1_18, %c0_19] : memref<2x18x18x128xf32, #tpu.memory_space<vmem>>, vector<2x16x16x128xf32>
    tpu.vector_store %arg7[%c0_16, %c1_17, %c1_18, %c0_19], %29 {strides = array<i32>} : memref<2x18x18x128xf32, #tpu.memory_space<vmem>>, vector<2x16x16x128xf32>,
    %c0_20 = arith.constant 0 : index
    %c0_21 = arith.constant 0 : index
    %c0_22 = arith.constant 0 : index
    %c0_23 = arith.constant 0 : index
    %31 = vector.load %arg4[%c0_20, %c0_21, %c0_22, %c0_23] : memref<1x3x384x128xbf16, #tpu.memory_space<vmem>>, vector<1x3x384x128xbf16>
    %32 = vector.shape_cast %31 : vector<1x3x384x128xbf16> to vector<3x384x128xbf16>
    %c0_24 = arith.constant 0 : index
    %c0_25 = arith.constant 0 : index
    %c0_26 = arith.constant 0 : index
    %c0_27 = arith.constant 0 : index
    %33 = vector.load %arg7[%c0_24, %c0_25, %c0_26, %c0_27] : memref<2x18x18x128xf32, #tpu.memory_space<vmem>>, vector<2x16x16x128xf32>
    %34 = vector.shape_cast %33 : vector<2x16x16x128xf32> to vector<512x128xf32>
    %35 = arith.truncf %34 : vector<512x128xf32> to vector<512x128xbf16>
    %c0_28 = arith.constant 0 : index
    %c0_29 = arith.constant 0 : index
    %c1_30 = arith.constant 1 : index
    %c0_31 = arith.constant 0 : index
    %36 = vector.load %arg7[%c0_28, %c0_29, %c1_30, %c0_31] : memref<2x18x18x128xf32, #tpu.memory_space<vmem>>, vector<2x16x16x128xf32>
    %37 = vector.shape_cast %36 : vector<2x16x16x128xf32> to vector<512x128xf32>
    %38 = arith.truncf %37 : vector<512x128xf32> to vector<512x128xbf16>
    %c0_32 = arith.constant 0 : index
    %c0_33 = arith.constant 0 : index
    %c2 = arith.constant 2 : index
    %c0_34 = arith.constant 0 : index
    %39 = vector.load %arg7[%c0_32, %c0_33, %c2, %c0_34] : memref<2x18x18x128xf32, #tpu.memory_space<vmem>>, vector<2x16x16x128xf32>
    %40 = vector.shape_cast %39 : vector<2x16x16x128xf32> to vector<512x128xf32>
    %41 = arith.truncf %40 : vector<512x128xf32> to vector<512x128xbf16>
    %42 = tpu.concatenate %35, %38, %41 in 1 : vector<512x128xbf16>, vector<512x128xbf16>, vector<512x128xbf16> -> vector<512x384xbf16>
    %43 = vector.extract_strided_slice %32 {offsets = [0, 0, 0], sizes = [1, 384, 128], strides = [1, 1, 1]} : vector<3x384x128xbf16> to vector<1x384x128xbf16>
    %44 = vector.shape_cast %43 : vector<1x384x128xbf16> to vector<384x128xbf16>
    %cst_35 = arith.constant dense<0.000000e+00> : vector<512x128xf32>
    %45 = tpu.matmul %42, %44, %cst_35 {dimension_numbers = #tpu.dot_dimension_numbers<[1], [0], [0], [1], [0, 0, 1, 1], [], []>} : vector<512x384xbf16>, vector<384x128xbf16>, vector<512x128xf32> -> vector<512x128xf32>
    %c0_36 = arith.constant 0 : index
    %c1_37 = arith.constant 1 : index
    %c0_38 = arith.constant 0 : index
    %c0_39 = arith.constant 0 : index
    %46 = vector.load %arg7[%c0_36, %c1_37, %c0_38, %c0_39] : memref<2x18x18x128xf32, #tpu.memory_space<vmem>>, vector<2x16x16x128xf32>
    %47 = vector.shape_cast %46 : vector<2x16x16x128xf32> to vector<512x128xf32>
    %48 = arith.truncf %47 : vector<512x128xf32> to vector<512x128xbf16>
    %c0_40 = arith.constant 0 : index
    %c1_41 = arith.constant 1 : index
    %c1_42 = arith.constant 1 : index
    %c0_43 = arith.constant 0 : index
    %49 = vector.load %arg7[%c0_40, %c1_41, %c1_42, %c0_43] : memref<2x18x18x128xf32, #tpu.memory_space<vmem>>, vector<2x16x16x128xf32>
    %50 = vector.shape_cast %49 : vector<2x16x16x128xf32> to vector<512x128xf32>
    %51 = arith.truncf %50 : vector<512x128xf32> to vector<512x128xbf16>
    %c0_44 = arith.constant 0 : index
    %c1_45 = arith.constant 1 : index
    %c2_46 = arith.constant 2 : index
    %c0_47 = arith.constant 0 : index
    %52 = vector.load %arg7[%c0_44, %c1_45, %c2_46, %c0_47] : memref<2x18x18x128xf32, #tpu.memory_space<vmem>>, vector<2x16x16x128xf32>
    %53 = vector.shape_cast %52 : vector<2x16x16x128xf32> to vector<512x128xf32>
    %54 = arith.truncf %53 : vector<512x128xf32> to vector<512x128xbf16>
    %55 = tpu.concatenate %48, %51, %54 in 1 : vector<512x128xbf16>, vector<512x128xbf16>, vector<512x128xbf16> -> vector<512x384xbf16>
    %56 = vector.extract_strided_slice %32 {offsets = [1, 0, 0], sizes = [1, 384, 128], strides = [1, 1, 1]} : vector<3x384x128xbf16> to vector<1x384x128xbf16>
    %57 = vector.shape_cast %56 : vector<1x384x128xbf16> to vector<384x128xbf16>
    %cst_48 = arith.constant dense<0.000000e+00> : vector<512x128xf32>
    %58 = tpu.matmul %55, %57, %cst_48 {dimension_numbers = #tpu.dot_dimension_numbers<[1], [0], [0], [1], [0, 0, 1, 1], [], []>} : vector<512x384xbf16>, vector<384x128xbf16>, vector<512x128xf32> -> vector<512x128xf32>
    %59 = arith.addf %45, %58 : vector<512x128xf32>
    %c0_49 = arith.constant 0 : index
    %c2_50 = arith.constant 2 : index
    %c0_51 = arith.constant 0 : index
    %c0_52 = arith.constant 0 : index
    %60 = vector.load %arg7[%c0_49, %c2_50, %c0_51, %c0_52] : memref<2x18x18x128xf32, #tpu.memory_space<vmem>>, vector<2x16x16x128xf32>
    %61 = vector.shape_cast %60 : vector<2x16x16x128xf32> to vector<512x128xf32>
    %62 = arith.truncf %61 : vector<512x128xf32> to vector<512x128xbf16>
    %c0_53 = arith.constant 0 : index
    %c2_54 = arith.constant 2 : index
    %c1_55 = arith.constant 1 : index
    %c0_56 = arith.constant 0 : index
    %63 = vector.load %arg7[%c0_53, %c2_54, %c1_55, %c0_56] : memref<2x18x18x128xf32, #tpu.memory_space<vmem>>, vector<2x16x16x128xf32>
    %64 = vector.shape_cast %63 : vector<2x16x16x128xf32> to vector<512x128xf32>
    %65 = arith.truncf %64 : vector<512x128xf32> to vector<512x128xbf16>
    %c0_57 = arith.constant 0 : index
    %c2_58 = arith.constant 2 : index
    %c2_59 = arith.constant 2 : index
    %c0_60 = arith.constant 0 : index
    %66 = vector.load %arg7[%c0_57, %c2_58, %c2_59, %c0_60] : memref<2x18x18x128xf32, #tpu.memory_space<vmem>>, vector<2x16x16x128xf32>
    %67 = vector.shape_cast %66 : vector<2x16x16x128xf32> to vector<512x128xf32>
    %68 = arith.truncf %67 : vector<512x128xf32> to vector<512x128xbf16>
    %69 = tpu.concatenate %62, %65, %68 in 1 : vector<512x128xbf16>, vector<512x128xbf16>, vector<512x128xbf16> -> vector<512x384xbf16>
    %70 = vector.extract_strided_slice %32 {offsets = [2, 0, 0], sizes = [1, 384, 128], strides = [1, 1, 1]} : vector<3x384x128xbf16> to vector<1x384x128xbf16>
    %71 = vector.shape_cast %70 : vector<1x384x128xbf16> to vector<384x128xbf16>
    %cst_61 = arith.constant dense<0.000000e+00> : vector<512x128xf32>
    %72 = tpu.matmul %69, %71, %cst_61 {dimension_numbers = #tpu.dot_dimension_numbers<[1], [0], [0], [1], [0, 0, 1, 1], [], []>} : vector<512x384xbf16>, vector<384x128xbf16>, vector<512x128xf32> -> vector<512x128xf32>
    %73 = arith.addf %59, %72 : vector<512x128xf32>
    %c0_62 = arith.constant 0 : index
    %c0_63 = arith.constant 0 : index
    %c0_64 = arith.constant 0 : index
    %74 = vector.load %arg5[%c0_62, %c0_63, %c0_64] : memref<1x1x128xf32, #tpu.memory_space<vmem>>, vector<1x1x128xf32>
    %75 = vector.shape_cast %74 : vector<1x1x128xf32> to vector<1x128xf32>
    %76 = vector.broadcast %75 : vector<1x128xf32> to vector<512x128xf32>
    %77 = arith.addf %73, %76 : vector<512x128xf32>
    %78 = vector.shape_cast %77 : vector<512x128xf32> to vector<2x16x16x128xf32>
    %79 = arith.addf %3, %78 : vector<2x16x16x128xf32>
    %c0_65 = arith.constant 0 : index
    %c0_66 = arith.constant 0 : index
    %c0_67 = arith.constant 0 : index
    %c0_68 = arith.constant 0 : index
    %80 = vector.load %arg6[%c0_65, %c0_66, %c0_67, %c0_68] : memref<2x16x16x128xf32, #tpu.memory_space<vmem>>, vector<2x16x16x128xf32>
    tpu.vector_store %arg6[%c0_65, %c0_66, %c0_67, %c0_68], %79 {strides = array<i32>} : memref<2x16x16x128xf32, #tpu.memory_space<vmem>>, vector<2x16x16x128xf32>,
    %c0_69 = arith.constant 0 : index
    %c0_70 = arith.constant 0 : index
    %81 = vector.load %arg8[%c0_69, %c0_70] : memref<2x128xf32, #tpu.memory_space<vmem>>, vector<1x128xf32>
    %cst_71 = arith.constant dense<0.000000e+00> : vector<128xf32>
    %82 = vector.multi_reduction <add>, %77, %cst_71 [0] : vector<512x128xf32> to vector<128xf32>
    %83 = vector.shape_cast %82 : vector<128xf32> to vector<1x128xf32>
    %84 = arith.addf %81, %83 : vector<1x128xf32>
    %c0_72 = arith.constant 0 : index
    %c0_73 = arith.constant 0 : index
    %85 = vector.load %arg8[%c0_72, %c0_73] : memref<2x128xf32, #tpu.memory_space<vmem>>, vector<1x128xf32>
    tpu.vector_store %arg8[%c0_72, %c0_73], %84 {strides = array<i32>} : memref<2x128xf32, #tpu.memory_space<vmem>>, vector<1x128xf32>,
    %c1_74 = arith.constant 1 : index
    %c0_75 = arith.constant 0 : index
    %86 = vector.load %arg8[%c1_74, %c0_75] : memref<2x128xf32, #tpu.memory_space<vmem>>, vector<1x128xf32>
    %87 = arith.mulf %77, %77 : vector<512x128xf32>
    %cst_76 = arith.constant dense<0.000000e+00> : vector<128xf32>
    %88 = vector.multi_reduction <add>, %87, %cst_76 [0] : vector<512x128xf32> to vector<128xf32>
    %89 = vector.shape_cast %88 : vector<128xf32> to vector<1x128xf32>
    %90 = arith.addf %86, %89 : vector<1x128xf32>
    %c1_77 = arith.constant 1 : index
    %c0_78 = arith.constant 0 : index
    %91 = vector.load %arg8[%c1_77, %c0_78] : memref<2x128xf32, #tpu.memory_space<vmem>>, vector<1x128xf32>
    tpu.vector_store %arg8[%c1_77, %c0_78], %90 {strides = array<i32>} : memref<2x128xf32, #tpu.memory_space<vmem>>, vector<1x128xf32>,
    return
  }
  func.func @transform_0(%arg0: i32) -> (i32, i32, i32, i32) {
    %c0_i32 = arith.constant 0 : i32
    %c0_i32_0 = arith.constant 0 : i32
    %c0_i32_1 = arith.constant 0 : i32
    %c0_i32_2 = arith.constant 0 : i32
    %c0_i32_3 = arith.constant 0 : i32
    return %c0_i32, %c0_i32_0, %c0_i32_1, %c0_i32_2 : i32, i32, i32, i32
  }
  func.func @transform_1(%arg0: i32) -> (i32, i32, i32) {
    %c0_i32 = arith.constant 0 : i32
    %c0_i32_0 = arith.constant 0 : i32
    %c0_i32_1 = arith.constant 0 : i32
    return %arg0, %c0_i32, %c0_i32_0 : i32, i32, i32
  }
  func.func @transform_2(%arg0: i32) -> (i32, i32, i32) {
    %c0_i32 = arith.constant 0 : i32
    %c0_i32_0 = arith.constant 0 : i32
    %c0_i32_1 = arith.constant 0 : i32
    return %arg0, %c0_i32, %c0_i32_0 : i32, i32, i32
  }
  func.func @transform_3(%arg0: i32) -> (i32, i32, i32, i32) {
    %c0_i32 = arith.constant 0 : i32
    %c0_i32_0 = arith.constant 0 : i32
    %c0_i32_1 = arith.constant 0 : i32
    %c0_i32_2 = arith.constant 0 : i32
    return %arg0, %c0_i32, %c0_i32_0, %c0_i32_1 : i32, i32, i32, i32
  }
  func.func @transform_4(%arg0: i32) -> (i32, i32, i32) {
    %c0_i32 = arith.constant 0 : i32
    %c0_i32_0 = arith.constant 0 : i32
    %c0_i32_1 = arith.constant 0 : i32
    return %arg0, %c0_i32, %c0_i32_0 : i32, i32, i32
  }
  func.func @transform_5(%arg0: i32) -> (i32, i32, i32, i32) {
    %c0_i32 = arith.constant 0 : i32
    %c0_i32_0 = arith.constant 0 : i32
    %c0_i32_1 = arith.constant 0 : i32
    %c0_i32_2 = arith.constant 0 : i32
    %c0_i32_3 = arith.constant 0 : i32
    return %c0_i32, %c0_i32_0, %c0_i32_1, %c0_i32_2 : i32, i32, i32, i32
  }
}

</mosaic_0001>

<bundles_post_ra>
// kernel: tpu_custom_call.1
= control target key start
LH: loop header
LB: loop body
LE: loop exit
PB: predicated region body
PF: predicated region fallthrough
CT: control target
= control target key end

     0   :  { %10 = vsyncpa [#allocation5], 0  ;;  %s8069_s0 = inlined_call_operand.vmem [shape: f32[2,16,16,4], index: 0, kind: input, shape index: {}]   ;;  %s8070_s1 = inlined_call_operand.vmem [shape: f32[2,1,128], index: 1, kind: input, shape index: {}]   ;;  %s8071_s2 = inlined_call_operand.vmem [shape: f32[2,1,128], index: 2, kind: input, shape index: {}]   ;;  %s8072_s3 = inlined_call_operand.hbm [shape: bf16[2,3,384,128], index: 3, kind: input, shape index: {}]   ;;  %s8073_s4 = inlined_call_operand.vmem [shape: f32[2,1,128], index: 4, kind: input, shape index: {}]   ;;  %s8074_s5 = inlined_call_operand.hbm [shape: f32[2,16,16,128], index: 5, kind: output, shape index: {}]  }
   0x1   :  { %12 = vsyncpa [#allocation5 + $0x1], 0 }
   0x2   :  { %13 = vsyncpa [#allocation6], 0  ;;  %s5709_s18 = smov 0   ;;  %s5711_s19 = smov 0  }
   0x3   :  { %s5713_s20 = smov 0   ;;  %s5715_s21 = smov 0  }
   0x4 LB: > { %s5728_s22 = sadd.s32 4294967295, %s5669_s21   ;;  %s5731_s23 = sadd.s32 1, %s5669_s21   ;;  %s5669_s21 = sphi %s5715_s21, %s8366_s21   ;;  %s5665_s20 = sphi %s5713_s20, %s8365_s20   ;;  %s5661_s19 = sphi %s5711_s19, %s8364_s19   ;;  %s5657_s18 = sphi %s5709_s18, %s8363_s18  }
   0x5   : > { %s96_s24 = ssub.s32 %s5669_s21, %s5731_s23  ;;  %s99_s25 = sadd.s32 1, %s5665_s20 }
   0x6   : > { %p97_p0 = scmp.eq.s32.totalorder %s96_s24, 0  ;;  %p106_p1 = scmp.ne.s32.totalorder %s5665_s20, %s5661_s19 }
   0x7   : > { %p107_p2 = scmp.eq.s32.totalorder %s5669_s21, 0  ;;  %p112_p3 = scmp.ne.s32.totalorder %s5661_s19, %s5657_s18 }
   0x8   : > { %s5741_s26 = scalar_select %p97_p0, %s5665_s20, %s99_s25  }
   0x9   : > { %p108_p4 = por %p107_p2, %p106_p1  ;;  %p113_p5 = scmp.eq.s32.totalorder %s5728_s22, 0 }
   0xa   : > { %p5397_p6 = scmp.lt.s32.totalorder %s5669_s21, 2  ;;  %s198_s28 = sand.u32 1, %s5665_s20  }
   0xb   : > { %p5745_p7 = por %p113_p5, %p112_p3  ;;  %s5384_s29 = smul.u32 576, %s198_s28 }
   0xc   : > { %s5385_s30 = smul.u32 9216, %s5669_s21  ;;  %p5751_p8 = pnand %p5397_p6, %p108_p4 }
   0xd   : > { %s8079_s27 = scalar_select %p5745_p7, 1, 0 }
   0xe   : > { %s5758_s9 = scalar_lea.hbm %s8072_s3, %s5385_s30  ;;  %s202_s10 = scalar_lea.vmem [#allocation4], %s5384_s29 }
   0xf   : > { %s209_s11 = sshll.u32 %s202_s10, 4  ;;  %s5763_s12 = scalar_lea.sflag [#allocation5], %s198_s28  ;;  %s5760_s11 = int_to_ptr.vmem [resolvable:$true] %s209_s11 }
  0x10   : > { %s5579_s13 = scalar_lea.hbm %s5758_s9, 9216  ;;  %p5581_p11 = pneg %p5751_p8 }
  0x11   : > { %p5580_p10 = scmp.ne.s32.totalorder %s5758_s9, %s5579_s13  ;;  %s5584_s16 = scalar_lea.hbm %s8072_s3, 18432 }
  0x12   : > { %p5585_p0 = scmp.lt.s32.totalorder %s5758_s9, %s8072_s3  ;;  %p5586_p1 = scmp.lt.s32.totalorder %s5584_s16, %s5579_s13 }
  0x13   : > { %p5582_p12 = pnand %p5581_p11, %p5580_p10 }
  0x14   : > { %p5587_p2 = por %p5586_p1, %p5585_p0 }
  0x15   : > { %p5583_p13 = pneg %p5582_p12 }
  0x17   : > { %p5588_p3 = pnand %p5587_p2, %p5583_p13 }
  0x19   : > { %5591 = shalt.err (!%p5588_p3)
}
  0x1a   : > { %s5592_s24 = scalar_lea.vmem %s5760_s11, 9216  ;;  %s5671_s25 = smov [#allocation4]  }
  0x1b   : > { %p5593_p4 = scmp.ne.s32.totalorder %s5760_s11, %s5592_s24  ;;  %s5597_s28 = sshll.u32 %s5671_s25, 4  ;;  %s5598_s28 = int_to_ptr.vmem [resolvable:$false] %s5597_s28 }
  0x1c   : > { %s5599_s29 = scalar_lea.vmem %s5598_s28, 18432  ;;  %p5600_p10 = scmp.lt.s32.totalorder %s5760_s11, %s5598_s28 }
  0x1d   : > { %p5595_p5 = pnand %p5593_p4, %p5581_p11  ;;  %p5601_p12 = scmp.lt.s32.totalorder %s5599_s29, %s5592_s24 }
  0x1f   : > { %p5596_p6 = pneg %p5595_p5  ;;  %p5602_p9 = por %p5601_p12, %p5600_p10 }
  0x21   : > { %p5603_p7 = pnand %p5602_p9, %p5596_p6 }
  0x23   : > { %5606 = shalt.err (!%p5603_p7)
}
  0x24   : > { %s5672_s30 = smov 64   ;;  %s5673_s7 = smov 4  }
  0x25   : > { %5396 = dma.hbm_to_vmem [thread:$0]  (!%p5751_p8), %s5758_s9, 9216, %s5760_s11, %s5763_s12, %s5672_s30, %s5672_s30, %s5673_s7  }
  0x26   : > { %p223_p11 = scmp.lt.s32.totalorder %s5669_s21, 3  ;;  %p8081_p13 = scmp.ge.s32.totalorder %s5669_s21, 1 }
  0x28   : > { %p224_p0 = pnand %p8081_p13, %p223_p11 }
  0x2a   : > { %227 = sbr.rel (%p224_p0) target bundleno = 1165 (0x48d), region = 40 }
  0x2f   : > { %s229_s8 = sand.u32 1, %s5661_s19   ;;  %p8082_p7 = scmp.ne.s32.totalorder %s8079_s27, 0 }
  0x30   : > { %s5386_s10 = smul.u32 576, %s229_s8  ;;  %s230_s13 = scalar_lea.sflag [#allocation5], %s229_s8 }
  0x32   : > { %s5788_s14 = scalar_lea.vmem [#allocation4], %s5386_s10 }
  0x33   : > { %5648 = dma.done.wait (%p8082_p7), %s230_s13, 9216  }
  0x34   : > { %5650 = vsyncadd (%p8082_p7), %s230_s13, 4294958080  ;;  %p264_p9 = scmp.lt.s32.totalorder %s5728_s22, 1  ;;  %p4930_p8 = scmp.ne.s32.totalorder %s5728_s22, 0 }
  0x36   : > { %s5796_s6 = scalar_select %p264_p9, %s5728_s22, 1 }
  0x37   : > { %277 = sbr.rel (%p4930_p8) target bundleno = 296 (0x128), region = 48 }
  0x38   : > { %s266_s11 = scalar_lea.vmem %s8070_s1, %s5796_s6  ;;  %s269_s16 = scalar_lea.vmem %s8071_s2, %s5796_s6 }
  0x39   : > { %s5810_s27 = scalar_lea.vmem %s8073_s4, %s5796_s6 }
  0x3c   : > { %v5816_v0 = vld [vmem:[%s8069_s0] sm:$0xff]  ;;  %vm406_vm0 = vcmask 31744   ;;  %v5821_v1 = vld [vmem:[%s8069_s0 + $0x8] sm:$0xff]  ;;  %v5826_v2 = vld [vmem:[%s8069_s0 + $0x10] sm:$0xff]  ;;  %v5674_v3 = vmov 0.0  }
  0x3d   : > { %278 = vst [vmem:[#allocation7] sm:$0xff] %v5674_v3  ;;  %279 = vst [vmem:[#allocation7 + $0x8] sm:$0xff] %v5674_v3  ;;  %v345_v4 = vld [vmem:[%s8069_s0 + $0x18] sm:$0xff]  ;;  %v346_v5 = vld [vmem:[%s8069_s0 + $0x20] sm:$0xff] }
  0x3e   : > { %280 = vst [vmem:[#allocation7 + $0x10] sm:$0xff] %v5674_v3  ;;  %281 = vst [vmem:[#allocation7 + $0x18] sm:$0xff] %v5674_v3  ;;  %v347_v6 = vld [vmem:[%s8069_s0 + $0x28] sm:$0xff]  ;;  %v348_v7 = vld [vmem:[%s8069_s0 + $0x30] sm:$0xff] }
  0x3f   : > { %282 = vst [vmem:[#allocation7 + $0x20] sm:$0xff] %v5674_v3  ;;  %283 = vst [vmem:[#allocation7 + $0x28] sm:$0xff] %v5674_v3  ;;  %v349_v8 = vld [vmem:[%s8069_s0 + $0x38] sm:$0xff]  ;;  %v350_v9 = vld [vmem:[%s8069_s0 + $0x40] sm:$0xff] }
  0x40   : > { %284 = vst [vmem:[#allocation7 + $0x30] sm:$0xff] %v5674_v3  ;;  %285 = vst [vmem:[#allocation7 + $0x38] sm:$0xff] %v5674_v3  ;;  %v351_v10 = vld [vmem:[%s8069_s0 + $0x48] sm:$0xff]  ;;  %v352_v11 = vld [vmem:[%s8069_s0 + $0x50] sm:$0xff] }
  0x41   : > { %286 = vst [vmem:[#allocation7 + $0x40] sm:$0xff] %v5674_v3  ;;  %287 = vst [vmem:[#allocation7 + $0x48] sm:$0xff] %v5674_v3  ;;  %v353_v12 = vld [vmem:[%s8069_s0 + $0x58] sm:$0xff]  ;;  %v354_v13 = vld [vmem:[%s8069_s0 + $0x60] sm:$0xff] }
  0x42   : > { %288 = vst [vmem:[#allocation7 + $0x50] sm:$0xff] %v5674_v3  ;;  %289 = vst [vmem:[#allocation7 + $0x58] sm:$0xff] %v5674_v3  ;;  %v355_v14 = vld [vmem:[%s8069_s0 + $0x68] sm:$0xff]  ;;  %v356_v15 = vld [vmem:[%s8069_s0 + $0x70] sm:$0xff] }
  0x43   : > { %290 = vst [vmem:[#allocation7 + $0x60] sm:$0xff] %v5674_v3  ;;  %291 = vst [vmem:[#allocation7 + $0x68] sm:$0xff] %v5674_v3  ;;  %v357_v16 = vld [vmem:[%s8069_s0 + $0x78] sm:$0xff]  ;;  %v358_v17 = vld [vmem:[%s8069_s0 + $0x80] sm:$0xff] }
  0x44   : > { %292 = vst [vmem:[#allocation7 + $0x70] sm:$0xff] %v5674_v3  ;;  %293 = vst [vmem:[#allocation7 + $0x78] sm:$0xff] %v5674_v3  ;;  %v359_v18 = vld [vmem:[%s8069_s0 + $0x88] sm:$0xff]  ;;  %v360_v19 = vld [vmem:[%s8069_s0 + $0x90] sm:$0xff] }
  0x45   : > { %294 = vst [vmem:[#allocation7 + $0x80] sm:$0xff] %v5674_v3  ;;  %295 = vst [vmem:[#allocation7 + $0x88] sm:$0xff] %v5674_v3  ;;  %v361_v20 = vld [vmem:[%s8069_s0 + $0x98] sm:$0xff]  ;;  %v362_v21 = vld [vmem:[%s8069_s0 + $0xa0] sm:$0xff] }
  0x46   : > { %296 = vst [vmem:[#allocation7 + $0x90] sm:$0xff] %v5674_v3  ;;  %297 = vst [vmem:[#allocation7 + $0x98] sm:$0xff] %v5674_v3  ;;  %v363_v22 = vld [vmem:[%s8069_s0 + $0xa8] sm:$0xff]  ;;  %v364_v23 = vld [vmem:[%s8069_s0 + $0xb0] sm:$0xff] }
  0x47   : > { %298 = vst [vmem:[#allocation7 + $0xa0] sm:$0xff] %v5674_v3  ;;  %299 = vst [vmem:[#allocation7 + $0xa8] sm:$0xff] %v5674_v3  ;;  %v365_v24 = vld [vmem:[%s8069_s0 + $0xb8] sm:$0xff]  ;;  %v366_v25 = vld [vmem:[%s8069_s0 + $0xc0] sm:$0xff] }
  0x48   : > { %300 = vst [vmem:[#allocation7 + $0xb0] sm:$0xff] %v5674_v3  ;;  %301 = vst [vmem:[#allocation7 + $0xb8] sm:$0xff] %v5674_v3  ;;  %v367_v26 = vld [vmem:[%s8069_s0 + $0xc8] sm:$0xff]  ;;  %v368_v27 = vld [vmem:[%s8069_s0 + $0xd0] sm:$0xff] }
  0x49   : > { %302 = vst [vmem:[#allocation7 + $0xc0] sm:$0xff] %v5674_v3  ;;  %303 = vst [vmem:[#allocation7 + $0xc8] sm:$0xff] %v5674_v3  ;;  %v369_v53 = vld [vmem:[%s8069_s0 + $0xd8] sm:$0xff]  ;;  %v370_v54 = vld [vmem:[%s8069_s0 + $0xe0] sm:$0xff] }
  0x4a   : > { %304 = vst [vmem:[#allocation7 + $0xd0] sm:$0xff] %v5674_v3  ;;  %305 = vst [vmem:[#allocation7 + $0xd8] sm:$0xff] %v5674_v3  ;;  %v371_v55 = vld [vmem:[%s8069_s0 + $0xe8] sm:$0xff]  ;;  %v372_v57 = vld [vmem:[%s8069_s0 + $0xf0] sm:$0xff] }
  0x4b   : > { %306 = vst [vmem:[#allocation7 + $0xe0] sm:$0xff] %v5674_v3  ;;  %307 = vst [vmem:[#allocation7 + $0xe8] sm:$0xff] %v5674_v3  ;;  %v373_v58 = vld [vmem:[%s8069_s0 + $0xf8] sm:$0xff]  ;;  %v374_v59 = vld [vmem:[%s8069_s0 + $0x100] sm:$0xff] }
  0x4c   : > { %308 = vst [vmem:[#allocation7 + $0xf0] sm:$0xff] %v5674_v3  ;;  %309 = vst [vmem:[#allocation7 + $0xf8] sm:$0xff] %v5674_v3  ;;  %v375_v63 = vld [vmem:[%s8069_s0 + $0x108] sm:$0xff] }
  0x4d   : > { %310 = vst [vmem:[#allocation7 + $0x100] sm:$0xff] %v5674_v3  ;;  %311 = vst [vmem:[#allocation7 + $0x108] sm:$0xff] %v5674_v3 }
  0x4e   : > { %312 = vst [vmem:[#allocation7 + $0x110] sm:$0xff] %v5674_v3  ;;  %313 = vst [vmem:[#allocation7 + $0x118] sm:$0xff] %v5674_v3 }
  0x4f   : > { %314 = vst [vmem:[#allocation7 + $0x120] sm:$0xff] %v5674_v3  ;;  %315 = vst [vmem:[#allocation7 + $0x128] sm:$0xff] %v5674_v3 }
  0x50   : > { %316 = vst [vmem:[#allocation7 + $0x130] sm:$0xff] %v5674_v3  ;;  %317 = vst [vmem:[#allocation7 + $0x138] sm:$0xff] %v5674_v3 }
  0x51   : > { %318 = vst [vmem:[#allocation7 + $0x140] sm:$0xff] %v5674_v3  ;;  %319 = vst [vmem:[#allocation7 + $0x148] sm:$0xff] %v5674_v3 }
  0x52   : > { %320 = vst [vmem:[#allocation7 + $0x150] sm:$0xff] %v5674_v3  ;;  %321 = vst [vmem:[#allocation7 + $0x158] sm:$0xff] %v5674_v3 }
  0x53   : > { %322 = vst [vmem:[#allocation7 + $0x160] sm:$0xff] %v5674_v3  ;;  %323 = vst [vmem:[#allocation7 + $0x168] sm:$0xff] %v5674_v3 }
  0x54   : > { %324 = vst [vmem:[#allocation7 + $0x170] sm:$0xff] %v5674_v3  ;;  %325 = vst [vmem:[#allocation7 + $0x178] sm:$0xff] %v5674_v3 }
  0x55   : > { %326 = vst [vmem:[#allocation7 + $0x180] sm:$0xff] %v5674_v3  ;;  %327 = vst [vmem:[#allocation7 + $0x188] sm:$0xff] %v5674_v3 }
  0x56   : > { %328 = vst [vmem:[#allocation7 + $0x190] sm:$0xff] %v5674_v3  ;;  %329 = vst [vmem:[#allocation7 + $0x198] sm:$0xff] %v5674_v3 }
  0x57   : > { %330 = vst [vmem:[#allocation7 + $0x1a0] sm:$0xff] %v5674_v3  ;;  %331 = vst [vmem:[#allocation7 + $0x1a8] sm:$0xff] %v5674_v3 }
  0x58   : > { %332 = vst [vmem:[#allocation7 + $0x1b0] sm:$0xff] %v5674_v3  ;;  %333 = vst [vmem:[#allocation7 + $0x1b8] sm:$0xff] %v5674_v3 }
  0x59   : > { %334 = vst [vmem:[#allocation7 + $0x1c0] sm:$0xff] %v5674_v3  ;;  %335 = vst [vmem:[#allocation7 + $0x1c8] sm:$0xff] %v5674_v3 }
  0x5a   : > { %336 = vst [vmem:[#allocation7 + $0x1d0] sm:$0xff] %v5674_v3  ;;  %337 = vst [vmem:[#allocation7 + $0x1d8] sm:$0xff] %v5674_v3 }
  0x5b   : > { %338 = vst [vmem:[#allocation7 + $0x1e0] sm:$0xff] %v5674_v3  ;;  %339 = vst [vmem:[#allocation7 + $0x1e8] sm:$0xff] %v5674_v3 }
  0x5c   : > { %340 = vst [vmem:[#allocation7 + $0x1f0] sm:$0xff] %v5674_v3  ;;  %341 = vst [vmem:[#allocation7 + $0x1f8] sm:$0xff] %v5674_v3 }
  0x5d   : > { %471 = vst [vmem:[#allocation2] sm:$0xff] %v5674_v3  ;;  %472 = vst [vmem:[#allocation2 + $0x8] sm:$0xff] %v5674_v3 }
  0x5e   : > { %473 = vst [vmem:[#allocation2 + $0x10] sm:$0x3] %v5674_v3  ;;  %474 = vst [vmem:[#allocation2 + $0x18] sm:$0xff] %v5674_v3 }
  0x5f   : > { %475 = vst [vmem:[#allocation2 + $0x20] sm:$0xff] %v5674_v3  ;;  %476 = vst [vmem:[#allocation2 + $0x28] sm:$0x3] %v5674_v3 }
  0x60   : > { %477 = vst [vmem:[#allocation2 + $0x30] sm:$0xff] %v5674_v3  ;;  %478 = vst [vmem:[#allocation2 + $0x38] sm:$0xff] %v5674_v3 }
  0x61   : > { %479 = vst [vmem:[#allocation2 + $0x40] sm:$0x3] %v5674_v3  ;;  %480 = vst [vmem:[#allocation2 + $0x48] sm:$0xff] %v5674_v3 }
  0x62   : > { %481 = vst [vmem:[#allocation2 + $0x50] sm:$0xff] %v5674_v3  ;;  %482 = vst [vmem:[#allocation2 + $0x58] sm:$0x3] %v5674_v3 }
  0x63   : > { %483 = vst [vmem:[#allocation2 + $0x60] sm:$0xff] %v5674_v3  ;;  %484 = vst [vmem:[#allocation2 + $0x68] sm:$0xff] %v5674_v3 }
  0x64   : > { %485 = vst [vmem:[#allocation2 + $0x70] sm:$0x3] %v5674_v3  ;;  %486 = vst [vmem:[#allocation2 + $0x78] sm:$0xff] %v5674_v3 }
  0x65   : > { %487 = vst [vmem:[#allocation2 + $0x80] sm:$0xff] %v5674_v3  ;;  %488 = vst [vmem:[#allocation2 + $0x88] sm:$0x3] %v5674_v3 }
  0x66   : > { %489 = vst [vmem:[#allocation2 + $0x90] sm:$0xff] %v5674_v3  ;;  %490 = vst [vmem:[#allocation2 + $0x98] sm:$0xff] %v5674_v3 }
  0x67   : > { %491 = vst [vmem:[#allocation2 + $0xa0] sm:$0x3] %v5674_v3  ;;  %492 = vst [vmem:[#allocation2 + $0xa8] sm:$0xff] %v5674_v3 }
  0x68   : > { %493 = vst [vmem:[#allocation2 + $0xb0] sm:$0xff] %v5674_v3  ;;  %494 = vst [vmem:[#allocation2 + $0xb8] sm:$0x3] %v5674_v3 }
  0x69   : > { %495 = vst [vmem:[#allocation2 + $0xc0] sm:$0xff] %v5674_v3  ;;  %496 = vst [vmem:[#allocation2 + $0xc8] sm:$0xff] %v5674_v3 }
  0x6a   : > { %497 = vst [vmem:[#allocation2 + $0xd0] sm:$0x3] %v5674_v3  ;;  %498 = vst [vmem:[#allocation2 + $0xd8] sm:$0xff] %v5674_v3 }
  0x6b   : > { %499 = vst [vmem:[#allocation2 + $0xe0] sm:$0xff] %v5674_v3  ;;  %500 = vst [vmem:[#allocation2 + $0xe8] sm:$0x3] %v5674_v3 }
  0x6c   : > { %501 = vst [vmem:[#allocation2 + $0xf0] sm:$0xff] %v5674_v3  ;;  %502 = vst [vmem:[#allocation2 + $0xf8] sm:$0xff] %v5674_v3 }
  0x6d   : > { %503 = vst [vmem:[#allocation2 + $0x100] sm:$0x3] %v5674_v3  ;;  %504 = vst [vmem:[#allocation2 + $0x108] sm:$0xff] %v5674_v3 }
  0x6e   : > { %505 = vst [vmem:[#allocation2 + $0x110] sm:$0xff] %v5674_v3  ;;  %506 = vst [vmem:[#allocation2 + $0x118] sm:$0x3] %v5674_v3 }
  0x6f   : > { %507 = vst [vmem:[#allocation2 + $0x120] sm:$0xff] %v5674_v3  ;;  %508 = vst [vmem:[#allocation2 + $0x128] sm:$0xff] %v5674_v3 }
  0x70   : > { %509 = vst [vmem:[#allocation2 + $0x130] sm:$0x3] %v5674_v3  ;;  %510 = vst [vmem:[#allocation2 + $0x138] sm:$0xff] %v5674_v3 }
  0x71   : > { %511 = vst [vmem:[#allocation2 + $0x140] sm:$0xff] %v5674_v3  ;;  %512 = vst [vmem:[#allocation2 + $0x148] sm:$0x3] %v5674_v3 }
  0x72   : > { %513 = vst [vmem:[#allocation2 + $0x150] sm:$0xff] %v5674_v3  ;;  %514 = vst [vmem:[#allocation2 + $0x158] sm:$0xff] %v5674_v3 }
  0x73   : > { %515 = vst [vmem:[#allocation2 + $0x160] sm:$0x3] %v5674_v3  ;;  %516 = vst [vmem:[#allocation2 + $0x168] sm:$0xff] %v5674_v3 }
  0x74   : > { %517 = vst [vmem:[#allocation2 + $0x170] sm:$0xff] %v5674_v3  ;;  %518 = vst [vmem:[#allocation2 + $0x178] sm:$0x3] %v5674_v3 }
  0x75   : > { %519 = vst [vmem:[#allocation2 + $0x180] sm:$0xff] %v5674_v3  ;;  %520 = vst [vmem:[#allocation2 + $0x188] sm:$0xff] %v5674_v3 }
  0x76   : > { %521 = vst [vmem:[#allocation2 + $0x190] sm:$0x3] %v5674_v3  ;;  %522 = vst [vmem:[#allocation2 + $0x198] sm:$0xff] %v5674_v3 }
  0x77   : > { %523 = vst [vmem:[#allocation2 + $0x1a0] sm:$0xff] %v5674_v3  ;;  %524 = vst [vmem:[#allocation2 + $0x1a8] sm:$0x3] %v5674_v3 }
  0x78   : > { %525 = vst [vmem:[#allocation2 + $0x1b0] sm:$0xff] %v5674_v3  ;;  %526 = vst [vmem:[#allocation2 + $0x1b8] sm:$0xff] %v5674_v3 }
  0x79   : > { %527 = vst [vmem:[#allocation2 + $0x1c0] sm:$0x3] %v5674_v3  ;;  %528 = vst [vmem:[#allocation2 + $0x1c8] sm:$0xff] %v5674_v3 }
  0x7a   : > { %529 = vst [vmem:[#allocation2 + $0x1d0] sm:$0xff] %v5674_v3  ;;  %530 = vst [vmem:[#allocation2 + $0x1d8] sm:$0x3] %v5674_v3 }
  0x7b   : > { %531 = vst [vmem:[#allocation2 + $0x1e0] sm:$0xff] %v5674_v3  ;;  %532 = vst [vmem:[#allocation2 + $0x1e8] sm:$0xff] %v5674_v3 }
  0x7c   : > { %533 = vst [vmem:[#allocation2 + $0x1f0] sm:$0x3] %v5674_v3  ;;  %534 = vst [vmem:[#allocation2 + $0x1f8] sm:$0xff] %v5674_v3 }
  0x7d   : > { %535 = vst [vmem:[#allocation2 + $0x200] sm:$0xff] %v5674_v3  ;;  %536 = vst [vmem:[#allocation2 + $0x208] sm:$0x3] %v5674_v3 }
  0x7e   : > { %537 = vst [vmem:[#allocation2 + $0x210] sm:$0xff] %v5674_v3  ;;  %538 = vst [vmem:[#allocation2 + $0x218] sm:$0xff] %v5674_v3 }
  0x7f   : > { %539 = vst [vmem:[#allocation2 + $0x220] sm:$0x3] %v5674_v3  ;;  %540 = vst [vmem:[#allocation2 + $0x228] sm:$0xff] %v5674_v3 }
  0x80   : > { %541 = vst [vmem:[#allocation2 + $0x230] sm:$0xff] %v5674_v3  ;;  %542 = vst [vmem:[#allocation2 + $0x238] sm:$0x3] %v5674_v3 }
  0x81   : > { %543 = vst [vmem:[#allocation2 + $0x240] sm:$0xff] %v5674_v3  ;;  %544 = vst [vmem:[#allocation2 + $0x248] sm:$0xff] %v5674_v3 }
  0x82   : > { %545 = vst [vmem:[#allocation2 + $0x250] sm:$0x3] %v5674_v3  ;;  %546 = vst [vmem:[#allocation2 + $0x258] sm:$0xff] %v5674_v3 }
  0x83   : > { %547 = vst [vmem:[#allocation2 + $0x260] sm:$0xff] %v5674_v3  ;;  %548 = vst [vmem:[#allocation2 + $0x268] sm:$0x3] %v5674_v3 }
  0x84   : > { %549 = vst [vmem:[#allocation2 + $0x270] sm:$0xff] %v5674_v3  ;;  %550 = vst [vmem:[#allocation2 + $0x278] sm:$0xff] %v5674_v3 }
  0x85   : > { %551 = vst [vmem:[#allocation2 + $0x280] sm:$0x3] %v5674_v3  ;;  %552 = vst [vmem:[#allocation2 + $0x288] sm:$0xff] %v5674_v3 }
  0x86   : > { %553 = vst [vmem:[#allocation2 + $0x290] sm:$0xff] %v5674_v3  ;;  %554 = vst [vmem:[#allocation2 + $0x298] sm:$0x3] %v5674_v3 }
  0x87   : > { %555 = vst [vmem:[#allocation2 + $0x2a0] sm:$0xff] %v5674_v3  ;;  %556 = vst [vmem:[#allocation2 + $0x2a8] sm:$0xff] %v5674_v3 }
  0x88   : > { %557 = vst [vmem:[#allocation2 + $0x2b0] sm:$0x3] %v5674_v3  ;;  %558 = vst [vmem:[#allocation2 + $0x2b8] sm:$0xff] %v5674_v3 }
  0x89   : > { %559 = vst [vmem:[#allocation2 + $0x2c0] sm:$0xff] %v5674_v3  ;;  %560 = vst [vmem:[#allocation2 + $0x2c8] sm:$0x3] %v5674_v3 }
  0x8a   : > { %561 = vst [vmem:[#allocation2 + $0x2d0] sm:$0xff] %v5674_v3  ;;  %562 = vst [vmem:[#allocation2 + $0x2d8] sm:$0xff] %v5674_v3 }
  0x8b   : > { %563 = vst [vmem:[#allocation2 + $0x2e0] sm:$0x3] %v5674_v3  ;;  %564 = vst [vmem:[#allocation2 + $0x2e8] sm:$0xff] %v5674_v3 }
  0x8c   : > { %565 = vst [vmem:[#allocation2 + $0x2f0] sm:$0xff] %v5674_v3  ;;  %566 = vst [vmem:[#allocation2 + $0x2f8] sm:$0x3] %v5674_v3 }
  0x8d   : > { %567 = vst [vmem:[#allocation2 + $0x300] sm:$0xff] %v5674_v3  ;;  %568 = vst [vmem:[#allocation2 + $0x308] sm:$0xff] %v5674_v3 }
  0x8e   : > { %569 = vst [vmem:[#allocation2 + $0x310] sm:$0x3] %v5674_v3  ;;  %570 = vst [vmem:[#allocation2 + $0x318] sm:$0xff] %v5674_v3 }
  0x8f   : > { %571 = vst [vmem:[#allocation2 + $0x320] sm:$0xff] %v5674_v3  ;;  %572 = vst [vmem:[#allocation2 + $0x328] sm:$0x3] %v5674_v3 }
  0x90   : > { %573 = vst [vmem:[#allocation2 + $0x330] sm:$0xff] %v5674_v3  ;;  %574 = vst [vmem:[#allocation2 + $0x338] sm:$0xff] %v5674_v3 }
  0x91   : > { %575 = vst [vmem:[#allocation2 + $0x340] sm:$0x3] %v5674_v3  ;;  %576 = vst [vmem:[#allocation2 + $0x348] sm:$0xff] %v5674_v3 }
  0x92   : > { %577 = vst [vmem:[#allocation2 + $0x350] sm:$0xff] %v5674_v3  ;;  %578 = vst [vmem:[#allocation2 + $0x358] sm:$0x3] %v5674_v3  ;;  %v378_v3 = vld [vmem:[%s8069_s0 + $0x120] sm:$0xff] }
  0x93   : > { %407 = vst.msk [vmem:[#allocation7] sm:$0xff] %vm406_vm0, %v5816_v0  ;;  %408 = vst.msk [vmem:[#allocation7 + $0x8] sm:$0xff] %vm406_vm0, %v5821_v1  ;;  %v376_v0 = vld [vmem:[%s8069_s0 + $0x110] sm:$0xff]  ;;  %v377_v1 = vld [vmem:[%s8069_s0 + $0x118] sm:$0xff] }
  0x94   : > { %409 = vst.msk [vmem:[#allocation7 + $0x10] sm:$0xff] %vm406_vm0, %v5826_v2  ;;  %410 = vst.msk [vmem:[#allocation7 + $0x18] sm:$0xff] %vm406_vm0, %v345_v4  ;;  %v379_v4 = vld [vmem:[%s8069_s0 + $0x128] sm:$0xff] }
  0x95   : > { %411 = vst.msk [vmem:[#allocation7 + $0x20] sm:$0xff] %vm406_vm0, %v346_v5  ;;  %412 = vst.msk [vmem:[#allocation7 + $0x28] sm:$0xff] %vm406_vm0, %v347_v6  ;;  %v380_v5 = vld [vmem:[%s8069_s0 + $0x130] sm:$0xff] }
  0x96   : > { %413 = vst.msk [vmem:[#allocation7 + $0x30] sm:$0xff] %vm406_vm0, %v348_v7  ;;  %414 = vst.msk [vmem:[#allocation7 + $0x38] sm:$0xff] %vm406_vm0, %v349_v8 }
  0x97   : > { %415 = vst.msk [vmem:[#allocation7 + $0x40] sm:$0xff] %vm406_vm0, %v350_v9  ;;  %416 = vst.msk [vmem:[#allocation7 + $0x48] sm:$0xff] %vm406_vm0, %v351_v10  ;;  %v381_v9 = vld [vmem:[%s8069_s0 + $0x138] sm:$0xff]  ;;  %v382_v10 = vld [vmem:[%s8069_s0 + $0x140] sm:$0xff] }
  0x98   : > { %417 = vst.msk [vmem:[#allocation7 + $0x50] sm:$0xff] %vm406_vm0, %v352_v11  ;;  %418 = vst.msk [vmem:[#allocation7 + $0x58] sm:$0xff] %vm406_vm0, %v353_v12  ;;  %v383_v11 = vld [vmem:[%s8069_s0 + $0x148] sm:$0xff] }
  0x99   : > { %419 = vst.msk [vmem:[#allocation7 + $0x60] sm:$0xff] %vm406_vm0, %v354_v13  ;;  %420 = vst.msk [vmem:[#allocation7 + $0x68] sm:$0xff] %vm406_vm0, %v355_v14  ;;  %v384_v13 = vld [vmem:[%s8069_s0 + $0x150] sm:$0xff]  ;;  %v385_v14 = vld [vmem:[%s8069_s0 + $0x158] sm:$0xff] }
  0x9a   : > { %421 = vst.msk [vmem:[#allocation7 + $0x70] sm:$0xff] %vm406_vm0, %v356_v15  ;;  %422 = vst.msk [vmem:[#allocation7 + $0x78] sm:$0xff] %vm406_vm0, %v357_v16  ;;  %v579_v28 = vld [vmem:[#allocation7] sm:$0xff]  ;;  %v580_v29 = vld [vmem:[#allocation7 + $0x8] sm:$0xff] }
  0x9b   : > { %423 = vst.msk [vmem:[#allocation7 + $0x80] sm:$0xff] %vm406_vm0, %v358_v17  ;;  %424 = vst.msk [vmem:[#allocation7 + $0x88] sm:$0xff] %vm406_vm0, %v359_v18  ;;  %v581_v30 = vld [vmem:[#allocation7 + $0x10] sm:$0xff]  ;;  %v713_v31 = vmul.f32 %v579_v28, %v579_v28  ;;  %v643_v32 = vadd.f32 %v580_v29, %v579_v28  ;;  %v714_v33 = vmul.f32 %v580_v29, %v580_v29  ;;  %v582_v35 = vld [vmem:[#allocation7 + $0x18] sm:$0xff] }
  0x9c   : > { %425 = vst.msk [vmem:[#allocation7 + $0x90] sm:$0xff] %vm406_vm0, %v360_v19  ;;  %426 = vst.msk [vmem:[#allocation7 + $0x98] sm:$0xff] %vm406_vm0, %v361_v20  ;;  %v715_v34 = vmul.f32 %v581_v30, %v581_v30  ;;  %v583_v36 = vld [vmem:[#allocation7 + $0x20] sm:$0xff]  ;;  %v716_v39 = vmul.f32 %v582_v35, %v582_v35  ;;  %v584_v40 = vld [vmem:[#allocation7 + $0x28] sm:$0xff] }
  0x9d   : > { %427 = vst.msk [vmem:[#allocation7 + $0xa0] sm:$0xff] %vm406_vm0, %v362_v21  ;;  %428 = vst.msk [vmem:[#allocation7 + $0xa8] sm:$0xff] %vm406_vm0, %v363_v22  ;;  %v777_v37 = vadd.f32 %v714_v33, %v713_v31  ;;  %v644_v38 = vadd.f32 %v643_v32, %v581_v30  ;;  %v717_v43 = vmul.f32 %v583_v36, %v583_v36  ;;  %v585_v44 = vld [vmem:[#allocation7 + $0x30] sm:$0xff]  ;;  %v586_v48 = vld [vmem:[#allocation7 + $0x38] sm:$0xff] }
  0x9e   : > { %429 = vst.msk [vmem:[#allocation7 + $0xb0] sm:$0xff] %vm406_vm0, %v364_v23  ;;  %430 = vst.msk [vmem:[#allocation7 + $0xb8] sm:$0xff] %vm406_vm0, %v365_v24  ;;  %v718_v47 = vmul.f32 %v584_v40, %v584_v40  ;;  %v587_v49 = vld [vmem:[#allocation7 + $0x40] sm:$0xff]  ;;  %v719_v52 = vmul.f32 %v585_v44, %v585_v44  ;;  %v588_v56 = vld [vmem:[#allocation7 + $0x48] sm:$0xff]  ;;  %v720_v62 = vmul.f32 %v586_v48, %v586_v48 }
  0x9f   : > { %431 = vst.msk [vmem:[#allocation7 + $0xc0] sm:$0xff] %vm406_vm0, %v366_v25  ;;  %432 = vst.msk [vmem:[#allocation7 + $0xc8] sm:$0xff] %vm406_vm0, %v367_v26  ;;  %v778_v41 = vadd.f32 %v777_v37, %v715_v34  ;;  %v645_v42 = vadd.f32 %v644_v38, %v582_v35  ;;  %v589_v2 = vld [vmem:[#allocation7 + $0x50] sm:$0xff]  ;;  %v721_v8 = vmul.f32 %v587_v49, %v587_v49  ;;  %v590_v12 = vld [vmem:[#allocation7 + $0x58] sm:$0xff] }
  0xa0   : > { %433 = vst.msk [vmem:[#allocation7 + $0xd0] sm:$0xff] %vm406_vm0, %v368_v27  ;;  %434 = vst.msk [vmem:[#allocation7 + $0xd8] sm:$0xff] %vm406_vm0, %v369_v53  ;;  %v386_v15 = vld [vmem:[%s8069_s0 + $0x160] sm:$0xff]  ;;  %v722_v18 = vmul.f32 %v588_v56, %v588_v56  ;;  %v387_v19 = vld [vmem:[%s8069_s0 + $0x168] sm:$0xff]  ;;  %v723_v27 = vmul.f32 %v589_v2, %v589_v2  ;;  %v724_v31 = vmul.f32 %v590_v12, %v590_v12 }
  0xa1   : > { %v779_v45 = vadd.f32 %v778_v41, %v716_v39  ;;  %v646_v46 = vadd.f32 %v645_v42, %v583_v36  ;;  %435 = vst.msk [vmem:[#allocation7 + $0xe0] sm:$0xff] %vm406_vm0, %v370_v54  ;;  %436 = vst.msk [vmem:[#allocation7 + $0xe8] sm:$0xff] %vm406_vm0, %v371_v55  ;;  %v388_v20 = vld [vmem:[%s8069_s0 + $0x170] sm:$0xff]  ;;  %v389_v21 = vld [vmem:[%s8069_s0 + $0x178] sm:$0xff] }
  0xa2   : > { %437 = vst.msk [vmem:[#allocation7 + $0xf0] sm:$0xff] %vm406_vm0, %v372_v57  ;;  %438 = vst.msk [vmem:[#allocation7 + $0xf8] sm:$0xff] %vm406_vm0, %v373_v58  ;;  %v390_v22 = vld [vmem:[%s8069_s0 + $0x180] sm:$0xff]  ;;  %v391_v23 = vld [vmem:[%s8069_s0 + $0x188] sm:$0xff] }
  0xa3   : > { %v780_v50 = vadd.f32 %v779_v45, %v717_v43  ;;  %v647_v51 = vadd.f32 %v646_v46, %v584_v40  ;;  %439 = vst.msk [vmem:[#allocation7 + $0x100] sm:$0xff] %vm406_vm0, %v374_v59  ;;  %440 = vst.msk [vmem:[#allocation7 + $0x108] sm:$0xff] %vm406_vm0, %v375_v63  ;;  %v392_v24 = vld [vmem:[%s8069_s0 + $0x190] sm:$0xff]  ;;  %v591_v28 = vld [vmem:[#allocation7 + $0x60] sm:$0xff] }
  0xa4   : > { %441 = vst.msk [vmem:[#allocation7 + $0x110] sm:$0xff] %vm406_vm0, %v376_v0  ;;  %442 = vst.msk [vmem:[#allocation7 + $0x118] sm:$0xff] %vm406_vm0, %v377_v1  ;;  %v592_v32 = vld [vmem:[#allocation7 + $0x68] sm:$0xff]  ;;  %v725_v35 = vmul.f32 %v591_v28, %v591_v28  ;;  %v593_v36 = vld [vmem:[#allocation7 + $0x70] sm:$0xff] }
  0xa5   : > { %v781_v60 = vadd.f32 %v780_v50, %v718_v47  ;;  %v648_v61 = vadd.f32 %v647_v51, %v585_v44  ;;  %443 = vst.msk [vmem:[#allocation7 + $0x120] sm:$0xff] %vm406_vm0, %v378_v3  ;;  %444 = vst.msk [vmem:[#allocation7 + $0x128] sm:$0xff] %vm406_vm0, %v379_v4  ;;  %v726_v39 = vmul.f32 %v592_v32, %v592_v32  ;;  %v594_v40 = vld [vmem:[#allocation7 + $0x78] sm:$0xff]  ;;  %v595_v41 = vld [vmem:[#allocation7 + $0x80] sm:$0xff] }
  0xa6   : > { %445 = vst.msk [vmem:[#allocation7 + $0x130] sm:$0xff] %vm406_vm0, %v380_v5  ;;  %446 = vst.msk [vmem:[#allocation7 + $0x138] sm:$0xff] %vm406_vm0, %v381_v9  ;;  %v727_v44 = vmul.f32 %v593_v36, %v593_v36  ;;  %v393_v45 = vld [vmem:[%s8069_s0 + $0x198] sm:$0xff]  ;;  %v394_v46 = vld [vmem:[%s8069_s0 + $0x1a0] sm:$0xff]  ;;  %v728_v54 = vmul.f32 %v594_v40, %v594_v40  ;;  %v729_v63 = vmul.f32 %v595_v41, %v595_v41 }
  0xa7   : > { %v782_v6 = vadd.f32 %v781_v60, %v719_v52  ;;  %v649_v7 = vadd.f32 %v648_v61, %v586_v48  ;;  %447 = vst.msk [vmem:[#allocation7 + $0x140] sm:$0xff] %vm406_vm0, %v382_v10  ;;  %448 = vst.msk [vmem:[#allocation7 + $0x148] sm:$0xff] %vm406_vm0, %v383_v11  ;;  %v395_v47 = vld [vmem:[%s8069_s0 + $0x1a8] sm:$0xff]  ;;  %v397_v50 = vld [vmem:[%s8069_s0 + $0x1b8] sm:$0xff] }
  0xa8   : > { %449 = vst.msk [vmem:[#allocation7 + $0x150] sm:$0xff] %vm406_vm0, %v384_v13  ;;  %450 = vst.msk [vmem:[#allocation7 + $0x158] sm:$0xff] %vm406_vm0, %v385_v14  ;;  %v596_v48 = vld [vmem:[#allocation7 + $0x88] sm:$0xff]  ;;  %v398_v51 = vld [vmem:[%s8069_s0 + $0x1c0] sm:$0xff] }
  0xa9   : > { %v783_v16 = vadd.f32 %v782_v6, %v720_v62  ;;  %v650_v17 = vadd.f32 %v649_v7, %v587_v49  ;;  %451 = vst.msk [vmem:[#allocation7 + $0x160] sm:$0xff] %vm406_vm0, %v386_v15  ;;  %452 = vst.msk [vmem:[#allocation7 + $0x168] sm:$0xff] %vm406_vm0, %v387_v19  ;;  %v396_v49 = vld [vmem:[%s8069_s0 + $0x1b0] sm:$0xff]  ;;  %v399_v55 = vld [vmem:[%s8069_s0 + $0x1c8] sm:$0xff]  ;;  %v730_v4 = vmul.f32 %v596_v48, %v596_v48 }
  0xaa   : > { %453 = vst.msk [vmem:[#allocation7 + $0x170] sm:$0xff] %vm406_vm0, %v388_v20  ;;  %454 = vst.msk [vmem:[#allocation7 + $0x178] sm:$0xff] %vm406_vm0, %v389_v21  ;;  %v401_v57 = vld [vmem:[%s8069_s0 + $0x1d8] sm:$0xff]  ;;  %v402_v58 = vld [vmem:[%s8069_s0 + $0x1e0] sm:$0xff] }
  0xab   : > { %v784_v25 = vadd.f32 %v783_v16, %v721_v8  ;;  %v651_v26 = vadd.f32 %v650_v17, %v588_v56  ;;  %455 = vst.msk [vmem:[#allocation7 + $0x180] sm:$0xff] %vm406_vm0, %v390_v22  ;;  %456 = vst.msk [vmem:[#allocation7 + $0x188] sm:$0xff] %vm406_vm0, %v391_v23  ;;  %v400_v56 = vld [vmem:[%s8069_s0 + $0x1d0] sm:$0xff]  ;;  %v403_v59 = vld [vmem:[%s8069_s0 + $0x1e8] sm:$0xff] }
  0xac   : > { %457 = vst.msk [vmem:[#allocation7 + $0x190] sm:$0xff] %vm406_vm0, %v392_v24  ;;  %458 = vst.msk [vmem:[#allocation7 + $0x198] sm:$0xff] %vm406_vm0, %v393_v45  ;;  %v404_v60 = vld [vmem:[%s8069_s0 + $0x1f0] sm:$0xff]  ;;  %v405_v0 = vld [vmem:[%s8069_s0 + $0x1f8] sm:$0xff] }
  0xad   : > { %v785_v29 = vadd.f32 %v784_v25, %v722_v18  ;;  %v652_v30 = vadd.f32 %v651_v26, %v589_v2  ;;  %459 = vst.msk [vmem:[#allocation7 + $0x1a0] sm:$0xff] %vm406_vm0, %v394_v46  ;;  %460 = vst.msk [vmem:[#allocation7 + $0x1a8] sm:$0xff] %vm406_vm0, %v395_v47  ;;  %v597_v1 = vld [vmem:[#allocation7 + $0x90] sm:$0xff]  ;;  %v598_v5 = vld [vmem:[#allocation7 + $0x98] sm:$0xff] }
  0xae   : > { %461 = vst.msk [vmem:[#allocation7 + $0x1b0] sm:$0xff] %vm406_vm0, %v396_v49  ;;  %462 = vst.msk [vmem:[#allocation7 + $0x1b8] sm:$0xff] %vm406_vm0, %v397_v50  ;;  %v731_v8 = vmul.f32 %v597_v1, %v597_v1  ;;  %v599_v9 = vld [vmem:[#allocation7 + $0xa0] sm:$0xff]  ;;  %v600_v13 = vld [vmem:[#allocation7 + $0xa8] sm:$0xff] }
  0xaf   : > { %v786_v33 = vadd.f32 %v785_v29, %v723_v27  ;;  %v653_v34 = vadd.f32 %v652_v30, %v590_v12  ;;  %463 = vst.msk [vmem:[#allocation7 + $0x1c0] sm:$0xff] %vm406_vm0, %v398_v51  ;;  %464 = vst.msk [vmem:[#allocation7 + $0x1c8] sm:$0xff] %vm406_vm0, %v399_v55  ;;  %v732_v12 = vmul.f32 %v598_v5, %v598_v5  ;;  %v601_v17 = vld [vmem:[#allocation7 + $0xb0] sm:$0xff]  ;;  %v602_v21 = vld [vmem:[#allocation7 + $0xb8] sm:$0xff] }
  0xb0   : > { %465 = vst.msk [vmem:[#allocation7 + $0x1d0] sm:$0xff] %vm406_vm0, %v400_v56  ;;  %466 = vst.msk [vmem:[#allocation7 + $0x1d8] sm:$0xff] %vm406_vm0, %v401_v57  ;;  %v733_v16 = vmul.f32 %v599_v9, %v599_v9  ;;  %v734_v20 = vmul.f32 %v600_v13, %v600_v13  ;;  %v735_v24 = vmul.f32 %v601_v17, %v601_v17  ;;  %v603_v25 = vld [vmem:[#allocation7 + $0xc0] sm:$0xff]  ;;  %v604_v29 = vld [vmem:[#allocation7 + $0xc8] sm:$0xff] }
  0xb1   : > { %v787_v37 = vadd.f32 %v786_v33, %v724_v31  ;;  %v654_v38 = vadd.f32 %v653_v34, %v591_v28  ;;  %467 = vst.msk [vmem:[#allocation7 + $0x1e0] sm:$0xff] %vm406_vm0, %v402_v58  ;;  %468 = vst.msk [vmem:[#allocation7 + $0x1e8] sm:$0xff] %vm406_vm0, %v403_v59  ;;  %v736_v28 = vmul.f32 %v602_v21, %v602_v21  ;;  %v605_v33 = vld [vmem:[#allocation7 + $0xd0] sm:$0xff]  ;;  %v608_v45 = vld [vmem:[#allocation7 + $0xe8] sm:$0xff] }
  0xb2   : > { %469 = vst.msk [vmem:[#allocation7 + $0x1f0] sm:$0xff] %vm406_vm0, %v404_v60  ;;  %470 = vst.msk [vmem:[#allocation7 + $0x1f8] sm:$0xff] %vm406_vm0, %v405_v0  ;;  %v609_v49 = vld [vmem:[#allocation7 + $0xf0] sm:$0xff]  ;;  %v611_v57 = vld [vmem:[#allocation7 + $0x100] sm:$0xff] }
  0xb3   : > { %v788_v42 = vadd.f32 %v787_v37, %v725_v35  ;;  %v655_v43 = vadd.f32 %v654_v38, %v592_v32  ;;  %v737_v32 = vmul.f32 %v603_v25, %v603_v25  ;;  %v606_v37 = vld [vmem:[#allocation7 + $0xd8] sm:$0xff]  ;;  %v743_v56 = vmul.f32 %v609_v49, %v609_v49 }
  0xb4   : > { %v745_v0 = vmul.f32 %v611_v57, %v611_v57 }
  0xb5   : > { %v789_v52 = vadd.f32 %v788_v42, %v726_v39  ;;  %v656_v53 = vadd.f32 %v655_v43, %v593_v36  ;;  %v738_v36 = vmul.f32 %v604_v29, %v604_v29 }
  0xb7   : > { %v790_v61 = vadd.f32 %v789_v52, %v727_v44  ;;  %v657_v62 = vadd.f32 %v656_v53, %v594_v40  ;;  %v739_v40 = vmul.f32 %v605_v33, %v605_v33  ;;  %v740_v44 = vmul.f32 %v606_v37, %v606_v37  ;;  %v610_v53 = vld [vmem:[#allocation7 + $0xf8] sm:$0xff] }
  0xb8   : > { %v742_v52 = vmul.f32 %v608_v45, %v608_v45  ;;  %v744_v60 = vmul.f32 %v610_v53, %v610_v53 }
  0xb9   : > { %v791_v2 = vadd.f32 %v790_v61, %v728_v54  ;;  %v658_v3 = vadd.f32 %v657_v62, %v595_v41  ;;  %v607_v41 = vld [vmem:[#allocation7 + $0xe0] sm:$0xff]  ;;  %v612_v61 = vld [vmem:[#allocation7 + $0x108] sm:$0xff] }
  0xbb   : > { %v792_v6 = vadd.f32 %v791_v2, %v729_v63  ;;  %v659_v7 = vadd.f32 %v658_v3, %v596_v48  ;;  %v741_v48 = vmul.f32 %v607_v41, %v607_v41 }
  0xbd   : > { %v793_v10 = vadd.f32 %v792_v6, %v730_v4  ;;  %v660_v11 = vadd.f32 %v659_v7, %v597_v1  ;;  %v613_v1 = vld [vmem:[#allocation7 + $0x110] sm:$0xff]  ;;  %v746_v4 = vmul.f32 %v612_v61, %v612_v61 }
  0xbf   : > { %v794_v14 = vadd.f32 %v793_v10, %v731_v8  ;;  %v661_v15 = vadd.f32 %v660_v11, %v598_v5  ;;  %v614_v5 = vld [vmem:[#allocation7 + $0x118] sm:$0xff]  ;;  %v747_v8 = vmul.f32 %v613_v1, %v613_v1 }
  0xc1   : > { %v795_v18 = vadd.f32 %v794_v14, %v732_v12  ;;  %v662_v19 = vadd.f32 %v661_v15, %v599_v9  ;;  %v615_v9 = vld [vmem:[#allocation7 + $0x120] sm:$0xff]  ;;  %v748_v12 = vmul.f32 %v614_v5, %v614_v5 }
  0xc3   : > { %v796_v22 = vadd.f32 %v795_v18, %v733_v16  ;;  %v663_v23 = vadd.f32 %v662_v19, %v600_v13  ;;  %v616_v13 = vld [vmem:[#allocation7 + $0x128] sm:$0xff]  ;;  %v749_v16 = vmul.f32 %v615_v9, %v615_v9 }
  0xc5   : > { %v797_v26 = vadd.f32 %v796_v22, %v734_v20  ;;  %v664_v27 = vadd.f32 %v663_v23, %v601_v17  ;;  %v617_v17 = vld [vmem:[#allocation7 + $0x130] sm:$0xff]  ;;  %v750_v20 = vmul.f32 %v616_v13, %v616_v13 }
  0xc7   : > { %v798_v30 = vadd.f32 %v797_v26, %v735_v24  ;;  %v665_v31 = vadd.f32 %v664_v27, %v602_v21  ;;  %v618_v21 = vld [vmem:[#allocation7 + $0x138] sm:$0xff]  ;;  %v751_v24 = vmul.f32 %v617_v17, %v617_v17 }
  0xc9   : > { %v799_v34 = vadd.f32 %v798_v30, %v736_v28  ;;  %v666_v35 = vadd.f32 %v665_v31, %v603_v25  ;;  %v619_v25 = vld [vmem:[#allocation7 + $0x140] sm:$0xff]  ;;  %v752_v28 = vmul.f32 %v618_v21, %v618_v21 }
  0xcb   : > { %v800_v38 = vadd.f32 %v799_v34, %v737_v32  ;;  %v667_v39 = vadd.f32 %v666_v35, %v604_v29  ;;  %v620_v29 = vld [vmem:[#allocation7 + $0x148] sm:$0xff]  ;;  %v753_v32 = vmul.f32 %v619_v25, %v619_v25 }
  0xcd   : > { %v801_v42 = vadd.f32 %v800_v38, %v738_v36  ;;  %v668_v43 = vadd.f32 %v667_v39, %v605_v33  ;;  %v621_v33 = vld [vmem:[#allocation7 + $0x150] sm:$0xff]  ;;  %v754_v36 = vmul.f32 %v620_v29, %v620_v29 }
  0xcf   : > { %v802_v46 = vadd.f32 %v801_v42, %v739_v40  ;;  %v669_v47 = vadd.f32 %v668_v43, %v606_v37  ;;  %v622_v37 = vld [vmem:[#allocation7 + $0x158] sm:$0xff]  ;;  %v755_v40 = vmul.f32 %v621_v33, %v621_v33 }
  0xd1   : > { %v803_v50 = vadd.f32 %v802_v46, %v740_v44  ;;  %v670_v51 = vadd.f32 %v669_v47, %v607_v41  ;;  %v623_v41 = vld [vmem:[#allocation7 + $0x160] sm:$0xff]  ;;  %v756_v44 = vmul.f32 %v622_v37, %v622_v37 }
  0xd3   : > { %v804_v54 = vadd.f32 %v803_v50, %v741_v48  ;;  %v671_v55 = vadd.f32 %v670_v51, %v608_v45  ;;  %v624_v45 = vld [vmem:[#allocation7 + $0x168] sm:$0xff]  ;;  %v757_v48 = vmul.f32 %v623_v41, %v623_v41 }
  0xd5   : > { %v805_v58 = vadd.f32 %v804_v54, %v742_v52  ;;  %v672_v59 = vadd.f32 %v671_v55, %v609_v49  ;;  %v625_v49 = vld [vmem:[#allocation7 + $0x170] sm:$0xff]  ;;  %v758_v52 = vmul.f32 %v624_v45, %v624_v45 }
  0xd7   : > { %v806_v62 = vadd.f32 %v805_v58, %v743_v56  ;;  %v673_v63 = vadd.f32 %v672_v59, %v610_v53  ;;  %v626_v53 = vld [vmem:[#allocation7 + $0x178] sm:$0xff]  ;;  %v759_v56 = vmul.f32 %v625_v49, %v625_v49 }
  0xd9   : > { %v807_v2 = vadd.f32 %v806_v62, %v744_v60  ;;  %v674_v3 = vadd.f32 %v673_v63, %v611_v57  ;;  %v627_v57 = vld [vmem:[#allocation7 + $0x180] sm:$0xff]  ;;  %v760_v60 = vmul.f32 %v626_v53, %v626_v53 }
  0xdb   : > { %v808_v6 = vadd.f32 %v807_v2, %v745_v0  ;;  %v675_v7 = vadd.f32 %v674_v3, %v612_v61  ;;  %v628_v61 = vld [vmem:[#allocation7 + $0x188] sm:$0xff]  ;;  %v761_v0 = vmul.f32 %v627_v57, %v627_v57 }
  0xdd   : > { %v809_v10 = vadd.f32 %v808_v6, %v746_v4  ;;  %v676_v11 = vadd.f32 %v675_v7, %v613_v1  ;;  %v629_v1 = vld [vmem:[#allocation7 + $0x190] sm:$0xff]  ;;  %v762_v4 = vmul.f32 %v628_v61, %v628_v61 }
  0xdf   : > { %v810_v14 = vadd.f32 %v809_v10, %v747_v8  ;;  %v677_v15 = vadd.f32 %v676_v11, %v614_v5  ;;  %v630_v5 = vld [vmem:[#allocation7 + $0x198] sm:$0xff]  ;;  %v763_v8 = vmul.f32 %v629_v1, %v629_v1 }
  0xe0   : > { %v764_v11 = vmul.f32 %v630_v5, %v630_v5 }
  0xe1   : > { %v811_v18 = vadd.f32 %v810_v14, %v748_v12  ;;  %v678_v19 = vadd.f32 %v677_v15, %v615_v9  ;;  %v631_v9 = vld [vmem:[#allocation7 + $0x1a0] sm:$0xff] }
  0xe2   : > { %v765_v15 = vmul.f32 %v631_v9, %v631_v9 }
  0xe3   : > { %v812_v22 = vadd.f32 %v811_v18, %v749_v16  ;;  %v679_v23 = vadd.f32 %v678_v19, %v616_v13  ;;  %v632_v13 = vld [vmem:[#allocation7 + $0x1a8] sm:$0xff] }
  0xe4   : > { %v766_v19 = vmul.f32 %v632_v13, %v632_v13 }
  0xe5   : > { %v813_v26 = vadd.f32 %v812_v22, %v750_v20  ;;  %v680_v27 = vadd.f32 %v679_v23, %v617_v17  ;;  %v633_v17 = vld [vmem:[#allocation7 + $0x1b0] sm:$0xff] }
  0xe6   : > { %v767_v23 = vmul.f32 %v633_v17, %v633_v17 }
  0xe7   : > { %v814_v30 = vadd.f32 %v813_v26, %v751_v24  ;;  %v681_v31 = vadd.f32 %v680_v27, %v618_v21  ;;  %v634_v21 = vld [vmem:[#allocation7 + $0x1b8] sm:$0xff] }
  0xe8   : > { %v768_v27 = vmul.f32 %v634_v21, %v634_v21 }
  0xe9   : > { %v815_v34 = vadd.f32 %v814_v30, %v752_v28  ;;  %v682_v35 = vadd.f32 %v681_v31, %v619_v25  ;;  %v635_v25 = vld [vmem:[#allocation7 + $0x1c0] sm:$0xff] }
  0xea   : > { %v769_v31 = vmul.f32 %v635_v25, %v635_v25 }
  0xeb   : > { %v816_v38 = vadd.f32 %v815_v34, %v753_v32  ;;  %v683_v39 = vadd.f32 %v682_v35, %v620_v29  ;;  %v636_v29 = vld [vmem:[#allocation7 + $0x1c8] sm:$0xff] }
  0xec   : > { %v770_v35 = vmul.f32 %v636_v29, %v636_v29 }
  0xed   : > { %v817_v42 = vadd.f32 %v816_v38, %v754_v36  ;;  %v684_v43 = vadd.f32 %v683_v39, %v621_v33  ;;  %v637_v33 = vld [vmem:[#allocation7 + $0x1d0] sm:$0xff] }
  0xee   : > { %v771_v39 = vmul.f32 %v637_v33, %v637_v33 }
  0xef   : > { %v818_v46 = vadd.f32 %v817_v42, %v755_v40  ;;  %v685_v47 = vadd.f32 %v684_v43, %v622_v37  ;;  %v638_v37 = vld [vmem:[#allocation7 + $0x1d8] sm:$0xff] }
  0xf0   : > { %v772_v43 = vmul.f32 %v638_v37, %v638_v37 }
  0xf1   : > { %v819_v50 = vadd.f32 %v818_v46, %v756_v44  ;;  %v686_v51 = vadd.f32 %v685_v47, %v623_v41  ;;  %v639_v41 = vld [vmem:[#allocation7 + $0x1e0] sm:$0xff] }
  0xf2   : > { %v773_v47 = vmul.f32 %v639_v41, %v639_v41 }
  0xf3   : > { %v820_v54 = vadd.f32 %v819_v50, %v757_v48  ;;  %v687_v55 = vadd.f32 %v686_v51, %v624_v45  ;;  %v640_v45 = vld [vmem:[#allocation7 + $0x1e8] sm:$0xff] }
  0xf4   : > { %v774_v51 = vmul.f32 %v640_v45, %v640_v45 }
  0xf5   : > { %v821_v58 = vadd.f32 %v820_v54, %v758_v52  ;;  %v688_v59 = vadd.f32 %v687_v55, %v625_v49  ;;  %v641_v49 = vld [vmem:[#allocation7 + $0x1f0] sm:$0xff] }
  0xf6   : > { %v775_v55 = vmul.f32 %v641_v49, %v641_v49 }
  0xf7   : > { %v822_v62 = vadd.f32 %v821_v58, %v759_v56  ;;  %v689_v63 = vadd.f32 %v688_v59, %v626_v53  ;;  %v642_v53 = vld [vmem:[#allocation7 + $0x1f8] sm:$0xff] }
  0xf8   : > { %v776_v58 = vmul.f32 %v642_v53, %v642_v53 }
  0xf9   : > { %v823_v2 = vadd.f32 %v822_v62, %v760_v60  ;;  %v690_v3 = vadd.f32 %v689_v63, %v627_v57 }
  0xfb   : > { %v824_v6 = vadd.f32 %v823_v2, %v761_v0  ;;  %v691_v7 = vadd.f32 %v690_v3, %v628_v61 }
  0xfd   : > { %v692_v10 = vadd.f32 %v691_v7, %v629_v1  ;;  %v825_v12 = vadd.f32 %v824_v6, %v762_v4 }
  0xff   : > { %v693_v14 = vadd.f32 %v692_v10, %v630_v5  ;;  %v826_v16 = vadd.f32 %v825_v12, %v763_v8 }
 0x101   : > { %v694_v18 = vadd.f32 %v693_v14, %v631_v9  ;;  %v827_v20 = vadd.f32 %v826_v16, %v764_v11 }
 0x103   : > { %v695_v22 = vadd.f32 %v694_v18, %v632_v13  ;;  %v828_v24 = vadd.f32 %v827_v20, %v765_v15 }
 0x105   : > { %v696_v26 = vadd.f32 %v695_v22, %v633_v17  ;;  %v829_v28 = vadd.f32 %v828_v24, %v766_v19 }
 0x107   : > { %v697_v30 = vadd.f32 %v696_v26, %v634_v21  ;;  %v830_v32 = vadd.f32 %v829_v28, %v767_v23 }
 0x109   : > { %v698_v34 = vadd.f32 %v697_v30, %v635_v25  ;;  %v831_v36 = vadd.f32 %v830_v32, %v768_v27 }
 0x10b   : > { %v699_v38 = vadd.f32 %v698_v34, %v636_v29  ;;  %v832_v40 = vadd.f32 %v831_v36, %v769_v31 }
 0x10d   : > { %v700_v42 = vadd.f32 %v699_v38, %v637_v33  ;;  %v833_v44 = vadd.f32 %v832_v40, %v770_v35 }
 0x10f   : > { %v701_v46 = vadd.f32 %v700_v42, %v638_v37  ;;  %v834_v48 = vadd.f32 %v833_v44, %v771_v39 }
 0x111   : > { %v702_v50 = vadd.f32 %v701_v46, %v639_v41  ;;  %v835_v52 = vadd.f32 %v834_v48, %v772_v43 }
 0x113   : > { %v703_v54 = vadd.f32 %v702_v50, %v640_v45  ;;  %v836_v56 = vadd.f32 %v835_v52, %v773_v47 }
 0x115   : > { %v704_v57 = vadd.f32 %v703_v54, %v641_v49  ;;  %v837_v59 = vadd.f32 %v836_v56, %v774_v51 }
 0x117   : > { %v705_v60 = vadd.f32 %v704_v57, %v642_v53  ;;  %v838_v61 = vadd.f32 %v837_v59, %v775_v55 }
 0x119   : > { %v706_v62 = vrot.slane %v705_v60, 4  ;;  %v839_v63 = vadd.f32 %v838_v61, %v776_v58 }
 0x11b   : > { %v707_v0 = vadd.f32 %v706_v62, %v705_v60  ;;  %v840_v1 = vrot.slane %v839_v63, 4 }
 0x11d   : > { %v708_v2 = vrot.slane %v707_v0, 2  ;;  %v841_v3 = vadd.f32 %v840_v1, %v839_v63 }
 0x11f   : > { %v709_v4 = vadd.f32 %v708_v2, %v707_v0  ;;  %v842_v5 = vrot.slane %v841_v3, 2 }
 0x121   : > { %v710_v6 = vrot.slane %v709_v4, 1  ;;  %v843_v7 = vadd.f32 %v842_v5, %v841_v3 }
 0x123   : > { %v711_v8 = vadd.f32 %v710_v6, %v709_v4  ;;  %v844_v9 = vrot.slane %v843_v7, 1 }
 0x125   : > { %712 = vst [vmem:[#allocation3] sm:$0x1] %v711_v8  ;;  %v845_v10 = vadd.f32 %v844_v9, %v843_v7 }
 0x127   : > { %846 = vst [vmem:[#allocation3 + $0x1] sm:$0x1] %v845_v10 }
 0x128 PF: > { %v5439_v11 = vld [vmem:[%s5788_s14 + $0xf8] sm:$0xff]   ;;  %v5675_v12 = vmov 0   ;;  %v5440_v13 = vld [vmem:[%s5788_s14 + $0xf0] sm:$0xff]   ;;  %v5441_v16 = vld [vmem:[%s5788_s14 + $0xe8] sm:$0xff]   ;;  %v925_v36 = vlaneseq  ;;  %p5398_p1 = scmp.eq.s32.totalorder %s5728_s22, 1 }
 0x129   : > { %2057 = vmatprep.subr.bf16.mxu0 %v5675_v12  ;;  %v6255_v14 = vld [vmem:[%s5788_s14 + $0x178] sm:$0xff]   ;;  %v6259_v15 = vld [vmem:[%s5788_s14 + $0x170] sm:$0xff]   ;;  %v6266_v17 = vld [vmem:[%s5788_s14 + $0x168] sm:$0xff]  }
 0x12a   : > { %2058 = vmatpush1.bf16.msra.mxu0 %v5439_v11  ;;  %5368 = vmatprep.subr.bf16.mxu1 %v6255_v14  ;;  %v5443_v18 = vld [vmem:[%s5788_s14 + $0xe0] sm:$0xff]   ;;  %v5445_v20 = vld [vmem:[%s5788_s14 + $0xd8] sm:$0xff]   ;;  %v5447_v22 = vld [vmem:[%s5788_s14 + $0xd0] sm:$0xff]   ;;  %v926_v38 = vshrl.u32 %v925_v36, 7 }
 0x12b   : > { %2059 = vmatprep.subr.bf16.mxu0 %v5675_v12  ;;  %5376 = vmatpush3.bf16.msra.mxu1 %v6255_v14  ;;  %v6273_v19 = vld [vmem:[%s5788_s14 + $0x160] sm:$0xff]   ;;  %v6280_v21 = vld [vmem:[%s5788_s14 + $0x158] sm:$0xff]   ;;  %v6287_v23 = vld [vmem:[%s5788_s14 + $0x150] sm:$0xff]  }
 0x12c   : > { %5369 = vmatprep.subr.bf16.mxu1 %v6259_v15  ;;  %v911_v24 = vld [vmem:[#allocation3] sm:$0x1]  ;;  %v5449_v28 = vld [vmem:[%s5788_s14 + $0xc8] sm:$0xff]   ;;  %v5451_v32 = vld [vmem:[%s5788_s14 + $0xc0] sm:$0xff]   ;;  %v927_v41 = vsub.s32 0, %v926_v38 }
 0x12d   : > { %v912_v25 = vmul.f32 0.001953125, %v911_v24  ;;  %v6294_v30 = vld [vmem:[%s5788_s14 + $0x148] sm:$0xff]   ;;  %v6301_v34 = vld [vmem:[%s5788_s14 + $0x140] sm:$0xff]   ;;  %v5453_v35 = vld [vmem:[%s5788_s14 + $0x138] sm:$0xff]  }
 0x12e   : > { %2060 = vmatpush1.bf16.msra.mxu0 %v5440_v13  ;;  %v913_v26 = vld [vmem:[#allocation3 + $0x1] sm:$0x1]  ;;  %v5455_v37 = vld [vmem:[%s5788_s14 + $0x130] sm:$0xff]   ;;  %v5457_v39 = vld [vmem:[%s5788_s14 + $0x128] sm:$0xff]  }
 0x12f   : > { %2061 = vmatprep.subr.bf16.mxu0 %v5675_v12  ;;  %5377 = vmatpush3.bf16.msra.mxu1 %v6259_v15  ;;  %v914_v27 = vmul.f32 0.001953125, %v913_v26  ;;  %v915_v29 = vmul.f32 %v912_v25, %v912_v25  ;;  %v917_v40 = vld [vmem:[%s266_s11] sm:$0x1]  ;;  %v871_v43 = vld [vmem:[#allocation7 + $0xc0] sm:$0xff]  ;;  %v872_v44 = vld [vmem:[#allocation7 + $0xc8] sm:$0xff] }
 0x130   : > { %5370 = vmatprep.subr.bf16.mxu1 %v6266_v17  ;;  %v921_v45 = vld [vmem:[%s269_s16] sm:$0x1]  ;;  %v873_v46 = vld [vmem:[#allocation7 + $0xd0] sm:$0xff]  ;;  %v5459_v49 = vld [vmem:[%s5788_s14 + $0x120] sm:$0xff]  }
 0x131   : > { %v916_v31 = vsub.f32 %v914_v27, %v915_v29  ;;  %v874_v48 = vld [vmem:[#allocation7 + $0xd8] sm:$0xff]  ;;  %v875_v50 = vld [vmem:[#allocation7 + $0xe0] sm:$0xff]  ;;  %v876_v51 = vld [vmem:[#allocation7 + $0xe8] sm:$0xff] }
 0x132   : > { %2062 = vmatpush1.bf16.msra.mxu0 %v5441_v16  ;;  %v877_v52 = vld [vmem:[#allocation7 + $0xf0] sm:$0xff]  ;;  %v5460_v55 = vld [vmem:[%s5788_s14 + $0x118] sm:$0xff]   ;;  %v879_v57 = vld [vmem:[#allocation7 + $0x100] sm:$0xff] }
 0x133   : > { %2063 = vmatprep.subr.bf16.mxu0 %v5675_v12  ;;  %5378 = vmatpush3.bf16.msra.mxu1 %v6266_v17  ;;  %v918_v33 = vadd.f32 1e-05, %v916_v31  ;;  %v878_v56 = vld [vmem:[#allocation7 + $0xf8] sm:$0xff]  ;;  %v880_v58 = vld [vmem:[#allocation7 + $0x108] sm:$0xff]  ;;  %v881_v59 = vld [vmem:[#allocation7 + $0x110] sm:$0xff] }
 0x134   : > { %5371 = vmatprep.subr.bf16.mxu1 %v6273_v19  ;;  %v882_v0 = vld [vmem:[#allocation7 + $0x118] sm:$0xff]  ;;  %v847_v1 = vld [vmem:[#allocation7] sm:$0xff]  ;;  %v848_v2 = vld [vmem:[#allocation7 + $0x8] sm:$0xff] }
 0x135   : > { %5511 = vrsqrt.f32 %v918_v33  ;;  %v5462_v26 = vld [vmem:[%s5788_s14 + $0x110] sm:$0xff]   ;;  %v884_v33 = vld [vmem:[#allocation7 + $0x128] sm:$0xff] }
 0x136   : > { %2064 = vmatpush1.bf16.msra.mxu0 %v5443_v18 }
 0x137   : > { %2065 = vmatprep.subr.bf16.mxu0 %v5675_v12  ;;  %5379 = vmatpush3.bf16.msra.mxu1 %v6273_v19 }
 0x138   : > { %5372 = vmatprep.subr.bf16.mxu1 %v6280_v21 }
 0x13a   : > { %2066 = vmatpush1.bf16.msra.mxu0 %v5445_v20 }
 0x13b   : > { %2067 = vmatprep.subr.bf16.mxu0 %v5675_v12  ;;  %5380 = vmatpush3.bf16.msra.mxu1 %v6280_v21 }
 0x13c   : > { %5373 = vmatprep.subr.bf16.mxu1 %v6287_v23 }
 0x13e   : > { %2068 = vmatpush1.bf16.msra.mxu0 %v5447_v22 }
 0x13f   : > { %2069 = vmatprep.subr.bf16.mxu0 %v5675_v12  ;;  %5381 = vmatpush3.bf16.msra.mxu1 %v6287_v23 }
 0x140   : > { %5374 = vmatprep.subr.bf16.mxu1 %v6294_v30 }
 0x142   : > { %2070 = vmatpush1.bf16.msra.mxu0 %v5449_v28  ;;  %v5512_v42 = vpop.eup %5511 }
 0x143   : > { %2071 = vmatprep.subr.bf16.mxu0 %v5675_v12  ;;  %5382 = vmatpush3.bf16.msra.mxu1 %v6294_v30  ;;  %v920_v47 = vmul.f32 %v5512_v42, %v917_v40 }
 0x144   : > { %5375 = vmatprep.subr.bf16.mxu1 %v6301_v34 }
 0x145   : > { %v922_v53 = vmul.f32 %v920_v47, %v912_v25  ;;  %v6325_v54 = vrot.slane %v920_v47, %v927_v41 }
 0x146   : > { %2072 = vmatpush1.bf16.msra.mxu0 %v5451_v32  ;;  %v883_v32 = vld [vmem:[#allocation7 + $0x120] sm:$0xff] }
 0x147   : > { %2073 = vmatprep.subr.bf16.mxu0 %v5675_v12  ;;  %5383 = vmatpush3.bf16.msra.mxu1 %v6301_v34  ;;  %v923_v60 = vsub.f32 %v921_v45, %v922_v53  ;;  %v954_v61 = vmul.f32 %v6325_v54, %v871_v43  ;;  %v955_v62 = vmul.f32 %v6325_v54, %v872_v44 }
 0x148   : > { %2779 = vmatprep.subr.bf16.mxu1 %v5675_v12  ;;  %v956_v63 = vmul.f32 %v6325_v54, %v873_v46  ;;  %v957_v3 = vmul.f32 %v6325_v54, %v874_v48  ;;  %v958_v4 = vmul.f32 %v6325_v54, %v875_v50  ;;  %v959_v5 = vmul.f32 %v6325_v54, %v876_v51  ;;  %v885_v48 = vld [vmem:[#allocation7 + $0x130] sm:$0xff] }
 0x149   : > { %v960_v6 = vmul.f32 %v6325_v54, %v877_v52  ;;  %v6336_v7 = vrot.slane %v923_v60, %v927_v41  ;;  %v961_v8 = vmul.f32 %v6325_v54, %v878_v56  ;;  %v962_v9 = vmul.f32 %v6325_v54, %v879_v57  ;;  %v849_v50 = vld [vmem:[#allocation7 + $0x10] sm:$0xff]  ;;  %v850_v56 = vld [vmem:[#allocation7 + $0x18] sm:$0xff]  ;;  %v887_v57 = vld [vmem:[#allocation7 + $0x140] sm:$0xff] }
 0x14a   : > { %2074 = vmatpush2.bf16.msra.mxu0 %v5453_v35  ;;  %v963_v10 = vmul.f32 %v6325_v54, %v880_v58  ;;  %v964_v11 = vmul.f32 %v6325_v54, %v881_v59  ;;  %v965_v13 = vmul.f32 %v6325_v54, %v882_v0  ;;  %v930_v16 = vmul.f32 %v6325_v54, %v847_v1 }
 0x14b   : > { %2075 = vmatprep.subr.bf16.mxu0 %v5675_v12  ;;  %v931_v18 = vmul.f32 %v6325_v54, %v848_v2  ;;  %v1024_v20 = vadd.f32 %v6336_v7, %v954_v61  ;;  %v1025_v22 = vadd.f32 %v6336_v7, %v955_v62  ;;  %v1026_v24 = vadd.f32 %v6336_v7, %v956_v63  ;;  %v5466_v62 = vld [vmem:[%s5788_s14 + $0x100] sm:$0xff]  }
 0x14c   : > { %v1027_v25 = vadd.f32 %v6336_v7, %v957_v3  ;;  %v1028_v27 = vadd.f32 %v6336_v7, %v958_v4  ;;  %v1029_v28 = vadd.f32 %v6336_v7, %v959_v5  ;;  %v1030_v29 = vadd.f32 %v6336_v7, %v960_v6  ;;  %v888_v3 = vld [vmem:[#allocation7 + $0x148] sm:$0xff]  ;;  %v889_v4 = vld [vmem:[#allocation7 + $0x150] sm:$0xff] }
 0x14d   : > { %v1031_v31 = vadd.f32 %v6336_v7, %v961_v8  ;;  %v1088_v35 = vmax.f32 %v1024_v20, 0.0  ;;  %v1089_v36 = vmax.f32 %v1025_v22, 0.0  ;;  %v1032_v44 = vadd.f32 %v6336_v7, %v962_v9  ;;  %v5458_v20 = vld [vmem:[%s5788_s14 + $0x38] sm:$0xff]  }
 0x14e   : > { %2076 = vmatpush2.bf16.msra.mxu0 %v5455_v37  ;;  %v1090_v37 = vmax.f32 %v1026_v24, 0.0  ;;  %v1091_v38 = vmax.f32 %v1027_v25, 0.0  ;;  %v1092_v40 = vmax.f32 %v1028_v27, 0.0  ;;  %v1093_v41 = vmax.f32 %v1029_v28, 0.0  ;;  %v851_v27 = vld [vmem:[#allocation7 + $0x20] sm:$0xff]  ;;  %v852_v28 = vld [vmem:[#allocation7 + $0x28] sm:$0xff] }
 0x14f   : > { %2077 = vmatprep.subr.bf16.mxu0 %v5675_v12  ;;  %v1094_v42 = vmax.f32 %v1030_v29, 0.0  ;;  %v1095_v43 = vmax.f32 %v1031_v31, 0.0  ;;  %1153 = vst [vmem:[#allocation2 + $0x139] sm:$0xff] %v1088_v35  ;;  %1154 = vst [vmem:[#allocation2 + $0x141] sm:$0xff] %v1089_v36  ;;  %v1033_v45 = vadd.f32 %v6336_v7, %v963_v10  ;;  %v1034_v46 = vadd.f32 %v6336_v7, %v964_v11  ;;  %v890_v10 = vld [vmem:[#allocation7 + $0x158] sm:$0xff] }
 0x150   : > { %1155 = vst [vmem:[#allocation2 + $0x151] sm:$0xff] %v1090_v37  ;;  %1156 = vst [vmem:[#allocation2 + $0x159] sm:$0xff] %v1091_v38  ;;  %v1035_v47 = vadd.f32 %v6336_v7, %v965_v13  ;;  %v1000_v51 = vadd.f32 %v6336_v7, %v930_v16  ;;  %v1001_v52 = vadd.f32 %v6336_v7, %v931_v18  ;;  %v1096_v58 = vmax.f32 %v1032_v44, 0.0  ;;  %v891_v38 = vld [vmem:[#allocation7 + $0x160] sm:$0xff] }
 0x151   : > { %1157 = vst [vmem:[#allocation2 + $0x169] sm:$0xff] %v1092_v40  ;;  %1158 = vst [vmem:[#allocation2 + $0x171] sm:$0xff] %v1093_v41  ;;  %v966_v53 = vmul.f32 %v6325_v54, %v883_v32  ;;  %v1097_v59 = vmax.f32 %v1033_v45, 0.0  ;;  %v1098_v60 = vmax.f32 %v1034_v46, 0.0  ;;  %v968_v5 = vmul.f32 %v6325_v54, %v885_v48 }
 0x152   : > { %2078 = vmatpush2.bf16.msra.mxu0 %v5457_v39  ;;  %v5464_v39 = vld [vmem:[%s5788_s14 + $0x108] sm:$0xff]   ;;  %1159 = vst [vmem:[#allocation2 + $0x181] sm:$0xff] %v1094_v42  ;;  %1160 = vst [vmem:[#allocation2 + $0x189] sm:$0xff] %v1095_v43  ;;  %v1099_v61 = vmax.f32 %v1035_v47, 0.0  ;;  %v1064_v63 = vmax.f32 %v1000_v51, 0.0  ;;  %v1065_v0 = vmax.f32 %v1001_v52, 0.0  ;;  %v932_v8 = vmul.f32 %v6325_v54, %v849_v50 }
 0x153   : > { %2079 = vmatprep.subr.bf16.mxu0 %v5675_v12  ;;  %v1036_v1 = vadd.f32 %v6336_v7, %v966_v53  ;;  %1161 = vst [vmem:[#allocation2 + $0x1c9] sm:$0xff] %v1096_v58  ;;  %1162 = vst [vmem:[#allocation2 + $0x1d1] sm:$0xff] %v1097_v59  ;;  %v933_v9 = vmul.f32 %v6325_v54, %v850_v56  ;;  %v970_v18 = vmul.f32 %v6325_v54, %v887_v57  ;;  %v5461_v52 = vld [vmem:[%s5788_s14 + $0x30] sm:$0xff]   ;;  %v892_v57 = vld [vmem:[#allocation7 + $0x168] sm:$0xff] }
 0x154   : > { %1163 = vst [vmem:[#allocation2 + $0x1e1] sm:$0xff] %v1098_v60  ;;  %1164 = vst [vmem:[#allocation2 + $0x1e9] sm:$0xff] %v1099_v61  ;;  %v6373_v11 = vpack.c.bf16 %v1065_v0, %v1064_v63  ;;  %v1038_v22 = vadd.f32 %v6336_v7, %v968_v5  ;;  %v1002_v25 = vadd.f32 %v6336_v7, %v932_v8  ;;  %v893_v58 = vld [vmem:[#allocation7 + $0x170] sm:$0xff] }
 0x155   : > { %1129 = vst [vmem:[#allocation2 + $0x19] sm:$0xff] %v1064_v63  ;;  %1130 = vst [vmem:[#allocation2 + $0x21] sm:$0xff] %v1065_v0  ;;  %v1100_v13 = vmax.f32 %v1036_v1, 0.0  ;;  %v1040_v35 = vadd.f32 %v6336_v7, %v970_v18  ;;  %v972_v36 = vmul.f32 %v6325_v54, %v889_v4  ;;  %v973_v37 = vmul.f32 %v6325_v54, %v890_v10  ;;  %v894_v63 = vld [vmem:[#allocation7 + $0x178] sm:$0xff]  ;;  %v853_v0 = vld [vmem:[#allocation7 + $0x30] sm:$0xff] }
 0x156   : > { %2080 = vmatpush2.bf16.msra.mxu0 %v5459_v49  ;;  %v886_v49 = vld [vmem:[#allocation7 + $0x138] sm:$0xff]  ;;  %v1842_v31 = vld [vmem:[#allocation2 + $0x142] sm:$0xff]  ;;  %2089 = vmatprep.mubr.bf16.mxu0 %v6373_v11  ;;  %v1102_v43 = vmax.f32 %v1038_v22, 0.0  ;;  %v1066_v45 = vmax.f32 %v1002_v25, 0.0  ;;  %v934_v61 = vmul.f32 %v6325_v54, %v851_v27  ;;  %v974_v8 = vmul.f32 %v6325_v54, %v891_v38  ;;  %v896_v38 = vld [vmem:[#allocation7 + $0x188] sm:$0xff] }
 0x157   : > { %2081 = vmatprep.subr.bf16.mxu0 %v5675_v12  ;;  %v969_v6 = vmul.f32 %v6325_v54, %v886_v49  ;;  %v1841_v29 = vld [vmem:[#allocation2 + $0x13a] sm:$0xff]  ;;  %v1843_v32 = vld [vmem:[#allocation2 + $0x152] sm:$0xff]  ;;  %1165 = vst [vmem:[#allocation2 + $0x1f9] sm:$0xff] %v1100_v13  ;;  %v1104_v53 = vmax.f32 %v1040_v35, 0.0  ;;  %v1043_v56 = vadd.f32 %v6336_v7, %v973_v37  ;;  %v975_v18 = vmul.f32 %v6325_v54, %v892_v57  ;;  %v895_v37 = vld [vmem:[#allocation7 + $0x180] sm:$0xff] }
 0x158   : > { %v1844_v40 = vld [vmem:[#allocation2 + $0x15a] sm:$0xff]  ;;  %v1845_v41 = vld [vmem:[#allocation2 + $0x16a] sm:$0xff]  ;;  %v1846_v42 = vld [vmem:[#allocation2 + $0x172] sm:$0xff]  ;;  %1167 = vst [vmem:[#allocation2 + $0x211] sm:$0xff] %v1102_v43  ;;  %v1004_v13 = vadd.f32 %v6336_v7, %v934_v61  ;;  %v976_v22 = vmul.f32 %v6325_v54, %v893_v58 }
 0x159   : > { %v1039_v24 = vadd.f32 %v6336_v7, %v969_v6  ;;  %v1894_v46 = vpack.c.bf16 %v1844_v40, %v1843_v32  ;;  %v1895_v47 = vpack.c.bf16 %v1846_v42, %v1845_v41  ;;  %v6386_v48 = vld [vmem:[#allocation2 + $0x182] sm:$0xff]  ;;  %v6388_v49 = vld [vmem:[#allocation2 + $0x18a] sm:$0xff]  ;;  %1131 = vst [vmem:[#allocation2 + $0x31] sm:$0xff] %v1066_v45  ;;  %1169 = vst [vmem:[#allocation2 + $0x229] sm:$0xff] %v1104_v53  ;;  %v1107_v6 = vmax.f32 %v1043_v56, 0.0 }
 0x15a   : > { %2082 = vmatpush2.bf16.msra.mxu0 %v5460_v55  ;;  %v967_v55 = vmul.f32 %v6325_v54, %v884_v33  ;;  %v971_v33 = vmul.f32 %v6325_v54, %v888_v3  ;;  %v6395_v59 = vld [vmem:[#allocation2 + $0x1ca] sm:$0xff]  ;;  %v1896_v1 = vpack.c.bf16 %v6388_v49, %v6386_v48  ;;  %v854_v25 = vld [vmem:[#allocation7 + $0x38] sm:$0xff]  ;;  %v1045_v32 = vadd.f32 %v6336_v7, %v975_v18  ;;  %v855_v43 = vld [vmem:[#allocation7 + $0x40] sm:$0xff] }
 0x15b   : > { %2083 = vmatprep.subr.bf16.mxu0 %v5675_v12  ;;  %v1103_v44 = vmax.f32 %v1039_v24, 0.0  ;;  %1172 = vst [vmem:[#allocation2 + $0x249] sm:$0xff] %v1107_v6  ;;  %v977_v24 = vmul.f32 %v6325_v54, %v894_v63  ;;  %v1046_v35 = vadd.f32 %v6336_v7, %v976_v22  ;;  %v898_v42 = vld [vmem:[#allocation7 + $0x198] sm:$0xff]  ;;  %v978_v56 = vmul.f32 %v6325_v54, %v895_v37 }
 0x15c   : > { %v1037_v2 = vadd.f32 %v6336_v7, %v967_v55  ;;  %v1041_v51 = vadd.f32 %v6336_v7, %v971_v33  ;;  %v1042_v55 = vadd.f32 %v6336_v7, %v972_v36  ;;  %v1625_v3 = vld [vmem:[#allocation2 + $0x18] sm:$0xff]  ;;  %v1626_v4 = vld [vmem:[#allocation2 + $0x20] sm:$0xff]  ;;  %v981_v61 = vmul.f32 %v6325_v54, %v898_v42 }
 0x15d   : > { %1168 = vst [vmem:[#allocation2 + $0x219] sm:$0xff] %v1103_v44  ;;  %v1047_v36 = vadd.f32 %v6336_v7, %v977_v24  ;;  %v5465_v44 = vld [vmem:[%s5788_s14 + $0x20] sm:$0xff]   ;;  %v1110_v48 = vmax.f32 %v1046_v35, 0.0  ;;  %v902_v24 = vld [vmem:[#allocation7 + $0x1b8] sm:$0xff] }
 0x15e   : > { %2084 = vmatpush2.bf16.msra.mxu0 %v5462_v26  ;;  %v1101_v16 = vmax.f32 %v1037_v2, 0.0  ;;  %v1003_v26 = vadd.f32 %v6336_v7, %v933_v9  ;;  %v1105_v60 = vmax.f32 %v1041_v51, 0.0  ;;  %v1850_v2 = vld [vmem:[#allocation2 + $0x1d2] sm:$0xff]  ;;  %v1106_v5 = vmax.f32 %v1042_v55, 0.0  ;;  %v6433_v51 = vld [vmem:[#allocation2 + $0x1ea] sm:$0xff]  ;;  %v903_v35 = vld [vmem:[#allocation7 + $0x1c0] sm:$0xff] }
 0x15f   : > { %2085 = vmatprep.subr.bf16.mxu0 %v5675_v12  ;;  %v6403_v9 = vpack.c.bf16 %v1626_v4, %v1625_v3  ;;  %v1897_v27 = vpack.c.bf16 %v1850_v2, %v6395_v59  ;;  %v1111_v49 = vmax.f32 %v1047_v36, 0.0  ;;  %1175 = vst [vmem:[#allocation2 + $0x271] sm:$0xff] %v1110_v48  ;;  %v979_v59 = vmul.f32 %v6325_v54, %v896_v38  ;;  %v899_v2 = vld [vmem:[#allocation7 + $0x1a0] sm:$0xff]  ;;  %v900_v3 = vld [vmem:[#allocation7 + $0x1a8] sm:$0xff] }
 0x160   : > { %1166 = vst [vmem:[#allocation2 + $0x201] sm:$0xff] %v1101_v16  ;;  %v1067_v50 = vmax.f32 %v1003_v26, 0.0  ;;  %1170 = vst [vmem:[#allocation2 + $0x231] sm:$0xff] %v1105_v60  ;;  %v5463_v26 = vld [vmem:[%s5788_s14 + $0x28] sm:$0xff]  }
 0x161   : > { %1171 = vst [vmem:[#allocation2 + $0x241] sm:$0xff] %v1106_v5  ;;  %v1627_v40 = vld [vmem:[#allocation2 + $0x30] sm:$0xff]  ;;  %1176 = vst [vmem:[#allocation2 + $0x279] sm:$0xff] %v1111_v49  ;;  %v5467_v5 = vld [vmem:[%s5788_s14 + $0x18] sm:$0xff]   ;;  %v1049_v6 = vadd.f32 %v6336_v7, %v979_v59 }
 0x162   : > { %2086 = vmatpush2.bf16.msra.mxu0 %v5464_v39  ;;  %v1893_v39 = vpack.c.bf16 %v1842_v31, %v1841_v29  ;;  %1132 = vst [vmem:[#allocation2 + $0x39] sm:$0xff] %v1067_v50  ;;  %v6405_v10 = vpack.c.bf16 %v1067_v50, %v1066_v45  ;;  %v936_v31 = vmul.f32 %v6325_v54, %v853_v0  ;;  %v6431_v50 = vld [vmem:[#allocation2 + $0x1e2] sm:$0xff] }
 0x163   : > { %2087 = vmatprep.subr.bf16.mxu0 %v5675_v12  ;;  %v1048_v0 = vadd.f32 %v6336_v7, %v978_v56  ;;  %v1898_v4 = vpack.c.bf16 %v6433_v51, %v6431_v50  ;;  %v904_v50 = vld [vmem:[#allocation7 + $0x1c8] sm:$0xff]  ;;  %v986_v51 = vmul.f32 %v6325_v54, %v903_v35  ;;  %v909_v35 = vld [vmem:[#allocation7 + $0x1f0] sm:$0xff] }
 0x164   : > { %5168 = vmatprep.mubr.bf16.mxu1 %v1893_v39  ;;  %v897_v39 = vld [vmem:[#allocation7 + $0x190] sm:$0xff]  ;;  %v6425_v41 = vadd.f32 %v6336_v7, %v936_v31 }
 0x165   : > { %5169 = vmatmul.mubr.bf16.vlgmr.msra.gmra.mxu1 %v1894_v46  ;;  %v980_v60 = vmul.f32 %v6325_v54, %v897_v39  ;;  %v983_v39 = vmul.f32 %v6325_v54, %v900_v3 }
 0x166   : > { %2088 = vmatpush2.bf16.msra.mxu0 %v5466_v62  ;;  %v935_v62 = vmul.f32 %v6325_v54, %v852_v28  ;;  %2780 = vmatpush1.bf16.msra.mxu1 %v5458_v20  ;;  %v1044_v20 = vadd.f32 %v6336_v7, %v974_v8  ;;  %v1068_v28 = vmax.f32 %v1004_v13, 0.0  ;;  %v1070_v55 = vmax.f32 %v6425_v41, 0.0  ;;  %v859_v41 = vld [vmem:[#allocation7 + $0x60] sm:$0xff] }
 0x167   : > { %5128 = vmatprep.subr.bf16.mxu0 %v6255_v14  ;;  %5172 = vmatprep.mubr.bf16.mxu1 %v1895_v47  ;;  %v1109_v47 = vmax.f32 %v1045_v32, 0.0  ;;  %v6442_v57 = vld [vmem:[#allocation2 + $0x1fa] sm:$0xff]  ;;  %v6444_v58 = vld [vmem:[#allocation2 + $0x202] sm:$0xff]  ;;  %v1050_v8 = vadd.f32 %v6336_v7, %v980_v60  ;;  %v1051_v13 = vadd.f32 %v6336_v7, %v981_v61  ;;  %v1053_v48 = vadd.f32 %v6336_v7, %v983_v39  ;;  %v6497_v56 = vld [vmem:[#allocation2 + $0x22a] sm:$0xff] }
 0x168   : > { %2781 = vmatprep.subr.bf16.mxu1 %v5675_v12  ;;  %v1005_v16 = vadd.f32 %v6336_v7, %v935_v62  ;;  %v1108_v33 = vmax.f32 %v1044_v20, 0.0  ;;  %1133 = vst [vmem:[#allocation2 + $0x49] sm:$0xff] %v1068_v28  ;;  %v856_v62 = vld [vmem:[#allocation7 + $0x48] sm:$0xff]  ;;  %1135 = vst [vmem:[#allocation2 + $0x61] sm:$0xff] %v1070_v55  ;;  %v1899_v18 = vpack.c.bf16 %v6444_v58, %v6442_v57  ;;  %v1858_v57 = vld [vmem:[#allocation2 + $0x232] sm:$0xff] }
 0x169   : > { %2090 = vmatmul.mubr.bf16.vlgmr.msra.gmra.mxu0 %v6403_v9  ;;  %v1628_v45 = vld [vmem:[#allocation2 + $0x38] sm:$0xff]  ;;  %1174 = vst [vmem:[#allocation2 + $0x261] sm:$0xff] %v1109_v47  ;;  %v939_v20 = vmul.f32 %v6325_v54, %v856_v62  ;;  %v1114_v31 = vmax.f32 %v1050_v8, 0.0  ;;  %v1115_v32 = vmax.f32 %v1051_v13, 0.0  ;;  %v5469_v8 = vld [vmem:[%s5788_s14 + $0x8] sm:$0xff]   ;;  %v1901_v13 = vpack.c.bf16 %v1858_v57, %v6497_v56 }
 0x16a   : > { %v1069_v29 = vmax.f32 %v1005_v16, 0.0  ;;  %2782 = vmatpush1.bf16.msra.mxu1 %v5461_v52  ;;  %5129 = vmatpush3.bf16.msra.mxu0 %v6255_v14  ;;  %v937_v14 = vmul.f32 %v6325_v54, %v854_v25  ;;  %1173 = vst [vmem:[#allocation2 + $0x259] sm:$0xff] %v1108_v33  ;;  %v6435_v52 = vpack.c.bf16 %v1628_v45, %v1627_v40  ;;  %v901_v16 = vld [vmem:[#allocation7 + $0x1b0] sm:$0xff] }
 0x16b   : > { %2783 = vmatprep.subr.bf16.mxu1 %v5675_v12  ;;  %2097 = vmatprep.mubr.bf16.mxu0 %v6405_v10  ;;  %v857_v25 = vld [vmem:[#allocation7 + $0x50] sm:$0xff]  ;;  %v982_v33 = vmul.f32 %v6325_v54, %v899_v2  ;;  %v6476_v37 = vadd.f32 %v6336_v7, %v939_v20  ;;  %1179 = vst [vmem:[#allocation2 + $0x2a1] sm:$0xff] %v1114_v31  ;;  %1180 = vst [vmem:[#allocation2 + $0x2a9] sm:$0xff] %v1115_v32  ;;  %v906_v2 = vld [vmem:[#allocation7 + $0x1d8] sm:$0xff] }
 0x16c   : > { %1134 = vst [vmem:[#allocation2 + $0x51] sm:$0xff] %v1069_v29  ;;  %v6428_v46 = vpack.c.bf16 %v1069_v29, %v1068_v28  ;;  %5130 = vmatprep.subr.bf16.mxu0 %v6259_v15  ;;  %v6438_v53 = vadd.f32 %v6336_v7, %v937_v14  ;;  %v1113_v29 = vmax.f32 %v1049_v6, 0.0  ;;  %v6481_v40 = vld [vmem:[#allocation2 + $0x212] sm:$0xff]  ;;  %v6483_v14 = vld [vmem:[#allocation2 + $0x21a] sm:$0xff]  ;;  %v940_v45 = vmul.f32 %v6325_v54, %v857_v25  ;;  %v907_v6 = vld [vmem:[#allocation7 + $0x1e0] sm:$0xff] }
 0x16d   : > { %5173 = vmatmul.mubr.bf16.gmra.mxu1 %v1896_v1  ;;  %v938_v1 = vmul.f32 %v6325_v54, %v855_v43  ;;  %v1052_v42 = vadd.f32 %v6336_v7, %v982_v33  ;;  %v984_v43 = vmul.f32 %v6325_v54, %v901_v16  ;;  %v5468_v47 = vld [vmem:[%s5788_s14 + $0x10] sm:$0xff]   ;;  %v1900_v62 = vpack.c.bf16 %v6483_v14, %v6481_v40  ;;  %v908_v32 = vld [vmem:[#allocation7 + $0x1e8] sm:$0xff]  ;;  %v910_v14 = vld [vmem:[#allocation7 + $0x1f8] sm:$0xff] }
 0x16e   : > { %2784 = vmatpush1.bf16.msra.mxu1 %v5463_v26  ;;  %5176 = vmatprep.mubr.bf16.mxu1 %v1897_v27  ;;  %v1071_v63 = vmax.f32 %v6438_v53, 0.0  ;;  %v858_v26 = vld [vmem:[#allocation7 + $0x58] sm:$0xff]  ;;  %1178 = vst [vmem:[#allocation2 + $0x291] sm:$0xff] %v1113_v29  ;;  %v905_v53 = vld [vmem:[#allocation7 + $0x1d0] sm:$0xff]  ;;  %v990_v33 = vmul.f32 %v6325_v54, %v907_v6 }
 0x16f   : > { %2785 = vmatprep.subr.bf16.mxu1 %v5675_v12  ;;  %5131 = vmatpush3.bf16.msra.mxu0 %v6259_v15  ;;  %v1112_v15 = vmax.f32 %v1048_v0, 0.0  ;;  %v6468_v22 = vadd.f32 %v6336_v7, %v938_v1  ;;  %v1629_v27 = vld [vmem:[#allocation2 + $0x48] sm:$0xff]  ;;  %v941_v49 = vmul.f32 %v6325_v54, %v858_v26  ;;  %v1116_v59 = vmax.f32 %v1052_v42, 0.0  ;;  %v1631_v16 = vld [vmem:[#allocation2 + $0x60] sm:$0xff] }
 0x170   : > { %5132 = vmatprep.subr.bf16.mxu0 %v6266_v17  ;;  %1136 = vst [vmem:[#allocation2 + $0x69] sm:$0xff] %v1071_v63  ;;  %v6501_v58 = vpack.c.bf16 %v1071_v63, %v1070_v55  ;;  %v1054_v60 = vadd.f32 %v6336_v7, %v984_v43  ;;  %v1117_v0 = vmax.f32 %v1053_v48, 0.0  ;;  %v6509_v1 = vadd.f32 %v6336_v7, %v940_v45  ;;  %v5470_v42 = vld [vmem:[%s5788_s14] sm:$0xff]  }
 0x171   : > { %2098 = vmatmul.mubr.bf16.gmra.mxu0 %v6435_v52  ;;  %1177 = vst [vmem:[#allocation2 + $0x289] sm:$0xff] %v1112_v15  ;;  %v1072_v38 = vmax.f32 %v6468_v22, 0.0  ;;  %1181 = vst [vmem:[#allocation2 + $0x2b9] sm:$0xff] %v1116_v59  ;;  %v6513_v3 = vadd.f32 %v6336_v7, %v941_v49  ;;  %v988_v15 = vmul.f32 %v6325_v54, %v905_v53  ;;  %v1859_v45 = vld [vmem:[#allocation2 + $0x242] sm:$0xff]  ;;  %v1861_v53 = vld [vmem:[#allocation2 + $0x25a] sm:$0xff] }
 0x172   : > { %2786 = vmatpush1.bf16.msra.mxu1 %v5465_v44  ;;  %2105 = vmatprep.mubr.bf16.mxu0 %v6428_v46  ;;  %v985_v44 = vmul.f32 %v6325_v54, %v902_v24  ;;  %v1118_v55 = vmax.f32 %v1054_v60, 0.0  ;;  %1182 = vst [vmem:[#allocation2 + $0x2c1] sm:$0xff] %v1117_v0  ;;  %v989_v26 = vmul.f32 %v6325_v54, %v906_v2  ;;  %v1862_v56 = vld [vmem:[#allocation2 + $0x262] sm:$0xff] }
 0x173   : > { %v1630_v28 = vld [vmem:[#allocation2 + $0x50] sm:$0xff]  ;;  %2787 = vmatprep.subr.bf16.mxu1 %v5675_v12  ;;  %5133 = vmatpush3.bf16.msra.mxu0 %v6266_v17  ;;  %v1073_v17 = vmax.f32 %v6476_v37, 0.0  ;;  %1137 = vst [vmem:[#allocation2 + $0x79] sm:$0xff] %v1072_v38  ;;  %v1075_v24 = vmax.f32 %v6513_v3, 0.0  ;;  %v1058_v29 = vadd.f32 %v6336_v7, %v988_v15  ;;  %v991_v48 = vmul.f32 %v6325_v54, %v908_v32 }
 0x174   : > { %v6473_v36 = vpack.c.bf16 %v1630_v28, %v1629_v27  ;;  %5134 = vmatprep.subr.bf16.mxu0 %v6273_v19  ;;  %v1055_v61 = vadd.f32 %v6336_v7, %v985_v44  ;;  %1183 = vst [vmem:[#allocation2 + $0x2d1] sm:$0xff] %v1118_v55  ;;  %v942_v27 = vmul.f32 %v6325_v54, %v859_v41 }
 0x175   : > { %5177 = vmatmul.mubr.bf16.gmra.mxu1 %v1898_v4  ;;  %1138 = vst [vmem:[#allocation2 + $0x81] sm:$0xff] %v1073_v17  ;;  %v987_v4 = vmul.f32 %v6325_v54, %v904_v50  ;;  %v6537_v37 = vpack.c.bf16 %v1073_v17, %v1072_v38  ;;  %1140 = vst [vmem:[#allocation2 + $0x99] sm:$0xff] %v1075_v24  ;;  %v1059_v40 = vadd.f32 %v6336_v7, %v989_v26  ;;  %v861_v38 = vld [vmem:[#allocation7 + $0x70] sm:$0xff]  ;;  %v867_v26 = vld [vmem:[#allocation7 + $0xa0] sm:$0xff] }
 0x176   : > { %2788 = vmatpush1.bf16.msra.mxu1 %v5467_v5  ;;  %5180 = vmatprep.mubr.bf16.mxu1 %v1899_v18  ;;  %v1119_v63 = vmax.f32 %v1055_v61, 0.0  ;;  %v860_v5 = vld [vmem:[#allocation7 + $0x68] sm:$0xff]  ;;  %v1056_v18 = vadd.f32 %v6336_v7, %v986_v51  ;;  %v1122_v44 = vmax.f32 %v1058_v29, 0.0  ;;  %v1060_v49 = vadd.f32 %v6336_v7, %v990_v33  ;;  %v862_v51 = vld [vmem:[#allocation7 + $0x78] sm:$0xff]  ;;  %v863_v61 = vld [vmem:[#allocation7 + $0x80] sm:$0xff] }
 0x177   : > { %2789 = vmatprep.subr.bf16.mxu1 %v5675_v12  ;;  %5135 = vmatpush3.bf16.msra.mxu0 %v6273_v19  ;;  %v1074_v19 = vmax.f32 %v6509_v1, 0.0  ;;  %v1632_v20 = vld [vmem:[#allocation2 + $0x68] sm:$0xff]  ;;  %v1057_v25 = vadd.f32 %v6336_v7, %v987_v4  ;;  %v943_v31 = vmul.f32 %v6325_v54, %v860_v5  ;;  %v1123_v17 = vmax.f32 %v1059_v40, 0.0  ;;  %v865_v4 = vld [vmem:[#allocation7 + $0x90] sm:$0xff] }
 0x178   : > { %5136 = vmatprep.subr.bf16.mxu0 %v6280_v21  ;;  %1184 = vst [vmem:[#allocation2 + $0x2d9] sm:$0xff] %v1119_v63  ;;  %v1120_v28 = vmax.f32 %v1056_v18, 0.0  ;;  %v6544_v43 = vpack.c.bf16 %v1632_v20, %v1631_v16  ;;  %v992_v50 = vmul.f32 %v6325_v54, %v909_v35  ;;  %1187 = vst [vmem:[#allocation2 + $0x301] sm:$0xff] %v1122_v44  ;;  %v1124_v2 = vmax.f32 %v1060_v49, 0.0  ;;  %v864_v63 = vld [vmem:[#allocation7 + $0x88] sm:$0xff]  ;;  %v869_v44 = vld [vmem:[#allocation7 + $0xb0] sm:$0xff] }
 0x179   : > { %2106 = vmatmul.mubr.bf16.gmra.mxu0 %v6473_v36  ;;  %1139 = vst [vmem:[#allocation2 + $0x91] sm:$0xff] %v1074_v19  ;;  %v1121_v39 = vmax.f32 %v1057_v25, 0.0  ;;  %v6550_v22 = vadd.f32 %v6336_v7, %v943_v31  ;;  %v993_v60 = vmul.f32 %v6325_v54, %v910_v14  ;;  %1188 = vst [vmem:[#allocation2 + $0x309] sm:$0xff] %v1123_v17  ;;  %v866_v25 = vld [vmem:[#allocation7 + $0x98] sm:$0xff]  ;;  %v868_v35 = vld [vmem:[#allocation7 + $0xa8] sm:$0xff] }
 0x17a   : > { %2790 = vmatpush1.bf16.msra.mxu1 %v5468_v47  ;;  %2113 = vmatprep.mubr.bf16.mxu0 %v6501_v58  ;;  %1185 = vst [vmem:[#allocation2 + $0x2e9] sm:$0xff] %v1120_v28  ;;  %v1860_v47 = vld [vmem:[#allocation2 + $0x24a] sm:$0xff]  ;;  %v1061_v0 = vadd.f32 %v6336_v7, %v991_v48  ;;  %v1062_v41 = vadd.f32 %v6336_v7, %v992_v50  ;;  %v1633_v6 = vld [vmem:[#allocation2 + $0x78] sm:$0xff]  ;;  %1189 = vst [vmem:[#allocation2 + $0x319] sm:$0xff] %v1124_v2 }
 0x17b   : > { %2791 = vmatprep.subr.bf16.mxu1 %v5675_v12  ;;  %5137 = vmatpush3.bf16.msra.mxu0 %v6280_v21  ;;  %v6547_v21 = vadd.f32 %v6336_v7, %v942_v27  ;;  %1186 = vst [vmem:[#allocation2 + $0x2f1] sm:$0xff] %v1121_v39  ;;  %v1077_v59 = vmax.f32 %v6550_v22, 0.0  ;;  %v944_v55 = vmul.f32 %v6325_v54, %v861_v38  ;;  %v5472_v39 = vld [vmem:[%s5788_s14 + $0x70] sm:$0xff]   ;;  %v870_v38 = vld [vmem:[#allocation7 + $0xb8] sm:$0xff]  ;;  %v1865_v49 = vld [vmem:[#allocation2 + $0x28a] sm:$0xff] }
 0x17c   : > { %5138 = vmatprep.subr.bf16.mxu0 %v6287_v23  ;;  %v1902_v5 = vpack.c.bf16 %v1860_v47, %v1859_v45  ;;  %v1903_v16 = vpack.c.bf16 %v1862_v56, %v1861_v53  ;;  %v1125_v18 = vmax.f32 %v1061_v0, 0.0  ;;  %v1126_v15 = vmax.f32 %v1062_v41, 0.0  ;;  %v1863_v45 = vld [vmem:[#allocation2 + $0x272] sm:$0xff]  ;;  %v1864_v47 = vld [vmem:[#allocation2 + $0x27a] sm:$0xff] }
 0x17d   : > { %5181 = vmatmul.mubr.bf16.gmra.mxu1 %v1900_v62  ;;  %v1076_v57 = vmax.f32 %v6547_v21, 0.0  ;;  %v5471_v62 = vld [vmem:[%s5788_s14 + $0x78] sm:$0xff]   ;;  %1142 = vst [vmem:[#allocation2 + $0xb1] sm:$0xff] %v1077_v59  ;;  %v6574_v20 = vadd.f32 %v6336_v7, %v944_v55  ;;  %v946_v32 = vmul.f32 %v6325_v54, %v863_v61  ;;  %v947_v33 = vmul.f32 %v6325_v54, %v864_v63  ;;  %v1866_v50 = vld [vmem:[#allocation2 + $0x292] sm:$0xff]  ;;  %v5513_v61 = vld [vmem:[%s5788_s14 + $0x140] sm:$0xff]  }
 0x17e   : > { %2792 = vmatpush1.bf16.msra.mxu1 %v5469_v8  ;;  %5184 = vmatprep.mubr.bf16.mxu1 %v1901_v13  ;;  %v1634_v8 = vld [vmem:[#allocation2 + $0x80] sm:$0xff]  ;;  %v945_v13 = vmul.f32 %v6325_v54, %v862_v51  ;;  %1190 = vst [vmem:[#allocation2 + $0x321] sm:$0xff] %v1125_v18  ;;  %1191 = vst [vmem:[#allocation2 + $0x331] sm:$0xff] %v1126_v15  ;;  %v949_v14 = vmul.f32 %v6325_v54, %v866_v25 }
 0x17f   : > { %2793 = vmatprep.subr.bf16.mxu1 %v5675_v12  ;;  %5139 = vmatpush3.bf16.msra.mxu0 %v6287_v23  ;;  %1141 = vst [vmem:[#allocation2 + $0xa9] sm:$0xff] %v1076_v57  ;;  %v1063_v23 = vadd.f32 %v6336_v7, %v993_v60  ;;  %v6581_v29 = vpack.c.bf16 %v1634_v8, %v1633_v6  ;;  %v1078_v31 = vmax.f32 %v6574_v20, 0.0  ;;  %v5474_v18 = vld [vmem:[%s5788_s14 + $0x60] sm:$0xff]   ;;  %v1869_v25 = vld [vmem:[#allocation2 + $0x2ba] sm:$0xff] }
 0x180   : > { %5140 = vmatprep.subr.bf16.mxu0 %v6294_v30  ;;  %v6578_v28 = vadd.f32 %v6336_v7, %v945_v13  ;;  %v6601_v17 = vadd.f32 %v6336_v7, %v946_v32  ;;  %v6604_v48 = vadd.f32 %v6336_v7, %v947_v33  ;;  %v6613_v3 = vadd.f32 %v6336_v7, %v949_v14  ;;  %v1635_v51 = vld [vmem:[#allocation2 + $0x90] sm:$0xff]  ;;  %v1636_v63 = vld [vmem:[#allocation2 + $0x98] sm:$0xff]  ;;  %v1875_v20 = vld [vmem:[#allocation2 + $0x302] sm:$0xff] }
 0x181   : > { %2114 = vmatmul.mubr.bf16.gmra.mxu0 %v6544_v43  ;;  %v1127_v27 = vmax.f32 %v1063_v23, 0.0  ;;  %1143 = vst [vmem:[#allocation2 + $0xc1] sm:$0xff] %v1078_v31  ;;  %v1905_v55 = vpack.c.bf16 %v1866_v50, %v1865_v49  ;;  %v953_v6 = vmul.f32 %v6325_v54, %v870_v38  ;;  %v6652_v15 = vpack.c.bf16 %v1636_v63, %v1635_v51  ;;  %v5475_v21 = vld [vmem:[%s5788_s14 + $0x58] sm:$0xff]  }
 0x182   : > { %2794 = vmatpush1.bf16.msra.mxu1 %v5470_v42  ;;  %2121 = vmatprep.mubr.bf16.mxu0 %v6537_v37  ;;  %v1079_v40 = vmax.f32 %v6578_v28, 0.0  ;;  %v950_v42 = vmul.f32 %v6325_v54, %v867_v26  ;;  %v1080_v53 = vmax.f32 %v6601_v17, 0.0  ;;  %v1081_v56 = vmax.f32 %v6604_v48, 0.0  ;;  %v1870_v26 = vld [vmem:[#allocation2 + $0x2c2] sm:$0xff]  ;;  %v1874_v38 = vld [vmem:[#allocation2 + $0x2f2] sm:$0xff]  ;;  %v1876_v28 = vld [vmem:[#allocation2 + $0x30a] sm:$0xff] }
 0x183   : > { %2795 = vmatprep.subr.bf16.mxu1 %v5675_v12  ;;  %5141 = vmatpush3.bf16.msra.mxu0 %v6294_v30  ;;  %1192 = vst [vmem:[#allocation2 + $0x339] sm:$0xff] %v1127_v27  ;;  %v948_v30 = vmul.f32 %v6325_v54, %v865_v4  ;;  %v1083_v2 = vmax.f32 %v6613_v3, 0.0  ;;  %v6649_v13 = vadd.f32 %v6336_v7, %v953_v6  ;;  %v1338_v3 = vld [vmem:[#allocation2 + $0x8] sm:$0xff] }
 0x184   : > { %5142 = vmatprep.subr.bf16.mxu0 %v6301_v34  ;;  %v6596_v34 = vpack.c.bf16 %v1075_v24, %v1074_v19  ;;  %1144 = vst [vmem:[#allocation2 + $0xc9] sm:$0xff] %v1079_v40  ;;  %v951_v19 = vmul.f32 %v6325_v54, %v868_v35  ;;  %v5473_v24 = vld [vmem:[%s5788_s14 + $0x68] sm:$0xff]   ;;  %v6620_v60 = vadd.f32 %v6336_v7, %v950_v42  ;;  %1145 = vst [vmem:[#allocation2 + $0xd9] sm:$0xff] %v1080_v53  ;;  %v1871_v35 = vld [vmem:[#allocation2 + $0x2d2] sm:$0xff] }
 0x185   : > { %5185 = vmatmul.mubr.bf16.gmra.mxu1 %v1902_v5  ;;  %v6610_v1 = vadd.f32 %v6336_v7, %v948_v30  ;;  %1146 = vst [vmem:[#allocation2 + $0xe1] sm:$0xff] %v1081_v56  ;;  %v952_v5 = vmul.f32 %v6325_v54, %v869_v44  ;;  %1148 = vst [vmem:[#allocation2 + $0xf9] sm:$0xff] %v1083_v2  ;;  %v1867_v54 = vld [vmem:[#allocation2 + $0x2a2] sm:$0xff]  ;;  %v1087_v32 = vmax.f32 %v6649_v13, 0.0  ;;  %v5476_v30 = vld [vmem:[%s5788_s14 + $0x50] sm:$0xff]  }
 0x186   : > { %5188 = vmatprep.mubr.bf16.mxu1 %v1903_v16  ;;  %2796 = vmatpush2.bf16.msra.mxu1 %v5471_v62  ;;  %v1904_v62 = vpack.c.bf16 %v1864_v47, %v1863_v45  ;;  %v6627_v41 = vadd.f32 %v6336_v7, %v951_v19  ;;  %v1084_v4 = vmax.f32 %v6620_v60, 0.0  ;;  %v1868_v16 = vld [vmem:[#allocation2 + $0x2aa] sm:$0xff]  ;;  %v1907_v22 = vpack.c.bf16 %v1870_v26, %v1869_v25  ;;  %v5480_v60 = vld [vmem:[%s5788_s14 + $0x1b0] sm:$0xff]  }
 0x187   : > { %2797 = vmatprep.subr.bf16.mxu1 %v5675_v12  ;;  %5143 = vmatpush3.bf16.msra.mxu0 %v5513_v61  ;;  %v1082_v0 = vmax.f32 %v6610_v1, 0.0  ;;  %v6646_v23 = vadd.f32 %v6336_v7, %v952_v5  ;;  %v6660_v7 = vpack.c.bf16 %v1077_v59, %v1076_v57  ;;  %1152 = vst [vmem:[#allocation2 + $0x129] sm:$0xff] %v1087_v32  ;;  %v1637_v57 = vld [vmem:[#allocation2 + $0xa8] sm:$0xff]  ;;  %v1638_v59 = vld [vmem:[#allocation2 + $0xb0] sm:$0xff]  ;;  %v1337_v1 = vld [vmem:[#allocation2] sm:$0xff] }
 0x188   : > { %v1085_v8 = vmax.f32 %v6627_v41, 0.0  ;;  %1149 = vst [vmem:[#allocation2 + $0x109] sm:$0xff] %v1084_v4  ;;  %v1906_v33 = vpack.c.bf16 %v1868_v16, %v1867_v54  ;;  %v6674_v14 = vpack.c.bf16 %v1638_v59, %v1637_v57  ;;  %v6680_v42 = vpack.c.bf16 %v1079_v40, %v1078_v31  ;;  %v1873_v44 = vld [vmem:[#allocation2 + $0x2ea] sm:$0xff]  ;;  %v1639_v47 = vld [vmem:[#allocation2 + $0xc0] sm:$0xff] }
 0x189   : > { %2122 = vmatmul.mubr.bf16.gmra.mxu0 %v6581_v29  ;;  %1147 = vst [vmem:[#allocation2 + $0xf1] sm:$0xff] %v1082_v0  ;;  %v1086_v27 = vmax.f32 %v6646_v23, 0.0  ;;  %v5477_v45 = vld [vmem:[%s5788_s14 + $0x48] sm:$0xff]   ;;  %v1909_v19 = vpack.c.bf16 %v1874_v38, %v1873_v44  ;;  %v5478_v31 = vld [vmem:[%s5788_s14 + $0x40] sm:$0xff]   ;;  %v1877_v40 = vld [vmem:[#allocation2 + $0x31a] sm:$0xff]  ;;  %v6694_v61 = vpack.c.bf16 %v1081_v56, %v1080_v53  ;;  %v6706_v53 = vpack.c.bf16 %v1083_v2, %v1082_v0 }
 0x18a   : > { %2798 = vmatpush2.bf16.msra.mxu1 %v5472_v39  ;;  %2129 = vmatprep.mubr.bf16.mxu0 %v6596_v34  ;;  %1150 = vst [vmem:[#allocation2 + $0x111] sm:$0xff] %v1085_v8  ;;  %v1872_v39 = vld [vmem:[#allocation2 + $0x2da] sm:$0xff]  ;;  %v1879_v17 = vld [vmem:[#allocation2 + $0x332] sm:$0xff]  ;;  %v1434_v54 = vld [vmem:[#allocation2 + $0x9] sm:$0xff]  ;;  %v6716_v0 = vpack.c.bf16 %v1085_v8, %v1084_v4  ;;  %v1401_v2 = vpack.c.bf16 %v1338_v3, %v1337_v1 }
 0x18b   : > { %2799 = vmatprep.subr.bf16.mxu1 %v5675_v12  ;;  %1151 = vst [vmem:[#allocation2 + $0x121] sm:$0xff] %v1086_v27  ;;  %v1640_v49 = vld [vmem:[#allocation2 + $0xc8] sm:$0xff]  ;;  %v1908_v50 = vpack.c.bf16 %v1872_v39, %v1871_v35  ;;  %v1641_v63 = vld [vmem:[#allocation2 + $0xd8] sm:$0xff]  ;;  %v6729_v41 = vpack.c.bf16 %v1087_v32, %v1086_v27 }
 0x18c   : > { %v6688_v51 = vpack.c.bf16 %v1640_v49, %v1639_v47  ;;  %v1642_v5 = vld [vmem:[#allocation2 + $0xe0] sm:$0xff]  ;;  %v5481_v35 = vld [vmem:[%s5788_s14 + $0x1a8] sm:$0xff]   ;;  %v1649_v39 = vld [vmem:[#allocation2 + $0x138] sm:$0xff] }
 0x18d   : > { %5189 = vmatmul.mubr.bf16.gmra.mxu1 %v1904_v62  ;;  %v1910_v62 = vpack.c.bf16 %v1876_v28, %v1875_v20  ;;  %v6700_v6 = vpack.c.bf16 %v1642_v5, %v1641_v63  ;;  %v1880_v48 = vld [vmem:[#allocation2 + $0x33a] sm:$0xff]  ;;  %v5482_v32 = vld [vmem:[%s5788_s14 + $0x1a0] sm:$0xff]   ;;  %v5484_v47 = vld [vmem:[%s5788_s14 + $0x190] sm:$0xff]  }
 0x18e   : > { %5192 = vmatprep.mubr.bf16.mxu1 %v1905_v55  ;;  %2800 = vmatpush2.bf16.msra.mxu1 %v5473_v24  ;;  %v1878_v24 = vld [vmem:[#allocation2 + $0x322] sm:$0xff]  ;;  %v1912_v16 = vpack.c.bf16 %v1880_v48, %v1879_v17  ;;  %v5483_v44 = vld [vmem:[%s5788_s14 + $0x198] sm:$0xff]   ;;  %v1651_v49 = vld [vmem:[#allocation2 + $0x150] sm:$0xff] }
 0x18f   : > { %2801 = vmatprep.subr.bf16.mxu1 %v5675_v12  ;;  %v1911_v55 = vpack.c.bf16 %v1878_v24, %v1877_v40  ;;  %v1433_v56 = vld [vmem:[#allocation2 + $0x1] sm:$0xff]  ;;  %v1748_v38 = vld [vmem:[#allocation2 + $0x159] sm:$0xff]  ;;  %v1750_v20 = vld [vmem:[#allocation2 + $0x171] sm:$0xff] }
 0x190   : > { %v1643_v25 = vld [vmem:[#allocation2 + $0xf0] sm:$0xff]  ;;  %v1644_v26 = vld [vmem:[#allocation2 + $0xf8] sm:$0xff]  ;;  %v1746_v23 = vld [vmem:[#allocation2 + $0x141] sm:$0xff] }
 0x191   : > { %2130 = vmatmul.mubr.bf16.gmra.mxu0 %v6652_v15  ;;  %v1646_v57 = vld [vmem:[#allocation2 + $0x110] sm:$0xff]  ;;  %v1653_v40 = vld [vmem:[#allocation2 + $0x168] sm:$0xff]  ;;  %v1655_v17 = vld [vmem:[#allocation2 + $0x180] sm:$0xff] }
 0x192   : > { %2802 = vmatpush2.bf16.msra.mxu1 %v5474_v18  ;;  %2137 = vmatprep.mubr.bf16.mxu0 %v6660_v7  ;;  %v1497_v18 = vpack.c.bf16 %v1434_v54, %v1433_v56  ;;  %v1647_v4 = vld [vmem:[#allocation2 + $0x120] sm:$0xff]  ;;  %v1648_v8 = vld [vmem:[#allocation2 + $0x128] sm:$0xff]  ;;  %v1654_v24 = vld [vmem:[#allocation2 + $0x170] sm:$0xff] }
 0x193   : > { %2803 = vmatprep.subr.bf16.mxu1 %v5675_v12  ;;  %v6737_v13 = vpack.c.bf16 %v1648_v8, %v1647_v4  ;;  %v5488_v5 = vld [vmem:[%s5788_s14 + $0x1f0] sm:$0xff]   ;;  %v1656_v48 = vld [vmem:[#allocation2 + $0x188] sm:$0xff]  ;;  %v1662_v4 = vld [vmem:[#allocation2 + $0x200] sm:$0xff] }
 0x194   : > { %v5489_v56 = vld [vmem:[%s5788_s14 + $0x1e8] sm:$0xff]  }
 0x195   : > { %5193 = vmatmul.mubr.bf16.gmra.mxu1 %v1906_v33  ;;  %v6710_v33 = vpack.c.bf16 %v1644_v26, %v1643_v25  ;;  %v1753_v54 = vld [vmem:[#allocation2 + $0x1c9] sm:$0xff]  ;;  %v1755_v26 = vld [vmem:[#allocation2 + $0x1e1] sm:$0xff]  ;;  %v1759_v8 = vld [vmem:[#allocation2 + $0x211] sm:$0xff] }
 0x196   : > { %5196 = vmatprep.mubr.bf16.mxu1 %v1907_v22  ;;  %2804 = vmatpush2.bf16.msra.mxu1 %v5475_v21  ;;  %v5479_v21 = vld [vmem:[%s5788_s14 + $0x1b8] sm:$0xff]   ;;  %v1645_v22 = vld [vmem:[#allocation2 + $0x108] sm:$0xff]  ;;  %v1658_v25 = vld [vmem:[#allocation2 + $0x1d0] sm:$0xff] }
 0x197   : > { %2805 = vmatprep.subr.bf16.mxu1 %v5675_v12  ;;  %v6721_v59 = vpack.c.bf16 %v1646_v57, %v1645_v22  ;;  %v1756_v1 = vld [vmem:[#allocation2 + $0x1e9] sm:$0xff]  ;;  %v1757_v22 = vld [vmem:[#allocation2 + $0x1f9] sm:$0xff]  ;;  %v1758_v57 = vld [vmem:[#allocation2 + $0x201] sm:$0xff] }
 0x199   : > { %2138 = vmatmul.mubr.bf16.gmra.mxu0 %v6674_v14 }
 0x19a   : > { %2806 = vmatpush2.bf16.msra.mxu1 %v5476_v30  ;;  %2145 = vmatprep.mubr.bf16.mxu0 %v6680_v42  ;;  %v1650_v30 = vld [vmem:[#allocation2 + $0x140] sm:$0xff] }
 0x19b   : > { %2807 = vmatprep.subr.bf16.mxu1 %v5675_v12 }
 0x19d   : > { %5197 = vmatmul.mubr.bf16.gmra.mxu1 %v1908_v50  ;;  %v1652_v50 = vld [vmem:[#allocation2 + $0x158] sm:$0xff] }
 0x19e   : > { %5200 = vmatprep.mubr.bf16.mxu1 %v1909_v19  ;;  %2808 = vmatpush2.bf16.msra.mxu1 %v5477_v45  ;;  %v5485_v19 = vld [vmem:[%s5788_s14 + $0x188] sm:$0xff]  }
 0x19f   : > { %2809 = vmatprep.subr.bf16.mxu1 %v5675_v12 }
 0x1a1   : > { %2146 = vmatmul.mubr.bf16.gmra.mxu0 %v6688_v51 }
 0x1a2   : > { %2810 = vmatpush2.bf16.msra.mxu1 %v5478_v31  ;;  %2153 = vmatprep.mubr.bf16.mxu0 %v6694_v61  ;;  %v5486_v31 = vld [vmem:[%s5788_s14 + $0x180] sm:$0xff]  }
 0x1a3   : > { %3790 = vmatprep.subr.bf16.mxu1 %v5675_v12 }
 0x1a5   : > { %5201 = vmatmul.mubr.bf16.gmra.mxu1 %v1910_v62  ;;  %v5487_v62 = vld [vmem:[%s5788_s14 + $0x1f8] sm:$0xff]  }
 0x1a6   : > { %5204 = vmatprep.mubr.bf16.mxu1 %v1911_v55  ;;  %v1752_v55 = vld [vmem:[#allocation2 + $0x189] sm:$0xff] }
 0x1a9   : > { %2154 = vmatmul.mubr.bf16.gmra.mxu0 %v6700_v6 }
 0x1aa   : > { %2161 = vmatprep.mubr.bf16.mxu0 %v6706_v53 }
 0x1ad   : > { %5205 = vmatmul.mubr.bf16.gmra.mxu1 %v1912_v16  ;;  %v1754_v16 = vld [vmem:[#allocation2 + $0x1d1] sm:$0xff] }
 0x1ae   : > { %2811 = vmatprep.mubr.bf16.mxu1 %v1497_v18  ;;  %v1657_v18 = vld [vmem:[#allocation2 + $0x1c8] sm:$0xff] }
 0x1af   : > { %v6788_v3 = vpack.c.bf16 %v1658_v25, %v1657_v18 }
 0x1b1   : > { %2162 = vmatmul.mubr.bf16.gmra.mxu0 %v6710_v33 }
 0x1b2   : > { %2169 = vmatprep.mubr.bf16.mxu0 %v6716_v0 }
 0x1b5   : > { %2812 = vmatmul.mubr.bf16.vlgmr.msra.gmra.mxu1 %v1401_v2  ;;  %v1659_v2 = vld [vmem:[#allocation2 + $0x1e0] sm:$0xff] }
 0x1b6   : > { %3791 = vmatpush1.bf16.msra.mxu1 %v5479_v21  ;;  %2819 = vmatprep.mubr.bf16.mxu1 %v6373_v11  ;;  %v1745_v11 = vld [vmem:[#allocation2 + $0x139] sm:$0xff]  ;;  %v1660_v21 = vld [vmem:[#allocation2 + $0x1e8] sm:$0xff] }
 0x1b7   : > { %3792 = vmatprep.subr.bf16.mxu1 %v5675_v12  ;;  %v6740_v27 = vpack.c.bf16 %v1746_v23, %v1745_v11 }
 0x1b9   : > { %2170 = vmatmul.mubr.bf16.gmra.mxu0 %v6721_v59 }
 0x1ba   : > { %3793 = vmatpush1.bf16.msra.mxu1 %v5480_v60  ;;  %2177 = vmatprep.mubr.bf16.mxu0 %v6729_v41  ;;  %v1661_v60 = vld [vmem:[#allocation2 + $0x1f8] sm:$0xff] }
 0x1bb   : > { %3794 = vmatprep.subr.bf16.mxu1 %v5675_v12  ;;  %v6806_v11 = vpack.c.bf16 %v1662_v4, %v1661_v60  ;;  %v1773_v60 = vld [vmem:[#allocation2 + $0x2b9] sm:$0xff]  ;;  %v1774_v4 = vld [vmem:[#allocation2 + $0x2c1] sm:$0xff] }
 0x1bd   : > { %2820 = vmatmul.mubr.bf16.gmra.mxu1 %v6403_v9  ;;  %v1747_v9 = vld [vmem:[#allocation2 + $0x151] sm:$0xff] }
 0x1be   : > { %2827 = vmatprep.mubr.bf16.mxu1 %v6405_v10  ;;  %3795 = vmatpush1.bf16.msra.mxu1 %v5481_v35  ;;  %v6749_v10 = vpack.c.bf16 %v1650_v30, %v1649_v39  ;;  %v6752_v45 = vpack.c.bf16 %v1748_v38, %v1747_v9  ;;  %v1760_v35 = vld [vmem:[#allocation2 + $0x219] sm:$0xff]  ;;  %v1761_v39 = vld [vmem:[#allocation2 + $0x229] sm:$0xff]  ;;  %v1762_v30 = vld [vmem:[#allocation2 + $0x231] sm:$0xff] }
 0x1bf   : > { %3796 = vmatprep.subr.bf16.mxu1 %v5675_v12  ;;  %v6810_v23 = vpack.c.bf16 %v1760_v35, %v1759_v8  ;;  %v1665_v9 = vld [vmem:[#allocation2 + $0x228] sm:$0xff]  ;;  %v1666_v38 = vld [vmem:[#allocation2 + $0x230] sm:$0xff] }
 0x1c1   : > { %2178 = vmatmul.mubr.bf16.gmra.mxu0 %v6737_v13 }
 0x1c2   : > { %2185 = vmatprep.mubr.bf16.mxu0 %v6740_v27  ;;  %3797 = vmatpush1.bf16.msra.mxu1 %v5482_v32  ;;  %v1664_v32 = vld [vmem:[#allocation2 + $0x218] sm:$0xff] }
 0x1c3   : > { %3798 = vmatprep.subr.bf16.mxu1 %v5675_v12 }
 0x1c5   : > { %2828 = vmatmul.mubr.bf16.gmra.mxu1 %v6435_v52  ;;  %v1749_v52 = vld [vmem:[#allocation2 + $0x169] sm:$0xff] }
 0x1c6   : > { %2835 = vmatprep.mubr.bf16.mxu1 %v6428_v46  ;;  %3799 = vmatpush1.bf16.msra.mxu1 %v5483_v44  ;;  %v6761_v46 = vpack.c.bf16 %v1652_v50, %v1651_v49  ;;  %v6764_v28 = vpack.c.bf16 %v1750_v20, %v1749_v52  ;;  %v6819_v44 = vld [vmem:[%s5788_s14 + $0xb8] sm:$0xff]   ;;  %v1764_v49 = vld [vmem:[#allocation2 + $0x249] sm:$0xff]  ;;  %v5494_v50 = vld [vmem:[%s5788_s14 + $0x1d0] sm:$0xff]  }
 0x1c7   : > { %3800 = vmatprep.subr.bf16.mxu1 %v5675_v12  ;;  %5208 = vmatprep.subr.bf16.mxu0 %v6819_v44  ;;  %v1668_v52 = vld [vmem:[#allocation2 + $0x248] sm:$0xff]  ;;  %v1765_v20 = vld [vmem:[#allocation2 + $0x259] sm:$0xff] }
 0x1c9   : > { %2186 = vmatmul.mubr.bf16.gmra.mxu0 %v6749_v10 }
 0x1ca   : > { %2193 = vmatprep.mubr.bf16.mxu0 %v6752_v45  ;;  %3801 = vmatpush1.bf16.msra.mxu1 %v5484_v47  ;;  %v1763_v47 = vld [vmem:[#allocation2 + $0x241] sm:$0xff] }
 0x1cb   : > { %3802 = vmatprep.subr.bf16.mxu1 %v5675_v12 }
 0x1cd   : > { %2836 = vmatmul.mubr.bf16.gmra.mxu1 %v6473_v36  ;;  %v1751_v36 = vld [vmem:[#allocation2 + $0x181] sm:$0xff] }
 0x1ce   : > { %2843 = vmatprep.mubr.bf16.mxu1 %v6501_v58  ;;  %3803 = vmatpush1.bf16.msra.mxu1 %v5485_v19  ;;  %v6773_v58 = vpack.c.bf16 %v1654_v24, %v1653_v40  ;;  %v1800_v63 = vpack.c.bf16 %v1752_v55, %v1751_v36  ;;  %v1667_v19 = vld [vmem:[#allocation2 + $0x240] sm:$0xff]  ;;  %v1669_v40 = vld [vmem:[#allocation2 + $0x258] sm:$0xff] }
 0x1cf   : > { %3804 = vmatprep.subr.bf16.mxu1 %v5675_v12  ;;  %v1670_v24 = vld [vmem:[#allocation2 + $0x260] sm:$0xff] }
 0x1d0   : > { %v1768_v36 = vld [vmem:[#allocation2 + $0x279] sm:$0xff]  ;;  %v6846_v55 = vpack.c.bf16 %v1670_v24, %v1669_v40 }
 0x1d1   : > { %2194 = vmatmul.mubr.bf16.gmra.mxu0 %v6761_v46 }
 0x1d2   : > { %2201 = vmatprep.mubr.bf16.mxu0 %v6764_v28  ;;  %3805 = vmatpush1.bf16.msra.mxu1 %v5486_v31  ;;  %v1766_v31 = vld [vmem:[#allocation2 + $0x261] sm:$0xff] }
 0x1d3   : > { %3806 = vmatprep.subr.bf16.mxu1 %v5675_v12 }
 0x1d5   : > { %2844 = vmatmul.mubr.bf16.gmra.mxu1 %v6544_v43  ;;  %v6783_v43 = vpack.c.bf16 %v1754_v16, %v1753_v54  ;;  %v1771_v54 = vld [vmem:[#allocation2 + $0x2a1] sm:$0xff]  ;;  %v1772_v16 = vld [vmem:[#allocation2 + $0x2a9] sm:$0xff] }
 0x1d6   : > { %2851 = vmatprep.mubr.bf16.mxu1 %v6537_v37  ;;  %3807 = vmatpush2.bf16.msra.mxu1 %v5487_v62  ;;  %v1704_v37 = vpack.c.bf16 %v1656_v48, %v1655_v17  ;;  %v1767_v62 = vld [vmem:[#allocation2 + $0x271] sm:$0xff]  ;;  %v1769_v17 = vld [vmem:[#allocation2 + $0x289] sm:$0xff] }
 0x1d7   : > { %3808 = vmatprep.subr.bf16.mxu1 %v5675_v12  ;;  %v1770_v48 = vld [vmem:[#allocation2 + $0x291] sm:$0xff] }
 0x1d9   : > { %2202 = vmatmul.mubr.bf16.gmra.mxu0 %v6773_v58 }
 0x1da   : > { %2209 = vmatprep.mubr.bf16.mxu0 %v1800_v63  ;;  %3809 = vmatpush2.bf16.msra.mxu1 %v5488_v5  ;;  %v5497_v63 = vld [vmem:[%s5788_s14 + $0x1c8] sm:$0xff]   ;;  %v1672_v5 = vld [vmem:[#allocation2 + $0x278] sm:$0xff] }
 0x1db   : > { %3810 = vmatprep.subr.bf16.mxu1 %v5675_v12 }
 0x1dd   : > { %2852 = vmatmul.mubr.bf16.gmra.mxu1 %v6581_v29  ;;  %v5490_v29 = vld [vmem:[%s5788_s14 + $0x1e0] sm:$0xff]  }
 0x1de   : > { %2859 = vmatprep.mubr.bf16.mxu1 %v6596_v34  ;;  %3811 = vmatpush2.bf16.msra.mxu1 %v5489_v56  ;;  %v6792_v34 = vpack.c.bf16 %v1756_v1, %v1755_v26  ;;  %v1674_v56 = vld [vmem:[#allocation2 + $0x290] sm:$0xff]  ;;  %v1466_v1 = vld [vmem:[#allocation2 + $0x1b9] sm:$0xff] }
 0x1df   : > { %3812 = vmatprep.subr.bf16.mxu1 %v5675_v12  ;;  %v1465_v26 = vld [vmem:[#allocation2 + $0x1b1] sm:$0xff] }
 0x1e1   : > { %2210 = vmatmul.mubr.bf16.gmra.mxu0 %v1704_v37 }
 0x1e2   : > { %2217 = vmatprep.mubr.bf16.mxu0 %v6783_v43  ;;  %3813 = vmatpush2.bf16.msra.mxu1 %v5490_v29 }
 0x1e3   : > { %3814 = vmatprep.subr.bf16.mxu1 %v5675_v12 }
 0x1e5   : > { %2860 = vmatmul.mubr.bf16.gmra.mxu1 %v6652_v15  ;;  %v6798_v15 = vpack.c.bf16 %v1660_v21, %v1659_v2  ;;  %v1513_v21 = vpack.c.bf16 %v1466_v1, %v1465_v26 }
 0x1e6   : > { %2867 = vmatprep.mubr.bf16.mxu1 %v6660_v7  ;;  %v6801_v7 = vpack.c.bf16 %v1758_v57, %v1757_v22  ;;  %v1676_v22 = vld [vmem:[#allocation2 + $0x2a8] sm:$0xff] }
 0x1e9   : > { %2218 = vmatmul.mubr.bf16.gmra.mxu0 %v6788_v3 }
 0x1ea   : > { %2225 = vmatprep.mubr.bf16.mxu0 %v6792_v34 }
 0x1ed   : > { %2868 = vmatmul.mubr.bf16.gmra.mxu1 %v6674_v14  ;;  %v5491_v14 = vld [vmem:[%s5788_s14 + $0x1d8] sm:$0xff]  }
 0x1ee   : > { %2875 = vmatprep.mubr.bf16.mxu1 %v6680_v42  ;;  %3815 = vmatpush2.bf16.msra.mxu1 %v5491_v14  ;;  %v1663_v42 = vld [vmem:[#allocation2 + $0x210] sm:$0xff] }
 0x1ef   : > { %3816 = vmatprep.subr.bf16.mxu1 %v5675_v12 }
 0x1f1   : > { %2226 = vmatmul.mubr.bf16.gmra.mxu0 %v6798_v15 }
 0x1f2   : > { %2233 = vmatprep.mubr.bf16.mxu0 %v6801_v7  ;;  %3817 = vmatpush2.bf16.msra.mxu1 %v5494_v50  ;;  %v1678_v50 = vld [vmem:[#allocation2 + $0x2c0] sm:$0xff] }
 0x1f3   : > { %3818 = vmatprep.subr.bf16.mxu1 %v5675_v12 }
 0x1f5   : > { %2876 = vmatmul.mubr.bf16.gmra.mxu1 %v6688_v51  ;;  %v6816_v51 = vpack.c.bf16 %v1664_v32, %v1663_v42  ;;  %v1369_v42 = vld [vmem:[#allocation2 + $0x1b0] sm:$0xff]  ;;  %v1370_v32 = vld [vmem:[#allocation2 + $0x1b8] sm:$0xff] }
 0x1f6   : > { %2883 = vmatprep.mubr.bf16.mxu1 %v6694_v61  ;;  %v6822_v61 = vpack.c.bf16 %v1762_v30, %v1761_v39  ;;  %3819 = vmatpush2.bf16.msra.mxu1 %v5497_v63  ;;  %v6889_v39 = vpack.c.bf16 %v1774_v4, %v1773_v60  ;;  %v1682_v4 = vld [vmem:[#allocation2 + $0x2f0] sm:$0xff] }
 0x1f7   : > { %3820 = vmatprep.subr.bf16.mxu1 %v5675_v12  ;;  %v1673_v12 = vld [vmem:[#allocation2 + $0x288] sm:$0xff] }
 0x1f8   : > { %v6866_v18 = vpack.c.bf16 %v1674_v56, %v1673_v12  ;;  %v1680_v12 = vld [vmem:[#allocation2 + $0x2d8] sm:$0xff] }
 0x1f9   : > { %2234 = vmatmul.mubr.bf16.gmra.mxu0 %v6806_v11 }
 0x1fa   : > { %2241 = vmatprep.mubr.bf16.mxu0 %v6810_v23 }
 0x1fd   : > { %2884 = vmatmul.mubr.bf16.gmra.mxu1 %v6700_v6  ;;  %v6828_v6 = vpack.c.bf16 %v1666_v38, %v1665_v9 }
 0x1fe   : > { %2891 = vmatprep.mubr.bf16.mxu1 %v6706_v53  ;;  %v6832_v53 = vpack.c.bf16 %v1764_v49, %v1763_v47  ;;  %v1417_v47 = vpack.c.bf16 %v1370_v32, %v1369_v42 }
 0x201   : > { %2242 = vmatmul.mubr.bf16.gmra.mxu0 %v6816_v51 }
 0x202   : > { %2249 = vmatprep.mubr.bf16.mxu0 %v6822_v61 }
 0x205   : > { %2892 = vmatmul.mubr.bf16.gmra.mxu1 %v6710_v33  ;;  %v6838_v33 = vpack.c.bf16 %v1668_v52, %v1667_v19 }
 0x206   : > { %2899 = vmatprep.mubr.bf16.mxu1 %v6716_v0  ;;  %v6841_v0 = vpack.c.bf16 %v1766_v31, %v1765_v20  ;;  %v1775_v20 = vld [vmem:[#allocation2 + $0x2d1] sm:$0xff]  ;;  %v1776_v31 = vld [vmem:[#allocation2 + $0x2d9] sm:$0xff] }
 0x209   : > { %2250 = vmatmul.mubr.bf16.gmra.mxu0 %v6828_v6 }
 0x20a   : > { %2257 = vmatprep.mubr.bf16.mxu0 %v6832_v53 }
 0x20d   : > { %2900 = vmatmul.mubr.bf16.gmra.mxu1 %v6721_v59  ;;  %v6850_v59 = vpack.c.bf16 %v1768_v36, %v1767_v62  ;;  %v6908_v36 = vpack.c.bf16 %v1776_v31, %v1775_v20 }
 0x20e   : > { %2907 = vmatprep.mubr.bf16.mxu1 %v6729_v41  ;;  %v1671_v41 = vld [vmem:[#allocation2 + $0x270] sm:$0xff] }
 0x211   : > { %2258 = vmatmul.mubr.bf16.gmra.mxu0 %v6838_v33 }
 0x212   : > { %2265 = vmatprep.mubr.bf16.mxu0 %v6841_v0 }
 0x215   : > { %2908 = vmatmul.mubr.bf16.gmra.mxu1 %v6737_v13  ;;  %v6856_v13 = vpack.c.bf16 %v1672_v5, %v1671_v41 }
 0x216   : > { %2915 = vmatprep.mubr.bf16.mxu1 %v6740_v27  ;;  %v6859_v27 = vpack.c.bf16 %v1770_v48, %v1769_v17  ;;  %v1679_v48 = vld [vmem:[#allocation2 + $0x2d0] sm:$0xff] }
 0x217   : > { %v6925_v1 = vpack.c.bf16 %v1680_v12, %v1679_v48  ;;  %v1684_v12 = vld [vmem:[#allocation2 + $0x308] sm:$0xff] }
 0x219   : > { %2266 = vmatmul.mubr.bf16.gmra.mxu0 %v6846_v55 }
 0x21a   : > { %2273 = vmatprep.mubr.bf16.mxu0 %v6850_v59 }
 0x21d   : > { %2916 = vmatmul.mubr.bf16.gmra.mxu1 %v6749_v10  ;;  %v5502_v10 = vld [vmem:[%s5788_s14 + $0x1c0] sm:$0xff]  }
 0x21e   : > { %2923 = vmatprep.mubr.bf16.mxu1 %v6752_v45  ;;  %v6870_v45 = vpack.c.bf16 %v1772_v16, %v1771_v54  ;;  %3821 = vmatpush2.bf16.msra.mxu1 %v5502_v10  ;;  %v1777_v16 = vld [vmem:[#allocation2 + $0x2e9] sm:$0xff] }
 0x221   : > { %2274 = vmatmul.mubr.bf16.gmra.mxu0 %v6856_v13 }
 0x222   : > { %2281 = vmatprep.mubr.bf16.mxu0 %v6859_v27 }
 0x225   : > { %v6863_v37 = vpop.f32.mrf.mxu1  ;;  %2924 = vmatmul.mubr.bf16.gmra.mxu1 %v6761_v46  ;;  %v1675_v46 = vld [vmem:[#allocation2 + $0x2a0] sm:$0xff] }
 0x226   : > { %2931 = vmatprep.mubr.bf16.mxu1 %v6764_v28  ;;  %v6887_v14 = vpack.c.bf16 %v1676_v22, %v1675_v46 }
 0x227   : > { %v6872_v25 = vpop.f32.mrf.mxu1 }
 0x229   : > { %v6874_v29 = vpop.f32.mrf.mxu1  ;;  %v6876_v2 = vpop.f32.mrf.mxu0  ;;  %2282 = vmatmul.mubr.bf16.gmra.mxu0 %v6866_v18 }
 0x22a   : > { %8083 = vst [vmem:[#allocation10_spill] sm:$0xff] %v6876_v2  ;;  %2289 = vmatprep.mubr.bf16.mxu0 %v6870_v45 }
 0x22b   : > { %v6880_v57 = vpop.f32.mrf.mxu1  ;;  %v2093_v28 = vpop.f32.mrf.mxu0 }
 0x22d   : > { %v6882_v8 = vpop.f32.mrf.mxu1  ;;  %2932 = vmatmul.mubr.bf16.gmra.mxu1 %v6773_v58  ;;  %v6885_v35 = vpop.f32.mrf.mxu0  ;;  %v1677_v58 = vld [vmem:[#allocation2 + $0x2b8] sm:$0xff] }
 0x22e   : > { %8084 = vst [vmem:[#allocation11_spill] sm:$0xff] %v6885_v35  ;;  %2939 = vmatprep.mubr.bf16.mxu1 %v1513_v21  ;;  %v6905_v62 = vpack.c.bf16 %v1678_v50, %v1677_v58  ;;  %v1688_v35 = vld [vmem:[#allocation2 + $0x338] sm:$0xff] }
 0x22f   : > { %v6891_v30 = vpop.f32.mrf.mxu1  ;;  %v2096_v9 = vpop.f32.mrf.mxu0 }
 0x230   : > { %v1779_v9 = vld [vmem:[#allocation2 + $0x301] sm:$0xff] }
 0x231   : > { %v6893_v38 = vpop.f32.mrf.mxu1  ;;  %v6895_v49 = vpop.f32.mrf.mxu0  ;;  %2290 = vmatmul.mubr.bf16.gmra.mxu0 %v6887_v14 }
 0x232   : > { %8085 = vst [vmem:[#allocation12_spill] sm:$0xff] %v6895_v49  ;;  %2297 = vmatprep.mubr.bf16.mxu0 %v6889_v39 }
 0x233   : > { %v6899_v19 = vpop.f32.mrf.mxu1  ;;  %v2101_v52 = vpop.f32.mrf.mxu0 }
 0x235   : > { %v6901_v40 = vpop.f32.mrf.mxu1  ;;  %2940 = vmatmul.mubr.bf16.gmra.mxu1 %v1417_v47  ;;  %v6903_v24 = vpop.f32.mrf.mxu0 }
 0x236   : > { %8086 = vst [vmem:[#allocation13_spill] sm:$0xff] %v6903_v24  ;;  %2947 = vmatprep.mubr.bf16.mxu1 %v6783_v43  ;;  %v1778_v43 = vld [vmem:[#allocation2 + $0x2f1] sm:$0xff] }
 0x237   : > { %v6910_v63 = vpop.f32.mrf.mxu1  ;;  %v2104_v41 = vpop.f32.mrf.mxu0  ;;  %v6928_v21 = vpack.c.bf16 %v1778_v43, %v1777_v16  ;;  %v1781_v43 = vld [vmem:[#allocation2 + $0x319] sm:$0xff] }
 0x239   : > { %v6912_v5 = vpop.f32.mrf.mxu1  ;;  %v6914_v17 = vpop.f32.mrf.mxu0  ;;  %2298 = vmatmul.mubr.bf16.gmra.mxu0 %v6905_v62 }
 0x23a   : > { %8087 = vst [vmem:[#allocation14_spill] sm:$0xff] %v6914_v17  ;;  %2305 = vmatprep.mubr.bf16.mxu0 %v6908_v36 }
 0x23b   : > { %v6918_v56 = vpop.f32.mrf.mxu1  ;;  %v2109_v54 = vpop.f32.mrf.mxu0 }
 0x23d   : > { %v6920_v10 = vpop.f32.mrf.mxu1  ;;  %2948 = vmatmul.mubr.bf16.gmra.mxu1 %v6788_v3  ;;  %v6923_v26 = vpop.f32.mrf.mxu0  ;;  %v1681_v3 = vld [vmem:[#allocation2 + $0x2e8] sm:$0xff] }
 0x23e   : > { %8088 = vst [vmem:[#allocation15_spill] sm:$0xff] %v6923_v26  ;;  %2955 = vmatprep.mubr.bf16.mxu1 %v6792_v34  ;;  %v1780_v34 = vld [vmem:[#allocation2 + $0x309] sm:$0xff]  ;;  %v6945_v50 = vpack.c.bf16 %v1682_v4, %v1681_v3 }
 0x23f   : > { %v6930_v46 = vpop.f32.mrf.mxu1  ;;  %v2112_v22 = vpop.f32.mrf.mxu0  ;;  %v6948_v52 = vpack.c.bf16 %v1780_v34, %v1779_v9 }
 0x241   : > { %v6932_v28 = vpop.f32.mrf.mxu1  ;;  %v6934_v60 = vpop.f32.mrf.mxu0  ;;  %2306 = vmatmul.mubr.bf16.gmra.mxu0 %v6925_v1 }
 0x242   : > { %8089 = vst [vmem:[#allocation16_spill] sm:$0xff] %v6934_v60  ;;  %2313 = vmatprep.mubr.bf16.mxu0 %v6928_v21 }
 0x243   : > { %v6938_v42 = vpop.f32.mrf.mxu1  ;;  %v2117_v32 = vpop.f32.mrf.mxu0 }
 0x245   : > { %v6940_v47 = vpop.f32.mrf.mxu1  ;;  %2956 = vmatmul.mubr.bf16.gmra.mxu1 %v6798_v15  ;;  %v6943_v58 = vpop.f32.mrf.mxu0  ;;  %v1683_v15 = vld [vmem:[#allocation2 + $0x300] sm:$0xff] }
 0x246   : > { %8090 = vst [vmem:[#allocation17_spill] sm:$0xff] %v6943_v58  ;;  %2963 = vmatprep.mubr.bf16.mxu1 %v6801_v7  ;;  %v1782_v7 = vld [vmem:[#allocation2 + $0x321] sm:$0xff]  ;;  %v6965_v4 = vpack.c.bf16 %v1684_v12, %v1683_v15  ;;  %v1783_v12 = vld [vmem:[#allocation2 + $0x331] sm:$0xff] }
 0x247   : > { %v6950_v20 = vpop.f32.mrf.mxu1  ;;  %v2120_v31 = vpop.f32.mrf.mxu0  ;;  %v6968_v32 = vpack.c.bf16 %v1782_v7, %v1781_v43 }
 0x249   : > { %v6952_v41 = vpop.f32.mrf.mxu1  ;;  %v6954_v48 = vpop.f32.mrf.mxu0  ;;  %2314 = vmatmul.mubr.bf16.gmra.mxu0 %v6945_v50 }
 0x24a   : > { %8091 = vst [vmem:[#allocation18_spill] sm:$0xff] %v6954_v48  ;;  %2321 = vmatprep.mubr.bf16.mxu0 %v6948_v52  ;;  %v1686_v48 = vld [vmem:[#allocation2 + $0x320] sm:$0xff] }
 0x24b   : > { %v6958_v54 = vpop.f32.mrf.mxu1  ;;  %v2125_v16 = vpop.f32.mrf.mxu0 }
 0x24d   : > { %v6960_v22 = vpop.f32.mrf.mxu1  ;;  %2964 = vmatmul.mubr.bf16.gmra.mxu1 %v6806_v11  ;;  %v6963_v3 = vpop.f32.mrf.mxu0  ;;  %v1685_v11 = vld [vmem:[#allocation2 + $0x318] sm:$0xff] }
 0x24e   : > { %8092 = vst [vmem:[#allocation19_spill] sm:$0xff] %v6963_v3  ;;  %2971 = vmatprep.mubr.bf16.mxu1 %v6810_v23  ;;  %v1784_v23 = vld [vmem:[#allocation2 + $0x339] sm:$0xff] }
 0x24f   : > { %v6970_v9 = vpop.f32.mrf.mxu1  ;;  %v2128_v34 = vpop.f32.mrf.mxu0 }
 0x250   : > { %v6985_v34 = vpack.c.bf16 %v1686_v48, %v1685_v11  ;;  %v1817_v48 = vld [vmem:[#allocation2 + $0x1a] sm:$0xff]  ;;  %v1818_v11 = vld [vmem:[#allocation2 + $0x22] sm:$0xff] }
 0x251   : > { %v6972_v31 = vpop.f32.mrf.mxu1  ;;  %v6974_v16 = vpop.f32.mrf.mxu0  ;;  %2322 = vmatmul.mubr.bf16.gmra.mxu0 %v6965_v4 }
 0x252   : > { %8093 = vst [vmem:[#allocation20_spill] sm:$0xff] %v6974_v16  ;;  %2329 = vmatprep.mubr.bf16.mxu0 %v6968_v32  ;;  %v1816_v16 = vpack.c.bf16 %v1784_v23, %v1783_v12  ;;  %v7003_v12 = vpack.c.bf16 %v1818_v11, %v1817_v48 }
 0x253   : > { %v6978_v3 = vpop.f32.mrf.mxu1  ;;  %v2133_v15 = vpop.f32.mrf.mxu0 }
 0x254   : > { %v1687_v15 = vld [vmem:[#allocation2 + $0x330] sm:$0xff] }
 0x255   : > { %v6980_v43 = vpop.f32.mrf.mxu1  ;;  %2972 = vmatmul.mubr.bf16.gmra.mxu1 %v6816_v51  ;;  %v6983_v7 = vpop.f32.mrf.mxu0 }
 0x256   : > { %8094 = vst [vmem:[#allocation21_spill] sm:$0xff] %v6980_v43  ;;  %8095 = vst [vmem:[#allocation22_spill] sm:$0xff] %v6983_v7  ;;  %2979 = vmatprep.mubr.bf16.mxu1 %v6822_v61  ;;  %v1566_v43 = vld [vmem:[#allocation2 + $0x1ea] sm:$0xff] }
 0x257   : > { %v6988_v26 = vpop.f32.mrf.mxu1  ;;  %v2136_v58 = vpop.f32.mrf.mxu0 }
 0x258   : > { %v1720_v58 = vpack.c.bf16 %v1688_v35, %v1687_v15  ;;  %v1821_v15 = vld [vmem:[#allocation2 + $0x4a] sm:$0xff] }
 0x259   : > { %v6990_v17 = vpop.f32.mrf.mxu1  ;;  %v6992_v60 = vpop.f32.mrf.mxu0  ;;  %2330 = vmatmul.mubr.bf16.gmra.mxu0 %v6985_v34 }
 0x25a   : > { %8096 = vst [vmem:[#allocation23_spill] sm:$0xff] %v6990_v17  ;;  %8097 = vst [vmem:[#allocation24_spill] sm:$0xff] %v6992_v60  ;;  %2337 = vmatprep.mubr.bf16.mxu0 %v1816_v16  ;;  %v1565_v17 = vld [vmem:[#allocation2 + $0x1e2] sm:$0xff] }
 0x25b   : > { %v6995_v51 = vpop.f32.mrf.mxu1  ;;  %v2141_v7 = vpop.f32.mrf.mxu0 }
 0x25c   : > { %v1819_v7 = vld [vmem:[#allocation2 + $0x32] sm:$0xff] }
 0x25d   : > { %v6997_v24 = vpop.f32.mrf.mxu1  ;;  %2980 = vmatmul.mubr.bf16.gmra.mxu1 %v6828_v6  ;;  %v7000_v61 = vpop.f32.mrf.mxu0  ;;  %v1820_v6 = vld [vmem:[#allocation2 + $0x3a] sm:$0xff] }
 0x25e   : > { %8098 = vst [vmem:[#allocation25_spill] sm:$0xff] %v6997_v24  ;;  %8099 = vst [vmem:[#allocation26_spill] sm:$0xff] %v7000_v61  ;;  %2987 = vmatprep.mubr.bf16.mxu1 %v6832_v53  ;;  %v1822_v53 = vld [vmem:[#allocation2 + $0x52] sm:$0xff] }
 0x25f   : > { %v7005_v23 = vpop.f32.mrf.mxu1  ;;  %v2144_v16 = vpop.f32.mrf.mxu0 }
 0x260   : > { %8100 = vst [vmem:[#allocation27_spill] sm:$0xff] %v7005_v23  ;;  %v7019_v16 = vpack.c.bf16 %v1820_v6, %v1819_v7  ;;  %v1824_v7 = vld [vmem:[#allocation2 + $0x6a] sm:$0xff] }
 0x261   : > { %v7007_v60 = vpop.f32.mrf.mxu1  ;;  %v7009_v2 = vpop.f32.mrf.mxu0  ;;  %2338 = vmatmul.mubr.bf16.gmra.mxu0 %v1720_v58  ;;  %v7022_v58 = vpack.c.bf16 %v1822_v53, %v1821_v15  ;;  %v1825_v15 = vld [vmem:[#allocation2 + $0x7a] sm:$0xff]  ;;  %v5495_v53 = vld [vmem:[%s5788_s14 + $0xa8] sm:$0xff]  }
 0x262   : > { %8101 = vst [vmem:[#allocation28_spill] sm:$0xff] %v7007_v60  ;;  %8102 = vst [vmem:[#allocation29_spill] sm:$0xff] %v7009_v2  ;;  %5144 = vmatprep.mubr.bf16.mxu0 %v7003_v12  ;;  %v5493_v60 = vld [vmem:[%s5788_s14 + $0xb0] sm:$0xff]  }
 0x263   : > { %v7012_v49 = vpop.f32.mrf.mxu1  ;;  %v2149_v35 = vpop.f32.mrf.mxu0  ;;  %v3465_v23 = vld [vmem:[#allocation2 + $0xb1] sm:$0xff] }
 0x264   : > { %8103 = vst [vmem:[#allocation30_spill] sm:$0xff] %v7012_v49 }
 0x265   : > { %v7014_v48 = vpop.f32.mrf.mxu1  ;;  %2988 = vmatmul.mubr.bf16.gmra.mxu1 %v6838_v33  ;;  %v7017_v11 = vpop.f32.mrf.mxu0  ;;  %v1823_v33 = vld [vmem:[#allocation2 + $0x62] sm:$0xff] }
 0x266   : > { %8104 = vst [vmem:[#allocation31_spill] sm:$0xff] %v7014_v48  ;;  %8105 = vst [vmem:[#allocation32_spill] sm:$0xff] %v7017_v11  ;;  %2995 = vmatprep.mubr.bf16.mxu1 %v6841_v0 }
 0x267   : > { %v7024_v61 = vpop.f32.mrf.mxu1  ;;  %v2152_v2 = vpop.f32.mrf.mxu0 }
 0x268   : > { %8106 = vst [vmem:[#allocation33_spill] sm:$0xff] %v7024_v61  ;;  %v1826_v2 = vld [vmem:[#allocation2 + $0x82] sm:$0xff] }
 0x269   : > { %v7027_v35 = vpop.f32.mrf.mxu1  ;;  %v7029_v24 = vpop.f32.mrf.mxu0  ;;  %5145 = vmatmul.mubr.bf16.vlgmr.msra.gmra.mxu0 %v7019_v16 }
 0x26a   : > { %8107 = vst [vmem:[#allocation34_spill] sm:$0xff] %v7027_v35  ;;  %8108 = vst [vmem:[#allocation35_spill] sm:$0xff] %v7029_v24  ;;  %5209 = vmatpush3.bf16.msra.mxu0 %v6819_v44  ;;  %5148 = vmatprep.mubr.bf16.mxu0 %v7022_v58  ;;  %v7042_v35 = vpack.c.bf16 %v1824_v7, %v1823_v33  ;;  %v7045_v44 = vpack.c.bf16 %v1826_v2, %v1825_v15  ;;  %v1828_v33 = vld [vmem:[#allocation2 + $0x9a] sm:$0xff]  ;;  %v1829_v7 = vld [vmem:[#allocation2 + $0xaa] sm:$0xff] }
 0x26b   : > { %v7034_v0 = vpop.f32.mrf.mxu1  ;;  %v2157_v6 = vpop.f32.mrf.mxu0  ;;  %5210 = vmatprep.subr.bf16.mxu0 %v5493_v60  ;;  %v1830_v15 = vld [vmem:[#allocation2 + $0xb2] sm:$0xff]  ;;  %v5498_v2 = vld [vmem:[%s5788_s14 + $0x98] sm:$0xff]  }
 0x26c   : > { %8109 = vst [vmem:[#allocation36_spill] sm:$0xff] %v7034_v0  ;;  %v5496_v0 = vld [vmem:[%s5788_s14 + $0xa0] sm:$0xff]  }
 0x26d   : > { %v7037_v11 = vpop.f32.mrf.mxu1  ;;  %2996 = vmatmul.mubr.bf16.gmra.mxu1 %v6846_v55  ;;  %v7040_v24 = vpop.f32.mrf.mxu0  ;;  %v1827_v55 = vld [vmem:[#allocation2 + $0x92] sm:$0xff] }
 0x26e   : > { %8110 = vst [vmem:[#allocation37_spill] sm:$0xff] %v7037_v11  ;;  %8111 = vst [vmem:[#allocation38_spill] sm:$0xff] %v7040_v24  ;;  %3003 = vmatprep.mubr.bf16.mxu1 %v6850_v59  ;;  %5211 = vmatpush3.bf16.msra.mxu0 %v5493_v60 }
 0x26f   : > { %v7047_v48 = vpop.f32.mrf.mxu1  ;;  %v2160_v6 = vpop.f32.mrf.mxu0  ;;  %5212 = vmatprep.subr.bf16.mxu0 %v5495_v53 }
 0x270   : > { %8112 = vst [vmem:[#allocation39_spill] sm:$0xff] %v7047_v48 }
 0x271   : > { %v7050_v61 = vpop.f32.mrf.mxu1  ;;  %v7052_v11 = vpop.f32.mrf.mxu0  ;;  %5149 = vmatmul.mubr.bf16.gmra.mxu0 %v7042_v35 }
 0x272   : > { %8113 = vst [vmem:[#allocation40_spill] sm:$0xff] %v7050_v61  ;;  %8114 = vst [vmem:[#allocation41_spill] sm:$0xff] %v7052_v11  ;;  %5152 = vmatprep.mubr.bf16.mxu0 %v7045_v44  ;;  %5213 = vmatpush3.bf16.msra.mxu0 %v5495_v53  ;;  %v7064_v11 = vpack.c.bf16 %v1828_v33, %v1827_v55  ;;  %v7067_v61 = vpack.c.bf16 %v1830_v15, %v1829_v7  ;;  %v1832_v55 = vld [vmem:[#allocation2 + $0xca] sm:$0xff]  ;;  %v1834_v7 = vld [vmem:[#allocation2 + $0xe2] sm:$0xff] }
 0x273   : > { %v7056_v59 = vpop.f32.mrf.mxu1  ;;  %v2165_v60 = vpop.f32.mrf.mxu0  ;;  %5214 = vmatprep.subr.bf16.mxu0 %v5496_v0  ;;  %v5500_v15 = vld [vmem:[%s5788_s14 + $0x88] sm:$0xff]  }
 0x274   : > { %8115 = vst [vmem:[#allocation42_spill] sm:$0xff] %v7056_v59  ;;  %v5499_v59 = vld [vmem:[%s5788_s14 + $0x90] sm:$0xff]  }
 0x275   : > { %v7059_v6 = vpop.f32.mrf.mxu1  ;;  %3004 = vmatmul.mubr.bf16.gmra.mxu1 %v6856_v13  ;;  %v7062_v24 = vpop.f32.mrf.mxu0  ;;  %v1831_v13 = vld [vmem:[#allocation2 + $0xc2] sm:$0xff] }
 0x276   : > { %8116 = vst [vmem:[#allocation43_spill] sm:$0xff] %v7059_v6  ;;  %8117 = vst [vmem:[#allocation44_spill] sm:$0xff] %v7062_v24  ;;  %3011 = vmatprep.mubr.bf16.mxu1 %v6859_v27  ;;  %5215 = vmatpush3.bf16.msra.mxu0 %v5496_v0  ;;  %v1833_v0 = vld [vmem:[#allocation2 + $0xda] sm:$0xff] }
 0x277   : > { %v2815_v53 = vpop.f32.mrf.mxu1  ;;  %v2168_v60 = vpop.f32.mrf.mxu0  ;;  %5216 = vmatprep.subr.bf16.mxu0 %v5498_v2  ;;  %v7085_v24 = vpack.c.bf16 %v1834_v7, %v1833_v0  ;;  %v1837_v0 = vld [vmem:[#allocation2 + $0x10a] sm:$0xff]  ;;  %v5503_v7 = vld [vmem:[%s5788_s14 + $0x238] sm:$0xff]  }
 0x279   : > { %v7070_v48 = vpop.f32.mrf.mxu1  ;;  %v7072_v49 = vpop.f32.mrf.mxu0  ;;  %5153 = vmatmul.mubr.bf16.gmra.mxu0 %v7064_v11 }
 0x27a   : > { %8118 = vst [vmem:[#allocation45_spill] sm:$0xff] %v7070_v48  ;;  %8119 = vst [vmem:[#allocation46_spill] sm:$0xff] %v7072_v49  ;;  %5156 = vmatprep.mubr.bf16.mxu0 %v7067_v61  ;;  %5217 = vmatpush3.bf16.msra.mxu0 %v5498_v2  ;;  %v7082_v49 = vpack.c.bf16 %v1832_v55, %v1831_v13  ;;  %v1836_v13 = vld [vmem:[#allocation2 + $0xfa] sm:$0xff] }
 0x27b   : > { %v2818_v27 = vpop.f32.mrf.mxu1  ;;  %v2173_v33 = vpop.f32.mrf.mxu0  ;;  %5218 = vmatprep.subr.bf16.mxu0 %v5499_v59 }
 0x27c   : > { %v5501_v33 = vld [vmem:[%s5788_s14 + $0x80] sm:$0xff]  }
 0x27d   : > { %v7077_v53 = vpop.f32.mrf.mxu1  ;;  %3012 = vmatmul.mubr.bf16.gmra.mxu1 %v6866_v18  ;;  %v7080_v60 = vpop.f32.mrf.mxu0  ;;  %v1835_v18 = vld [vmem:[#allocation2 + $0xf2] sm:$0xff] }
 0x27e   : > { %8120 = vst [vmem:[#allocation47_spill] sm:$0xff] %v7077_v53  ;;  %8121 = vst [vmem:[#allocation48_spill] sm:$0xff] %v7080_v60  ;;  %3019 = vmatprep.mubr.bf16.mxu1 %v6870_v45  ;;  %5219 = vmatpush3.bf16.msra.mxu0 %v5499_v59  ;;  %v1838_v59 = vld [vmem:[#allocation2 + $0x112] sm:$0xff]  ;;  %v7100_v60 = vpack.c.bf16 %v1836_v13, %v1835_v18 }
 0x27f   : > { %v2823_v2 = vpop.f32.mrf.mxu1  ;;  %v2176_v27 = vpop.f32.mrf.mxu0  ;;  %5220 = vmatprep.subr.bf16.mxu0 %v5500_v15 }
 0x281   : > { %v7088_v48 = vpop.f32.mrf.mxu1  ;;  %v7090_v6 = vpop.f32.mrf.mxu0  ;;  %5157 = vmatmul.mubr.bf16.gmra.mxu0 %v7082_v49 }
 0x282   : > { %8122 = vst [vmem:[#allocation49_spill] sm:$0xff] %v7088_v48  ;;  %8123 = vst [vmem:[#allocation50_spill] sm:$0xff] %v7090_v6  ;;  %5160 = vmatprep.mubr.bf16.mxu0 %v7085_v24  ;;  %5221 = vmatpush3.bf16.msra.mxu0 %v5500_v15  ;;  %v7103_v6 = vpack.c.bf16 %v1838_v59, %v1837_v0 }
 0x283   : > { %v2826_v45 = vpop.f32.mrf.mxu1  ;;  %v2181_v55 = vpop.f32.mrf.mxu0  ;;  %5222 = vmatprep.subr.bf16.mxu0 %v5501_v33 }
 0x285   : > { %v7095_v2 = vpop.f32.mrf.mxu1  ;;  %3020 = vmatmul.mubr.bf16.gmra.mxu1 %v6887_v14  ;;  %v7098_v27 = vpop.f32.mrf.mxu0  ;;  %v1839_v14 = vld [vmem:[#allocation2 + $0x122] sm:$0xff] }
 0x286   : > { %8124 = vst [vmem:[#allocation51_spill] sm:$0xff] %v7095_v2  ;;  %8125 = vst [vmem:[#allocation52_spill] sm:$0xff] %v7098_v27  ;;  %3027 = vmatprep.mubr.bf16.mxu1 %v6889_v39  ;;  %5223 = vmatpush3.bf16.msra.mxu0 %v5501_v33  ;;  %v1840_v27 = vld [vmem:[#allocation2 + $0x12a] sm:$0xff]  ;;  %v1529_v2 = vld [vmem:[#allocation2 + $0x2] sm:$0xff] }
 0x287   : > { %v2831_v15 = vpop.f32.mrf.mxu1  ;;  %v2184_v45 = vpop.f32.mrf.mxu0  ;;  %5288 = vmatprep.subr.bf16.mxu0 %v5503_v7  ;;  %v1530_v39 = vld [vmem:[#allocation2 + $0xa] sm:$0xff]  ;;  %v7116_v59 = vpack.c.bf16 %v1840_v27, %v1839_v14 }
 0x288   : > { %v1593_v15 = vpack.c.bf16 %v1530_v39, %v1529_v2 }
 0x289   : > { %v7105_v55 = vpop.f32.mrf.mxu1  ;;  %v7107_v48 = vpop.f32.mrf.mxu0  ;;  %5161 = vmatmul.mubr.bf16.gmra.mxu0 %v7100_v60 }
 0x28a   : > { %8126 = vst [vmem:[#allocation53_spill] sm:$0xff] %v7105_v55  ;;  %5164 = vmatprep.mubr.bf16.mxu0 %v7103_v6 }
 0x28b   : > { %v2834_v18 = vpop.f32.mrf.mxu1  ;;  %v2189_v13 = vpop.f32.mrf.mxu0 }
 0x28d   : > { %v7111_v0 = vpop.f32.mrf.mxu1  ;;  %3028 = vmatmul.mubr.bf16.gmra.mxu1 %v6905_v62  ;;  %v7114_v33 = vpop.f32.mrf.mxu0 }
 0x28e   : > { %8127 = vst [vmem:[#allocation54_spill] sm:$0xff] %v7111_v0  ;;  %3035 = vmatprep.mubr.bf16.mxu1 %v6908_v36 }
 0x28f   : > { %v2839_v45 = vpop.f32.mrf.mxu1  ;;  %v2192_v55 = vpop.f32.mrf.mxu0 }
 0x290   : > { %v5504_v55 = vld [vmem:[%s5788_s14 + $0x230] sm:$0xff]  }
 0x291   : > { %v7119_v53 = vpop.f32.mrf.mxu1  ;;  %v7121_v18 = vpop.f32.mrf.mxu0  ;;  %5165 = vmatmul.mubr.bf16.gmra.mxu0 %v7116_v59 }
 0x292   : > { %8128 = vst [vmem:[#allocation55_spill] sm:$0xff] %v7119_v53  ;;  %5224 = vmatprep.mubr.bf16.mxu0 %v1593_v15 }
 0x293   : > { %v2842_v13 = vpop.f32.mrf.mxu1  ;;  %v2197_v0 = vpop.f32.mrf.mxu0 }
 0x295   : > { %v7124_v62 = vpop.f32.mrf.mxu1  ;;  %3036 = vmatmul.mubr.bf16.gmra.mxu1 %v6925_v1  ;;  %v7127_v27 = vpop.f32.mrf.mxu0  ;;  %v5505_v1 = vld [vmem:[%s5788_s14 + $0x228] sm:$0xff]  }
 0x296   : > { %8129 = vst [vmem:[#allocation56_spill] sm:$0xff] %v7124_v62  ;;  %3043 = vmatprep.mubr.bf16.mxu1 %v6928_v21 }
 0x297   : > { %v2847_v36 = vpop.f32.mrf.mxu1  ;;  %v2200_v2 = vpop.f32.mrf.mxu0 }
 0x299   : > { %v7131_v14 = vpop.f32.mrf.mxu1  ;;  %v7133_v39 = vpop.f32.mrf.mxu0  ;;  %5225 = vmatmul.mubr.bf16.vlgmr.msra.gmra.mxu0 %v7003_v12  ;;  %v5506_v12 = vld [vmem:[%s5788_s14 + $0x220] sm:$0xff]  }
 0x29a   : > { %8130 = vst [vmem:[#allocation57_spill] sm:$0xff] %v7131_v14  ;;  %5289 = vmatpush3.bf16.msra.mxu0 %v5503_v7  ;;  %5228 = vmatprep.mubr.bf16.mxu0 %v7019_v16 }
 0x29b   : > { %v2850_v0 = vpop.f32.mrf.mxu1  ;;  %v2205_v15 = vpop.f32.mrf.mxu0  ;;  %5290 = vmatprep.subr.bf16.mxu0 %v5504_v55 }
 0x29c   : > { %v5507_v0 = vld [vmem:[%s5788_s14 + $0x218] sm:$0xff]  }
 0x29d   : > { %v7138_v45 = vpop.f32.mrf.mxu1  ;;  %3044 = vmatmul.mubr.bf16.gmra.mxu1 %v6945_v50  ;;  %v7141_v21 = vpop.f32.mrf.mxu0 }
 0x29e   : > { %8131 = vst [vmem:[#allocation58_spill] sm:$0xff] %v7138_v45  ;;  %3051 = vmatprep.mubr.bf16.mxu1 %v6948_v52  ;;  %5291 = vmatpush3.bf16.msra.mxu0 %v5504_v55 }
 0x29f   : > { %v2855_v13 = vpop.f32.mrf.mxu1  ;;  %v2208_v36 = vpop.f32.mrf.mxu0  ;;  %5292 = vmatprep.subr.bf16.mxu0 %v5505_v1 }
 0x2a0   : > { %v3455_v13 = vld [vmem:[#allocation2 + $0x39] sm:$0xff] }
 0x2a1   : > { %v7145_v7 = vpop.f32.mrf.mxu1  ;;  %v7147_v16 = vpop.f32.mrf.mxu0  ;;  %5229 = vmatmul.mubr.bf16.gmra.mxu0 %v7022_v58  ;;  %v3454_v58 = vld [vmem:[#allocation2 + $0x31] sm:$0xff] }
 0x2a2   : > { %8132 = vst [vmem:[#allocation59_spill] sm:$0xff] %v7145_v7  ;;  %5232 = vmatprep.mubr.bf16.mxu0 %v7042_v35  ;;  %5293 = vmatpush3.bf16.msra.mxu0 %v5505_v1  ;;  %v5508_v1 = vld [vmem:[%s5788_s14 + $0x210] sm:$0xff]   ;;  %v3459_v7 = vld [vmem:[#allocation2 + $0x69] sm:$0xff] }
 0x2a3   : > { %v2858_v50 = vpop.f32.mrf.mxu1  ;;  %v2213_v2 = vpop.f32.mrf.mxu0  ;;  %5294 = vmatprep.subr.bf16.mxu0 %v5506_v12 }
 0x2a4   : > { %v3518_v2 = vpack.c.bf16 %v3455_v13, %v3454_v58  ;;  %v3456_v58 = vld [vmem:[#allocation2 + $0x49] sm:$0xff]  ;;  %v3457_v13 = vld [vmem:[#allocation2 + $0x51] sm:$0xff] }
 0x2a5   : > { %v7152_v52 = vpop.f32.mrf.mxu1  ;;  %3052 = vmatmul.mubr.bf16.gmra.mxu1 %v6965_v4  ;;  %v7155_v55 = vpop.f32.mrf.mxu0 }
 0x2a6   : > { %8133 = vst [vmem:[#allocation60_spill] sm:$0xff] %v7152_v52  ;;  %3059 = vmatprep.mubr.bf16.mxu1 %v6968_v32  ;;  %5295 = vmatpush3.bf16.msra.mxu0 %v5506_v12  ;;  %v5509_v12 = vld [vmem:[%s5788_s14 + $0x208] sm:$0xff]   ;;  %v3359_v52 = vld [vmem:[#allocation2 + $0x38] sm:$0xff] }
 0x2a7   : > { %v2863_v15 = vpop.f32.mrf.mxu1  ;;  %v2216_v35 = vpop.f32.mrf.mxu0  ;;  %5296 = vmatprep.subr.bf16.mxu0 %v5507_v0 }
 0x2a9   : > { %v7159_v36 = vpop.f32.mrf.mxu1  ;;  %v7161_v50 = vpop.f32.mrf.mxu0  ;;  %5233 = vmatmul.mubr.bf16.gmra.mxu0 %v7045_v44 }
 0x2aa   : > { %8134 = vst [vmem:[#allocation61_spill] sm:$0xff] %v7159_v36  ;;  %5236 = vmatprep.mubr.bf16.mxu0 %v7064_v11  ;;  %5297 = vmatpush3.bf16.msra.mxu0 %v5507_v0  ;;  %v3358_v36 = vld [vmem:[#allocation2 + $0x30] sm:$0xff]  ;;  %v5510_v0 = vld [vmem:[%s5788_s14 + $0x200] sm:$0xff]   ;;  %s5676_s14 = smov [#allocation7]  }
 0x2ab   : > { %v2866_v4 = vpop.f32.mrf.mxu1  ;;  %v2221_v32 = vpop.f32.mrf.mxu0  ;;  %5298 = vmatprep.subr.bf16.mxu0 %v5508_v1  ;;  %s4845_s6 = sshll.u32 %s5676_s14, 4  ;;  %s4846_s6 = int_to_ptr.vmem [resolvable:$true] %s4845_s6 }
 0x2ac   : > { %v3422_v32 = vpack.c.bf16 %v3359_v52, %v3358_v36  ;;  %v3458_v36 = vld [vmem:[#allocation2 + $0x61] sm:$0xff]  ;;  %s5607_s11 = scalar_lea.vmem %s4846_s6, 8192  ;;  %p5614_p5 = scmp.lt.s32.totalorder %s4846_s6, %s4846_s6 }
 0x2ad   : > { %v7166_v15 = vpop.f32.mrf.mxu1  ;;  %3060 = vmatmul.mubr.bf16.gmra.mxu1 %v6985_v34  ;;  %v7169_v35 = vpop.f32.mrf.mxu0  ;;  %v3519_v34 = vpack.c.bf16 %v3457_v13, %v3456_v58  ;;  %p5608_p2 = scmp.ne.s32.totalorder %s4846_s6, %s5607_s11  ;;  %p5615_p6 = scmp.lt.s32.totalorder %s5607_s11, %s5607_s11 }
 0x2ae   : > { %8135 = vst [vmem:[#allocation62_spill] sm:$0xff] %v7166_v15  ;;  %3822 = vmatprep.mubr.bf16.mxu1 %v3518_v2  ;;  %5299 = vmatpush3.bf16.msra.mxu0 %v5508_v1 }
 0x2af   : > { %v2871_v44 = vpop.f32.mrf.mxu1  ;;  %v2224_v11 = vpop.f32.mrf.mxu0  ;;  %5300 = vmatprep.subr.bf16.mxu0 %v5509_v12  ;;  %p5609_p3 = pnand %p5608_p2, %p5398_p1  ;;  %p5616_p10 = por %p5615_p6, %p5614_p5 }
 0x2b0   : > { %v3360_v11 = vld [vmem:[#allocation2 + $0x48] sm:$0xff] }
 0x2b1   : > { %v7172_v4 = vpop.f32.mrf.mxu1  ;;  %v7174_v14 = vpop.f32.mrf.mxu0  ;;  %5237 = vmatmul.mubr.bf16.gmra.mxu0 %v7067_v61  ;;  %p5610_p4 = pneg %p5609_p3 }
 0x2b2   : > { %8136 = vst [vmem:[#allocation63_spill] sm:$0xff] %v7172_v4  ;;  %5240 = vmatprep.mubr.bf16.mxu0 %v7082_v49  ;;  %5301 = vmatpush3.bf16.msra.mxu0 %v5509_v12  ;;  %v3361_v4 = vld [vmem:[#allocation2 + $0x50] sm:$0xff] }
 0x2b3   : > { %v2874_v2 = vpop.f32.mrf.mxu1  ;;  %v2229_v15 = vpop.f32.mrf.mxu0  ;;  %5302 = vmatprep.subr.bf16.mxu0 %v5510_v0  ;;  %v3423_v49 = vpack.c.bf16 %v3361_v4, %v3360_v11  ;;  %v3461_v4 = vld [vmem:[#allocation2 + $0x81] sm:$0xff]  ;;  %p5617_p12 = pnand %p5616_p10, %p5610_p4 }
 0x2b4   : > { %v3520_v15 = vpack.c.bf16 %v3459_v7, %v3458_v36  ;;  %v3362_v2 = vld [vmem:[#allocation2 + $0x60] sm:$0xff] }
 0x2b5   : > { %v7178_v1 = vpop.f32.mrf.mxu1  ;;  %3823 = vmatmul.mubr.bf16.vlgmr.msra.gmra.mxu1 %v3422_v32  ;;  %v7180_v44 = vpop.f32.mrf.mxu0  ;;  %v1555_v36 = vld [vmem:[#allocation2 + $0x13a] sm:$0xff] }
 0x2b6   : > { %8137 = vst [vmem:[#allocation64_spill] sm:$0xff] %v7178_v1  ;;  %3830 = vmatprep.mubr.bf16.mxu1 %v3519_v34  ;;  %5303 = vmatpush3.bf16.msra.mxu0 %v5510_v0 }
 0x2b7   : > { %v2879_v52 = vpop.f32.mrf.mxu1  ;;  %v2232_v61 = vpop.f32.mrf.mxu0 }
 0x2b8   : > { %v3363_v52 = vld [vmem:[#allocation2 + $0x68] sm:$0xff] }
 0x2b9   : > { %v7182_v58 = vpop.f32.mrf.mxu1  ;;  %v7184_v12 = vpop.f32.mrf.mxu0  ;;  %5241 = vmatmul.mubr.bf16.gmra.mxu0 %v7085_v24  ;;  %v3424_v24 = vpack.c.bf16 %v3363_v52, %v3362_v2  ;;  %v3364_v2 = vld [vmem:[#allocation2 + $0x78] sm:$0xff]  ;;  %v3365_v52 = vld [vmem:[#allocation2 + $0x80] sm:$0xff] }
 0x2ba   : > { %8138 = vst [vmem:[#allocation65_spill] sm:$0xff] %v7182_v58  ;;  %5244 = vmatprep.mubr.bf16.mxu0 %v7100_v60  ;;  %v3460_v58 = vld [vmem:[#allocation2 + $0x79] sm:$0xff] }
 0x2bb   : > { %v2882_v13 = vpop.f32.mrf.mxu1  ;;  %v2237_v32 = vpop.f32.mrf.mxu0  ;;  %v3521_v60 = vpack.c.bf16 %v3461_v4, %v3460_v58  ;;  %v3463_v4 = vld [vmem:[#allocation2 + $0x99] sm:$0xff] }
 0x2bc   : > { %v1557_v32 = vld [vmem:[#allocation2 + $0x152] sm:$0xff] }
 0x2bd   : > { %v7188_v34 = vpop.f32.mrf.mxu1  ;;  %3831 = vmatmul.mubr.bf16.gmra.mxu1 %v3423_v49  ;;  %v7190_v0 = vpop.f32.mrf.mxu0  ;;  %v1556_v49 = vld [vmem:[#allocation2 + $0x142] sm:$0xff] }
 0x2be   : > { %8139 = vst [vmem:[#allocation66_spill] sm:$0xff] %v7188_v34  ;;  %3838 = vmatprep.mubr.bf16.mxu1 %v3520_v15  ;;  %v1558_v34 = vld [vmem:[#allocation2 + $0x15a] sm:$0xff] }
 0x2bf   : > { %v2887_v61 = vpop.f32.mrf.mxu1  ;;  %v2240_v11 = vpop.f32.mrf.mxu0 }
 0x2c1   : > { %v7192_v1 = vpop.f32.mrf.mxu1  ;;  %v7194_v7 = vpop.f32.mrf.mxu0  ;;  %5245 = vmatmul.mubr.bf16.gmra.mxu0 %v7103_v6  ;;  %v7204_v6 = vpack.c.bf16 %v1558_v34, %v1557_v32  ;;  %v1561_v34 = vld [vmem:[#allocation2 + $0x1b2] sm:$0xff]  ;;  %v1562_v32 = vld [vmem:[#allocation2 + $0x1ba] sm:$0xff] }
 0x2c2   : > { %8140 = vst [vmem:[#allocation67_spill] sm:$0xff] %v7192_v1  ;;  %5248 = vmatprep.mubr.bf16.mxu0 %v7116_v59  ;;  %v7202_v1 = vpack.c.bf16 %v1556_v49, %v1555_v36  ;;  %v3462_v59 = vld [vmem:[#allocation2 + $0x91] sm:$0xff]  ;;  %v1609_v53 = vpack.c.bf16 %v1562_v32, %v1561_v34  ;;  %v2477_v34 = vadd.f32 %v6872_v25, %v7107_v48 }
 0x2c3   : > { %v2890_v13 = vpop.f32.mrf.mxu1  ;;  %v2245_v15 = vpop.f32.mrf.mxu0  ;;  %8143 = vst [vmem:[#allocation70_spill] sm:$0xff] %v7204_v6  ;;  %v1559_v36 = vld [vmem:[#allocation2 + $0x16a] sm:$0xff] }
 0x2c4   : > { %8142 = vst [vmem:[#allocation69_spill] sm:$0xff] %v7202_v1  ;;  %v3425_v15 = vpack.c.bf16 %v3365_v52, %v3364_v2  ;;  %v3366_v2 = vld [vmem:[#allocation2 + $0x90] sm:$0xff]  ;;  %v3367_v52 = vld [vmem:[#allocation2 + $0x98] sm:$0xff] }
 0x2c5   : > { %v7198_v61 = vpop.f32.mrf.mxu1  ;;  %3839 = vmatmul.mubr.bf16.gmra.mxu1 %v3424_v24  ;;  %v7200_v11 = vpop.f32.mrf.mxu0  ;;  %v3522_v24 = vpack.c.bf16 %v3463_v4, %v3462_v59  ;;  %v3464_v4 = vld [vmem:[#allocation2 + $0xa9] sm:$0xff] }
 0x2c6   : > { %8141 = vst [vmem:[#allocation68_spill] sm:$0xff] %v7198_v61  ;;  %3846 = vmatprep.mubr.bf16.mxu1 %v3521_v60  ;;  %v1560_v60 = vld [vmem:[#allocation2 + $0x172] sm:$0xff] }
 0x2c7   : > { %v2895_v58 = vpop.f32.mrf.mxu1  ;;  %v2248_v62 = vpop.f32.mrf.mxu0 }
 0x2c9   : > { %v7206_v13 = vpop.f32.mrf.mxu1  ;;  %v7208_v45 = vpop.f32.mrf.mxu0  ;;  %5249 = vmatmul.mubr.bf16.gmra.mxu0 %v7202_v1 }
 0x2ca   : > { %8144 = vst [vmem:[#allocation71_spill] sm:$0xff] %v7206_v13  ;;  %5252 = vmatprep.mubr.bf16.mxu0 %v7204_v6  ;;  %v7216_v13 = vpack.c.bf16 %v1560_v60, %v1559_v36  ;;  %v1564_v36 = vld [vmem:[#allocation2 + $0x1d2] sm:$0xff] }
 0x2cb   : > { %v2898_v49 = vpop.f32.mrf.mxu1  ;;  %v2253_v61 = vpop.f32.mrf.mxu0 }
 0x2cc   : > { %8146 = vst [vmem:[#allocation73_spill] sm:$0xff] %v7216_v13  ;;  %v3426_v61 = vpack.c.bf16 %v3367_v52, %v3366_v2 }
 0x2cd   : > { %v7212_v58 = vpop.f32.mrf.mxu1  ;;  %3847 = vmatmul.mubr.bf16.gmra.mxu1 %v3425_v15  ;;  %v7214_v62 = vpop.f32.mrf.mxu0  ;;  %v3523_v15 = vpack.c.bf16 %v3465_v23, %v3464_v4  ;;  %v3369_v23 = vld [vmem:[#allocation2 + $0xb0] sm:$0xff] }
 0x2ce   : > { %8145 = vst [vmem:[#allocation72_spill] sm:$0xff] %v7212_v58  ;;  %3854 = vmatprep.mubr.bf16.mxu1 %v3522_v24  ;;  %v1563_v58 = vld [vmem:[#allocation2 + $0x1ca] sm:$0xff] }
 0x2cf   : > { %v2903_v59 = vpop.f32.mrf.mxu1  ;;  %v2256_v6 = vpop.f32.mrf.mxu0  ;;  %v1610_v2 = vpack.c.bf16 %v1564_v36, %v1563_v58 }
 0x2d0   : > { %v3368_v59 = vld [vmem:[#allocation2 + $0xa8] sm:$0xff] }
 0x2d1   : > { %v7218_v1 = vpop.f32.mrf.mxu1  ;;  %v7220_v49 = vpop.f32.mrf.mxu0  ;;  %5253 = vmatmul.mubr.bf16.gmra.mxu0 %v7216_v13  ;;  %v2480_v13 = vadd.f32 %v6880_v57, %v7114_v33  ;;  %v3427_v48 = vpack.c.bf16 %v3369_v23, %v3368_v59  ;;  %v3371_v23 = vld [vmem:[#allocation2 + $0xc8] sm:$0xff] }
 0x2d2   : > { %8147 = vst [vmem:[#allocation74_spill] sm:$0xff] %v7218_v1  ;;  %5256 = vmatprep.mubr.bf16.mxu0 %v1609_v53  ;;  %v7229_v53 = vpack.c.bf16 %v1566_v43, %v1565_v17  ;;  %v1568_v17 = vld [vmem:[#allocation2 + $0x202] sm:$0xff] }
 0x2d3   : > { %v2906_v60 = vpop.f32.mrf.mxu1  ;;  %v2261_v24 = vpop.f32.mrf.mxu0 }
 0x2d4   : > { %v3466_v60 = vld [vmem:[#allocation2 + $0xc1] sm:$0xff]  ;;  %v3467_v24 = vld [vmem:[#allocation2 + $0xc9] sm:$0xff] }
 0x2d5   : > { %v2909_v32 = vpop.f32.mrf.mxu1  ;;  %3855 = vmatmul.mubr.bf16.gmra.mxu1 %v3426_v61  ;;  %v7225_v6 = vpop.f32.mrf.mxu0  ;;  %v3524_v36 = vpack.c.bf16 %v3467_v24, %v3466_v60 }
 0x2d6   : > { %v7227_v52 = vadd.f32 %v2909_v32, %v2477_v34  ;;  %3862 = vmatprep.mubr.bf16.mxu1 %v3523_v15  ;;  %v1567_v15 = vld [vmem:[#allocation2 + $0x1fa] sm:$0xff]  ;;  %v1569_v32 = vld [vmem:[#allocation2 + $0x212] sm:$0xff] }
 0x2d7   : > { %v2911_v4 = vpop.f32.mrf.mxu1  ;;  %v2264_v1 = vpop.f32.mrf.mxu0  ;;  %v7242_v59 = vpack.c.bf16 %v1568_v17, %v1567_v15  ;;  %v1571_v17 = vld [vmem:[#allocation2 + $0x22a] sm:$0xff] }
 0x2d8   : > { %8148 = vst [vmem:[#allocation75_spill] sm:$0xff] %v7227_v52  ;;  %v1570_v4 = vld [vmem:[#allocation2 + $0x21a] sm:$0xff]  ;;  %v2485_v1 = vadd.f32 %v6863_v37, %v7121_v18  ;;  %v2488_v37 = vadd.f32 %v6874_v29, %v7127_v27  ;;  %v2493_v29 = vadd.f32 %v6891_v30, %v7133_v39  ;;  %v2496_v30 = vadd.f32 %v6899_v19, %v7141_v21 }
 0x2d9   : > { %v2912_v25 = vpop.f32.mrf.mxu1  ;;  %v7233_v61 = vpop.f32.mrf.mxu0  ;;  %5257 = vmatmul.mubr.bf16.gmra.mxu0 %v1610_v2  ;;  %v3370_v2 = vld [vmem:[#allocation2 + $0xc0] sm:$0xff]  ;;  %v7246_v60 = vpack.c.bf16 %v1570_v4, %v1569_v32  ;;  %v1572_v32 = vld [vmem:[#allocation2 + $0x232] sm:$0xff]  ;;  %v2501_v19 = vadd.f32 %v6882_v8, %v7147_v16  ;;  %v2504_v8 = vadd.f32 %v6893_v38, %v7155_v55  ;;  %v2509_v38 = vadd.f32 %v6910_v63, %v7161_v50 }
 0x2da   : > { %v7235_v58 = vadd.f32 %v2912_v25, %v2480_v13  ;;  %5260 = vmatprep.mubr.bf16.mxu0 %v7229_v53  ;;  %v3468_v25 = vld [vmem:[#allocation2 + $0xd9] sm:$0xff]  ;;  %v2512_v63 = vadd.f32 %v6918_v56, %v7169_v35  ;;  %v2517_v56 = vadd.f32 %v6901_v40, %v7174_v14  ;;  %v2520_v40 = vadd.f32 %v6912_v5, %v7180_v44 }
 0x2db   : > { %v2914_v43 = vpop.f32.mrf.mxu1  ;;  %v2269_v34 = vpop.f32.mrf.mxu0  ;;  %v2525_v5 = vadd.f32 %v6930_v46, %v7184_v12  ;;  %v2528_v46 = vadd.f32 %v6938_v42, %v7190_v0  ;;  %v2533_v42 = vadd.f32 %v6920_v10, %v7194_v7 }
 0x2dc   : > { %8149 = vst [vmem:[#allocation76_spill] sm:$0xff] %v7235_v58  ;;  %v3469_v43 = vld [vmem:[#allocation2 + $0xe1] sm:$0xff] }
 0x2dd   : > { %v2917_v57 = vpop.f32.mrf.mxu1  ;;  %3863 = vmatmul.mubr.bf16.gmra.mxu1 %v3427_v48  ;;  %v7240_v33 = vpop.f32.mrf.mxu0  ;;  %v3428_v48 = vpack.c.bf16 %v3371_v23, %v3370_v2  ;;  %v7260_v23 = vpack.c.bf16 %v1572_v32, %v1571_v17  ;;  %v1575_v32 = vld [vmem:[#allocation2 + $0x25a] sm:$0xff] }
 0x2de   : > { %v7244_v13 = vadd.f32 %v2917_v57, %v2485_v1  ;;  %3870 = vmatprep.mubr.bf16.mxu1 %v3524_v36  ;;  %v3525_v36 = vpack.c.bf16 %v3469_v43, %v3468_v25  ;;  %v1573_v57 = vld [vmem:[#allocation2 + $0x242] sm:$0xff]  ;;  %v3372_v25 = vld [vmem:[#allocation2 + $0xd8] sm:$0xff] }
 0x2df   : > { %v2919_v24 = vpop.f32.mrf.mxu1  ;;  %v2272_v34 = vpop.f32.mrf.mxu0  ;;  %v3373_v43 = vld [vmem:[#allocation2 + $0xe0] sm:$0xff] }
 0x2e0   : > { %v1574_v24 = vld [vmem:[#allocation2 + $0x24a] sm:$0xff] }
 0x2e1   : > { %v2920_v18 = vpop.f32.mrf.mxu1  ;;  %v7250_v58 = vpop.f32.mrf.mxu0  ;;  %5261 = vmatmul.mubr.bf16.gmra.mxu0 %v7242_v59 }
 0x2e2   : > { %v7253_v15 = vadd.f32 %v2920_v18, %v2488_v37  ;;  %5264 = vmatprep.mubr.bf16.mxu0 %v7246_v60  ;;  %v7264_v37 = vpack.c.bf16 %v1574_v24, %v1573_v57  ;;  %v1576_v57 = vld [vmem:[#allocation2 + $0x262] sm:$0xff] }
 0x2e3   : > { %v2922_v4 = vpop.f32.mrf.mxu1  ;;  %v2277_v1 = vpop.f32.mrf.mxu0 }
 0x2e4   : > { %8150 = vst [vmem:[#allocation77_spill] sm:$0xff] %v7253_v15  ;;  %v3470_v4 = vld [vmem:[#allocation2 + $0xf1] sm:$0xff]  ;;  %v3471_v1 = vld [vmem:[#allocation2 + $0xf9] sm:$0xff] }
 0x2e5   : > { %v2925_v27 = vpop.f32.mrf.mxu1  ;;  %3871 = vmatmul.mubr.bf16.gmra.mxu1 %v3428_v48  ;;  %v7258_v2 = vpop.f32.mrf.mxu0  ;;  %v3429_v48 = vpack.c.bf16 %v3373_v43, %v3372_v25  ;;  %v7278_v43 = vpack.c.bf16 %v1576_v57, %v1575_v32  ;;  %v1579_v57 = vld [vmem:[#allocation2 + $0x28a] sm:$0xff] }
 0x2e6   : > { %v7262_v34 = vadd.f32 %v2925_v27, %v2493_v29  ;;  %3878 = vmatprep.mubr.bf16.mxu1 %v3525_v36  ;;  %v3526_v36 = vpack.c.bf16 %v3471_v1, %v3470_v4  ;;  %v1577_v27 = vld [vmem:[#allocation2 + $0x272] sm:$0xff] }
 0x2e7   : > { %v2927_v18 = vpop.f32.mrf.mxu1  ;;  %v2280_v15 = vpop.f32.mrf.mxu0  ;;  %v3374_v4 = vld [vmem:[#allocation2 + $0xf0] sm:$0xff]  ;;  %v3375_v1 = vld [vmem:[#allocation2 + $0xf8] sm:$0xff] }
 0x2e8   : > { %8151 = vst [vmem:[#allocation78_spill] sm:$0xff] %v7262_v34  ;;  %v1578_v15 = vld [vmem:[#allocation2 + $0x27a] sm:$0xff] }
 0x2e9   : > { %v2928_v39 = vpop.f32.mrf.mxu1  ;;  %v7268_v52 = vpop.f32.mrf.mxu0  ;;  %5265 = vmatmul.mubr.bf16.gmra.mxu0 %v7260_v23 }
 0x2ea   : > { %v7271_v17 = vadd.f32 %v2928_v39, %v2496_v30  ;;  %5268 = vmatprep.mubr.bf16.mxu0 %v7264_v37  ;;  %v7282_v30 = vpack.c.bf16 %v1578_v15, %v1577_v27  ;;  %v1580_v27 = vld [vmem:[#allocation2 + $0x292] sm:$0xff] }
 0x2eb   : > { %v2930_v24 = vpop.f32.mrf.mxu1  ;;  %v2285_v29 = vpop.f32.mrf.mxu0 }
 0x2ec   : > { %8152 = vst [vmem:[#allocation79_spill] sm:$0xff] %v7271_v17  ;;  %v3472_v24 = vld [vmem:[#allocation2 + $0x109] sm:$0xff]  ;;  %v3473_v29 = vld [vmem:[#allocation2 + $0x111] sm:$0xff] }
 0x2ed   : > { %v2933_v21 = vpop.f32.mrf.mxu1  ;;  %3879 = vmatmul.mubr.bf16.gmra.mxu1 %v3429_v48  ;;  %v7276_v25 = vpop.f32.mrf.mxu0  ;;  %v3430_v48 = vpack.c.bf16 %v3375_v1, %v3374_v4  ;;  %v7296_v1 = vpack.c.bf16 %v1580_v27, %v1579_v57  ;;  %v1583_v27 = vld [vmem:[#allocation2 + $0x2ba] sm:$0xff] }
 0x2ee   : > { %v7280_v18 = vadd.f32 %v2933_v21, %v2501_v19  ;;  %3886 = vmatprep.mubr.bf16.mxu1 %v3526_v36  ;;  %v3527_v36 = vpack.c.bf16 %v3473_v29, %v3472_v24  ;;  %v1581_v21 = vld [vmem:[#allocation2 + $0x2a2] sm:$0xff]  ;;  %v3377_v29 = vld [vmem:[#allocation2 + $0x110] sm:$0xff] }
 0x2ef   : > { %v2935_v39 = vpop.f32.mrf.mxu1  ;;  %v2288_v17 = vpop.f32.mrf.mxu0  ;;  %v3376_v24 = vld [vmem:[#allocation2 + $0x108] sm:$0xff] }
 0x2f0   : > { %8153 = vst [vmem:[#allocation80_spill] sm:$0xff] %v7280_v18  ;;  %v1582_v17 = vld [vmem:[#allocation2 + $0x2aa] sm:$0xff] }
 0x2f1   : > { %v2936_v16 = vpop.f32.mrf.mxu1  ;;  %v7286_v34 = vpop.f32.mrf.mxu0  ;;  %5269 = vmatmul.mubr.bf16.gmra.mxu0 %v7278_v43 }
 0x2f2   : > { %v7289_v32 = vadd.f32 %v2936_v16, %v2504_v8  ;;  %5272 = vmatprep.mubr.bf16.mxu0 %v7282_v30  ;;  %v7300_v8 = vpack.c.bf16 %v1582_v17, %v1581_v21  ;;  %v1584_v21 = vld [vmem:[#allocation2 + $0x2c2] sm:$0xff] }
 0x2f3   : > { %v2938_v15 = vpop.f32.mrf.mxu1  ;;  %v2293_v19 = vpop.f32.mrf.mxu0 }
 0x2f4   : > { %8154 = vst [vmem:[#allocation81_spill] sm:$0xff] %v7289_v32  ;;  %v3474_v15 = vld [vmem:[#allocation2 + $0x121] sm:$0xff]  ;;  %v3475_v19 = vld [vmem:[#allocation2 + $0x129] sm:$0xff] }
 0x2f5   : > { %v2941_v55 = vpop.f32.mrf.mxu1  ;;  %3887 = vmatmul.mubr.bf16.gmra.mxu1 %v3430_v48  ;;  %v7294_v4 = vpop.f32.mrf.mxu0  ;;  %v3431_v48 = vpack.c.bf16 %v3377_v29, %v3376_v24  ;;  %v7314_v29 = vpack.c.bf16 %v1584_v21, %v1583_v27  ;;  %v1587_v21 = vld [vmem:[#allocation2 + $0x2ea] sm:$0xff] }
 0x2f6   : > { %v7298_v39 = vadd.f32 %v2941_v55, %v2509_v38  ;;  %3894 = vmatprep.mubr.bf16.mxu1 %v3527_v36  ;;  %v3528_v36 = vpack.c.bf16 %v3475_v19, %v3474_v15  ;;  %v1585_v55 = vld [vmem:[#allocation2 + $0x2d2] sm:$0xff]  ;;  %v3378_v15 = vld [vmem:[#allocation2 + $0x120] sm:$0xff]  ;;  %v3379_v19 = vld [vmem:[#allocation2 + $0x128] sm:$0xff] }
 0x2f7   : > { %v2943_v16 = vpop.f32.mrf.mxu1  ;;  %v2296_v32 = vpop.f32.mrf.mxu0 }
 0x2f8   : > { %8155 = vst [vmem:[#allocation82_spill] sm:$0xff] %v7298_v39  ;;  %v1586_v32 = vld [vmem:[#allocation2 + $0x2da] sm:$0xff] }
 0x2f9   : > { %v2944_v50 = vpop.f32.mrf.mxu1  ;;  %v7304_v18 = vpop.f32.mrf.mxu0  ;;  %5273 = vmatmul.mubr.bf16.gmra.mxu0 %v7296_v1 }
 0x2fa   : > { %v7307_v57 = vadd.f32 %v2944_v50, %v2512_v63  ;;  %5276 = vmatprep.mubr.bf16.mxu0 %v7300_v8  ;;  %v7318_v63 = vpack.c.bf16 %v1586_v32, %v1585_v55  ;;  %v1588_v55 = vld [vmem:[#allocation2 + $0x2f2] sm:$0xff] }
 0x2fb   : > { %v2946_v17 = vpop.f32.mrf.mxu1  ;;  %v2301_v38 = vpop.f32.mrf.mxu0 }
 0x2fc   : > { %8156 = vst [vmem:[#allocation83_spill] sm:$0xff] %v7307_v57  ;;  %v3476_v17 = vld [vmem:[#allocation2 + $0x139] sm:$0xff]  ;;  %v3477_v38 = vld [vmem:[#allocation2 + $0x141] sm:$0xff] }
 0x2fd   : > { %v2949_v35 = vpop.f32.mrf.mxu1  ;;  %3895 = vmatmul.mubr.bf16.gmra.mxu1 %v3431_v48  ;;  %v7312_v24 = vpop.f32.mrf.mxu0  ;;  %v3432_v48 = vpack.c.bf16 %v3379_v19, %v3378_v15  ;;  %v7332_v19 = vpack.c.bf16 %v1588_v55, %v1587_v21  ;;  %v1591_v55 = vld [vmem:[#allocation2 + $0x31a] sm:$0xff] }
 0x2fe   : > { %v7316_v16 = vadd.f32 %v2949_v35, %v2517_v56  ;;  %3902 = vmatprep.mubr.bf16.mxu1 %v3528_v36  ;;  %v3529_v36 = vpack.c.bf16 %v3477_v38, %v3476_v17  ;;  %v1589_v35 = vld [vmem:[#allocation2 + $0x302] sm:$0xff]  ;;  %v3380_v17 = vld [vmem:[#allocation2 + $0x138] sm:$0xff] }
 0x2ff   : > { %v2951_v50 = vpop.f32.mrf.mxu1  ;;  %v2304_v57 = vpop.f32.mrf.mxu0  ;;  %v3381_v38 = vld [vmem:[#allocation2 + $0x140] sm:$0xff] }
 0x300   : > { %8157 = vst [vmem:[#allocation84_spill] sm:$0xff] %v7316_v16  ;;  %v1590_v57 = vld [vmem:[#allocation2 + $0x30a] sm:$0xff] }
 0x301   : > { %v2952_v14 = vpop.f32.mrf.mxu1  ;;  %v7322_v39 = vpop.f32.mrf.mxu0  ;;  %5277 = vmatmul.mubr.bf16.gmra.mxu0 %v7314_v29 }
 0x302   : > { %v7325_v27 = vadd.f32 %v2952_v14, %v2520_v40  ;;  %5280 = vmatprep.mubr.bf16.mxu0 %v7318_v63  ;;  %v7336_v40 = vpack.c.bf16 %v1590_v57, %v1589_v35  ;;  %v1592_v35 = vld [vmem:[#allocation2 + $0x322] sm:$0xff] }
 0x303   : > { %v2954_v32 = vpop.f32.mrf.mxu1  ;;  %v2309_v56 = vpop.f32.mrf.mxu0 }
 0x304   : > { %8158 = vst [vmem:[#allocation85_spill] sm:$0xff] %v7325_v27  ;;  %v3478_v32 = vld [vmem:[#allocation2 + $0x151] sm:$0xff]  ;;  %v3479_v56 = vld [vmem:[#allocation2 + $0x159] sm:$0xff] }
 0x305   : > { %v2957_v44 = vpop.f32.mrf.mxu1  ;;  %3903 = vmatmul.mubr.bf16.gmra.mxu1 %v3432_v48  ;;  %v7330_v15 = vpop.f32.mrf.mxu0  ;;  %v3433_v48 = vpack.c.bf16 %v3381_v38, %v3380_v17  ;;  %v7350_v38 = vpack.c.bf16 %v1592_v35, %v1591_v55 }
 0x306   : > { %v7334_v50 = vadd.f32 %v2957_v44, %v2525_v5  ;;  %3910 = vmatprep.mubr.bf16.mxu1 %v3529_v36  ;;  %v3530_v36 = vpack.c.bf16 %v3479_v56, %v3478_v32  ;;  %v3550_v44 = vld [vmem:[#allocation2 + $0x32] sm:$0xff] }
 0x307   : > { %v2959_v14 = vpop.f32.mrf.mxu1  ;;  %v2312_v27 = vpop.f32.mrf.mxu0  ;;  %v3382_v32 = vld [vmem:[#allocation2 + $0x150] sm:$0xff]  ;;  %v3383_v56 = vld [vmem:[#allocation2 + $0x158] sm:$0xff] }
 0x308   : > { %8159 = vst [vmem:[#allocation86_spill] sm:$0xff] %v7334_v50  ;;  %v3551_v27 = vld [vmem:[#allocation2 + $0x3a] sm:$0xff]  ;;  %v2536_v50 = vadd.f32 %v6932_v28, %v7200_v11  ;;  %v3434_v7 = vpack.c.bf16 %v3383_v56, %v3382_v32 }
 0x309   : > { %v2960_v12 = vpop.f32.mrf.mxu1  ;;  %v7340_v16 = vpop.f32.mrf.mxu0  ;;  %5281 = vmatmul.mubr.bf16.gmra.mxu0 %v7332_v19 }
 0x30a   : > { %v7343_v21 = vadd.f32 %v2960_v12, %v2528_v46  ;;  %5284 = vmatprep.mubr.bf16.mxu0 %v7336_v40  ;;  %v3614_v46 = vpack.c.bf16 %v3551_v27, %v3550_v44 }
 0x30b   : > { %v2962_v57 = vpop.f32.mrf.mxu1  ;;  %v2317_v5 = vpop.f32.mrf.mxu0 }
 0x30c   : > { %8160 = vst [vmem:[#allocation87_spill] sm:$0xff] %v7343_v21  ;;  %v3480_v57 = vld [vmem:[#allocation2 + $0x169] sm:$0xff]  ;;  %v3481_v5 = vld [vmem:[#allocation2 + $0x171] sm:$0xff] }
 0x30d   : > { %v2965_v0 = vpop.f32.mrf.mxu1  ;;  %3911 = vmatmul.mubr.bf16.gmra.mxu1 %v3433_v48  ;;  %v7348_v17 = vpop.f32.mrf.mxu0  ;;  %v3531_v35 = vpack.c.bf16 %v3481_v5, %v3480_v57  ;;  %v3385_v57 = vld [vmem:[#allocation2 + $0x170] sm:$0xff] }
 0x30e   : > { %v7352_v14 = vadd.f32 %v2965_v0, %v2533_v42  ;;  %3918 = vmatprep.mubr.bf16.mxu1 %v3530_v36  ;;  %v3552_v36 = vld [vmem:[#allocation2 + $0x4a] sm:$0xff]  ;;  %v3553_v42 = vld [vmem:[#allocation2 + $0x52] sm:$0xff]  ;;  %v3554_v0 = vld [vmem:[#allocation2 + $0x62] sm:$0xff] }
 0x30f   : > { %v2967_v12 = vpop.f32.mrf.mxu1  ;;  %v2320_v21 = vpop.f32.mrf.mxu0  ;;  %v3615_v32 = vpack.c.bf16 %v3553_v42, %v3552_v36  ;;  %v3557_v42 = vld [vmem:[#allocation2 + $0x82] sm:$0xff] }
 0x310   : > { %8161 = vst [vmem:[#allocation88_spill] sm:$0xff] %v7352_v14  ;;  %v3555_v12 = vld [vmem:[#allocation2 + $0x6a] sm:$0xff]  ;;  %v2541_v21 = vadd.f32 %v6950_v20, %v7208_v45 }
 0x311   : > { %v2968_v10 = vpop.f32.mrf.mxu1  ;;  %v7356_v48 = vpop.f32.mrf.mxu0  ;;  %5285 = vmatmul.mubr.bf16.gmra.mxu0 %v7350_v38 }
 0x312   : > { %v7359_v55 = vadd.f32 %v2968_v10, %v2536_v50  ;;  %5304 = vmatprep.mubr.bf16.mxu0 %v3614_v46  ;;  %v3384_v50 = vld [vmem:[#allocation2 + $0x168] sm:$0xff]  ;;  %v3616_v46 = vpack.c.bf16 %v3555_v12, %v3554_v0  ;;  %v3558_v12 = vld [vmem:[#allocation2 + $0x92] sm:$0xff] }
 0x313   : > { %v2970_v44 = vpop.f32.mrf.mxu1  ;;  %v2325_v27 = vpop.f32.mrf.mxu0  ;;  %v3482_v10 = vld [vmem:[#allocation2 + $0x181] sm:$0xff]  ;;  %v3435_v20 = vpack.c.bf16 %v3385_v57, %v3384_v50 }
 0x314   : > { %8162 = vst [vmem:[#allocation89_spill] sm:$0xff] %v7359_v55  ;;  %v3483_v44 = vld [vmem:[#allocation2 + $0x189] sm:$0xff]  ;;  %v2544_v55 = vadd.f32 %v6958_v54, %v7214_v62 }
 0x315   : > { %v2973_v28 = vpop.f32.mrf.mxu1  ;;  %3919 = vmatmul.mubr.bf16.gmra.mxu1 %v3434_v7  ;;  %v7363_v11 = vpop.f32.mrf.mxu0  ;;  %v3532_v36 = vpack.c.bf16 %v3483_v44, %v3482_v10  ;;  %v3485_v10 = vld [vmem:[#allocation2 + $0x1a1] sm:$0xff] }
 0x316   : > { %v7365_v56 = vadd.f32 %v2973_v28, %v2541_v21  ;;  %3926 = vmatprep.mubr.bf16.mxu1 %v3531_v35  ;;  %v3556_v35 = vld [vmem:[#allocation2 + $0x7a] sm:$0xff] }
 0x317   : > { %v2975_v5 = vpop.f32.mrf.mxu1  ;;  %v2328_v27 = vpop.f32.mrf.mxu0  ;;  %v3559_v28 = vld [vmem:[#allocation2 + $0x9a] sm:$0xff]  ;;  %v3617_v62 = vpack.c.bf16 %v3557_v42, %v3556_v35  ;;  %v3561_v42 = vld [vmem:[#allocation2 + $0xb2] sm:$0xff] }
 0x318   : > { %8163 = vst [vmem:[#allocation90_spill] sm:$0xff] %v7365_v56  ;;  %v2549_v5 = vadd.f32 %v6940_v47, %v7220_v49 }
 0x319   : > { %v2976_v14 = vpop.f32.mrf.mxu1  ;;  %v7369_v45 = vpop.f32.mrf.mxu0  ;;  %5305 = vmatmul.mubr.bf16.vlgmr.msra.gmra.mxu0 %v3615_v32  ;;  %v3618_v32 = vpack.c.bf16 %v3559_v28, %v3558_v12  ;;  %v3562_v28 = vld [vmem:[#allocation2 + $0xc2] sm:$0xff] }
 0x31a   : > { %v7371_v7 = vadd.f32 %v2976_v14, %v2544_v55  ;;  %5308 = vmatprep.mubr.bf16.mxu0 %v3616_v46  ;;  %v3386_v14 = vld [vmem:[#allocation2 + $0x180] sm:$0xff]  ;;  %v3387_v55 = vld [vmem:[#allocation2 + $0x188] sm:$0xff] }
 0x31b   : > { %v2978_v21 = vpop.f32.mrf.mxu1  ;;  %v2333_v0 = vpop.f32.mrf.mxu0  ;;  %v3484_v46 = vld [vmem:[#allocation2 + $0x199] sm:$0xff]  ;;  %v3436_v47 = vpack.c.bf16 %v3387_v55, %v3386_v14 }
 0x31c   : > { %8164 = vst [vmem:[#allocation91_spill] sm:$0xff] %v7371_v7  ;;  %v2552_v21 = vadd.f32 %v6952_v41, %v7225_v6  ;;  %v3533_v35 = vpack.c.bf16 %v3485_v10, %v3484_v46  ;;  %v3389_v55 = vld [vmem:[#allocation2 + $0x1a0] sm:$0xff] }
 0x31d   : > { %v2981_v27 = vpop.f32.mrf.mxu1  ;;  %3927 = vmatmul.mubr.bf16.gmra.mxu1 %v3435_v20  ;;  %v7375_v54 = vpop.f32.mrf.mxu0  ;;  %v3486_v10 = vld [vmem:[#allocation2 + $0x1e1] sm:$0xff] }
 0x31e   : > { %v7377_v50 = vadd.f32 %v2981_v27, %v2549_v5  ;;  %3934 = vmatprep.mubr.bf16.mxu1 %v3532_v36  ;;  %v3560_v36 = vld [vmem:[#allocation2 + $0xaa] sm:$0xff] }
 0x31f   : > { %v2983_v57 = vpop.f32.mrf.mxu1  ;;  %v2336_v44 = vpop.f32.mrf.mxu0  ;;  %v3563_v27 = vld [vmem:[#allocation2 + $0xca] sm:$0xff]  ;;  %v3619_v6 = vpack.c.bf16 %v3561_v42, %v3560_v36  ;;  %v3565_v42 = vld [vmem:[#allocation2 + $0xe2] sm:$0xff] }
 0x320   : > { %8165 = vst [vmem:[#allocation92_spill] sm:$0xff] %v7377_v50  ;;  %v2557_v57 = vadd.f32 %v6970_v9, %v7233_v61 }
 0x321   : > { %v2984_v0 = vpop.f32.mrf.mxu1  ;;  %v7381_v49 = vpop.f32.mrf.mxu0  ;;  %5309 = vmatmul.mubr.bf16.gmra.mxu0 %v3617_v62  ;;  %v3388_v62 = vld [vmem:[#allocation2 + $0x198] sm:$0xff] }
 0x322   : > { %v7383_v20 = vadd.f32 %v2984_v0, %v2552_v21  ;;  %5312 = vmatprep.mubr.bf16.mxu0 %v3618_v32  ;;  %v3620_v32 = vpack.c.bf16 %v3563_v27, %v3562_v28  ;;  %v3487_v21 = vld [vmem:[#allocation2 + $0x1e9] sm:$0xff]  ;;  %v3437_v9 = vpack.c.bf16 %v3389_v55, %v3388_v62  ;;  %v3566_v27 = vld [vmem:[#allocation2 + $0xf2] sm:$0xff]  ;;  %v3390_v55 = vld [vmem:[#allocation2 + $0x1e0] sm:$0xff] }
 0x323   : > { %v2986_v5 = vpop.f32.mrf.mxu1  ;;  %v2341_v12 = vpop.f32.mrf.mxu0  ;;  %v3534_v36 = vpack.c.bf16 %v3487_v21, %v3486_v10 }
 0x324   : > { %8166 = vst [vmem:[#allocation93_spill] sm:$0xff] %v7383_v20  ;;  %v2560_v5 = vadd.f32 %v6978_v3, %v7240_v33 }
 0x325   : > { %v2989_v44 = vpop.f32.mrf.mxu1  ;;  %3935 = vmatmul.mubr.bf16.gmra.mxu1 %v3436_v47  ;;  %v7387_v41 = vpop.f32.mrf.mxu0 }
 0x326   : > { %v7389_v14 = vadd.f32 %v2989_v44, %v2557_v57  ;;  %3942 = vmatprep.mubr.bf16.mxu1 %v3533_v35  ;;  %v3564_v35 = vld [vmem:[#allocation2 + $0xda] sm:$0xff] }
 0x327   : > { %v2991_v46 = vpop.f32.mrf.mxu1  ;;  %v2344_v0 = vpop.f32.mrf.mxu0  ;;  %v3567_v44 = vld [vmem:[#allocation2 + $0xfa] sm:$0xff]  ;;  %v3621_v62 = vpack.c.bf16 %v3565_v42, %v3564_v35 }
 0x328   : > { %8167 = vst [vmem:[#allocation94_spill] sm:$0xff] %v7389_v14  ;;  %v2565_v46 = vadd.f32 %v6960_v22, %v7250_v58  ;;  %v3622_v10 = vpack.c.bf16 %v3567_v44, %v3566_v27  ;;  %v3488_v0 = vld [vmem:[#allocation2 + $0x1f9] sm:$0xff] }
 0x329   : > { %v2992_v12 = vpop.f32.mrf.mxu1  ;;  %v7393_v61 = vpop.f32.mrf.mxu0  ;;  %5313 = vmatmul.mubr.bf16.gmra.mxu0 %v3619_v6 }
 0x32a   : > { %v7395_v47 = vadd.f32 %v2992_v12, %v2560_v5  ;;  %5316 = vmatprep.mubr.bf16.mxu0 %v3620_v32  ;;  %v3391_v32 = vld [vmem:[#allocation2 + $0x1e8] sm:$0xff] }
 0x32b   : > { %v2994_v57 = vpop.f32.mrf.mxu1  ;;  %v7397_v28 = vpop.f32.mrf.mxu0  ;;  %v3489_v5 = vld [vmem:[#allocation2 + $0x201] sm:$0xff]  ;;  %v3438_v58 = vpack.c.bf16 %v3391_v32, %v3390_v55  ;;  %v3392_v32 = vld [vmem:[#allocation2 + $0x1f8] sm:$0xff] }
 0x32c   : > { %8168 = vst [vmem:[#allocation95_spill] sm:$0xff] %v7395_v47  ;;  %v2568_v57 = vadd.f32 %v6972_v31, %v7258_v2  ;;  %v3535_v42 = vpack.c.bf16 %v3489_v5, %v3488_v0  ;;  %v2573_v47 = vadd.f32 %v6988_v26, %v7268_v52 }
 0x32d   : > { %v2997_v3 = vpop.f32.mrf.mxu1  ;;  %3943 = vmatmul.mubr.bf16.gmra.mxu1 %v3437_v9  ;;  %v7401_v33 = vpop.f32.mrf.mxu0 }
 0x32e   : > { %v7403_v6 = vadd.f32 %v2997_v3, %v2565_v46  ;;  %3950 = vmatprep.mubr.bf16.mxu1 %v3534_v36  ;;  %v3568_v36 = vld [vmem:[#allocation2 + $0x10a] sm:$0xff]  ;;  %v3569_v46 = vld [vmem:[#allocation2 + $0x112] sm:$0xff]  ;;  %v3570_v3 = vld [vmem:[#allocation2 + $0x122] sm:$0xff] }
 0x32f   : > { %v2999_v21 = vpop.f32.mrf.mxu1  ;;  %v7405_v12 = vpop.f32.mrf.mxu0  ;;  %v3623_v55 = vpack.c.bf16 %v3569_v46, %v3568_v36 }
 0x330   : > { %8169 = vst [vmem:[#allocation96_spill] sm:$0xff] %v7403_v6  ;;  %v3571_v21 = vld [vmem:[#allocation2 + $0x12a] sm:$0xff] }
 0x331   : > { %v3000_v22 = vpop.f32.mrf.mxu1  ;;  %v7409_v9 = vpop.f32.mrf.mxu0  ;;  %5317 = vmatmul.mubr.bf16.gmra.mxu0 %v3621_v62  ;;  %v3624_v0 = vpack.c.bf16 %v3571_v21, %v3570_v3  ;;  %v8173_v3 = vld [vmem:[#allocation21_spill] sm:$0xff] }
 0x332   : > { %v7411_v35 = vadd.f32 %v3000_v22, %v2568_v57  ;;  %5320 = vmatprep.mubr.bf16.mxu0 %v3622_v10  ;;  %v3393_v10 = vld [vmem:[#allocation2 + $0x200] sm:$0xff]  ;;  %v3490_v57 = vld [vmem:[#allocation2 + $0x211] sm:$0xff]  ;;  %v2581_v21 = vadd.f32 %v8173_v3, %v7286_v34 }
 0x333   : > { %v3002_v27 = vpop.f32.mrf.mxu1  ;;  %v7413_v44 = vpop.f32.mrf.mxu0  ;;  %v3491_v22 = vld [vmem:[#allocation2 + $0x219] sm:$0xff]  ;;  %v3439_v52 = vpack.c.bf16 %v3393_v10, %v3392_v32  ;;  %v3493_v10 = vld [vmem:[#allocation2 + $0x231] sm:$0xff] }
 0x334   : > { %8170 = vst [vmem:[#allocation97_spill] sm:$0xff] %v7411_v35  ;;  %v2576_v35 = vadd.f32 %v6995_v51, %v7276_v25  ;;  %v3394_v25 = vld [vmem:[#allocation2 + $0x210] sm:$0xff]  ;;  %v3395_v32 = vld [vmem:[#allocation2 + $0x218] sm:$0xff] }
 0x335   : > { %v3005_v31 = vpop.f32.mrf.mxu1  ;;  %3951 = vmatmul.mubr.bf16.gmra.mxu1 %v3438_v58  ;;  %v7417_v2 = vpop.f32.mrf.mxu0 }
 0x336   : > { %v7419_v62 = vadd.f32 %v3005_v31, %v2573_v47  ;;  %3958 = vmatprep.mubr.bf16.mxu1 %v3535_v42  ;;  %v3536_v47 = vpack.c.bf16 %v3491_v22, %v3490_v57 }
 0x337   : > { %v3007_v5 = vpop.f32.mrf.mxu1  ;;  %v7421_v27 = vpop.f32.mrf.mxu0 }
 0x338   : > { %8171 = vst [vmem:[#allocation98_spill] sm:$0xff] %v7419_v62  ;;  %v3579_v62 = vld [vmem:[#allocation2 + $0x18a] sm:$0xff] }
 0x339   : > { %v3008_v26 = vpop.f32.mrf.mxu1  ;;  %v7425_v58 = vpop.f32.mrf.mxu0  ;;  %5321 = vmatmul.mubr.bf16.gmra.mxu0 %v3623_v55 }
 0x33a   : > { %v7427_v36 = vadd.f32 %v3008_v26, %v2576_v35  ;;  %5324 = vmatprep.mubr.bf16.mxu0 %v3624_v0  ;;  %v3492_v35 = vld [vmem:[#allocation2 + $0x229] sm:$0xff] }
 0x33b   : > { %v3010_v42 = vpop.f32.mrf.mxu1  ;;  %v7429_v46 = vpop.f32.mrf.mxu0  ;;  %v8175_v0 = vld [vmem:[#allocation23_spill] sm:$0xff] }
 0x33c   : > { %8172 = vst [vmem:[#allocation99_spill] sm:$0xff] %v7427_v36  ;;  %v2584_v22 = vadd.f32 %v8175_v0, %v7294_v4  ;;  %v3440_v42 = vpack.c.bf16 %v3395_v32, %v3394_v25  ;;  %v3578_v36 = vld [vmem:[#allocation2 + $0x182] sm:$0xff] }
 0x33d   : > { %v3013_v31 = vpop.f32.mrf.mxu1  ;;  %3959 = vmatmul.mubr.bf16.gmra.mxu1 %v3439_v52  ;;  %v7433_v5 = vpop.f32.mrf.mxu0  ;;  %v8176_v52 = vld [vmem:[#allocation69_spill] sm:$0xff]  ;;  %v3396_v0 = vld [vmem:[#allocation2 + $0x228] sm:$0xff] }
 0x33e   : > { %v7435_v51 = vadd.f32 %v3013_v31, %v2581_v21  ;;  %3966 = vmatprep.mubr.bf16.mxu1 %v3536_v47  ;;  %v3537_v21 = vpack.c.bf16 %v3493_v10, %v3492_v35  ;;  %v8178_v47 = vld [vmem:[#allocation70_spill] sm:$0xff]  ;;  %v3628_v35 = vpack.c.bf16 %v3579_v62, %v3578_v36 }
 0x33f   : > { %v3015_v55 = vpop.f32.mrf.mxu1  ;;  %v7437_v57 = vpop.f32.mrf.mxu0  ;;  %v3581_v62 = vld [vmem:[#allocation2 + $0x1a2] sm:$0xff] }
 0x340   : > { %8174 = vst [vmem:[#allocation21_spill] sm:$0xff] %v7435_v51  ;;  %v8179_v51 = vld [vmem:[#allocation27_spill] sm:$0xff] }
 0x341   : > { %v3016_v26 = vpop.f32.mrf.mxu1  ;;  %v7441_v34 = vpop.f32.mrf.mxu0  ;;  %5325 = vmatmul.mubr.bf16.gmra.mxu0 %v8176_v52  ;;  %v2589_v14 = vadd.f32 %v8179_v51, %v7304_v18  ;;  %v3495_v52 = vld [vmem:[#allocation2 + $0x249] sm:$0xff] }
 0x342   : > { %v7444_v3 = vadd.f32 %v3016_v26, %v2584_v22  ;;  %5328 = vmatprep.mubr.bf16.mxu0 %v8178_v47  ;;  %v3397_v22 = vld [vmem:[#allocation2 + $0x230] sm:$0xff]  ;;  %v3494_v26 = vld [vmem:[#allocation2 + $0x241] sm:$0xff] }
 0x343   : > { %v3018_v31 = vpop.f32.mrf.mxu1  ;;  %v7447_v55 = vpop.f32.mrf.mxu0  ;;  %v3441_v18 = vpack.c.bf16 %v3397_v22, %v3396_v0 }
 0x344   : > { %8177 = vst [vmem:[#allocation23_spill] sm:$0xff] %v7444_v3  ;;  %v8181_v31 = vld [vmem:[#allocation30_spill] sm:$0xff] }
 0x345   : > { %v3021_v4 = vpop.f32.mrf.mxu1  ;;  %3967 = vmatmul.mubr.bf16.gmra.mxu1 %v3440_v42  ;;  %v7451_v25 = vpop.f32.mrf.mxu0  ;;  %v2592_v3 = vadd.f32 %v8181_v31, %v7312_v24  ;;  %v8182_v42 = vld [vmem:[#allocation73_spill] sm:$0xff] }
 0x346   : > { %v7453_v32 = vadd.f32 %v3021_v4, %v2589_v14  ;;  %3974 = vmatprep.mubr.bf16.mxu1 %v3537_v21  ;;  %v3538_v21 = vpack.c.bf16 %v3495_v52, %v3494_v26  ;;  %v3580_v4 = vld [vmem:[#allocation2 + $0x19a] sm:$0xff] }
 0x347   : > { %v3023_v10 = vpop.f32.mrf.mxu1  ;;  %v7455_v47 = vpop.f32.mrf.mxu0  ;;  %v3629_v0 = vpack.c.bf16 %v3581_v62, %v3580_v4  ;;  %v3497_v52 = vld [vmem:[#allocation2 + $0x261] sm:$0xff] }
 0x348   : > { %8180 = vst [vmem:[#allocation69_spill] sm:$0xff] %v7453_v32  ;;  %v8184_v32 = vld [vmem:[#allocation25_spill] sm:$0xff] }
 0x349   : > { %v3024_v6 = vpop.f32.mrf.mxu1  ;;  %v7459_v51 = vpop.f32.mrf.mxu0  ;;  %5329 = vmatmul.mubr.bf16.gmra.mxu0 %v8182_v42  ;;  %v2597_v7 = vadd.f32 %v8184_v32, %v7322_v39  ;;  %v8186_v42 = vld [vmem:[#allocation28_spill] sm:$0xff]  ;;  %v8188_v4 = vld [vmem:[#allocation33_spill] sm:$0xff] }
 0x34a   : > { %v7462_v14 = vadd.f32 %v3024_v6, %v2592_v3  ;;  %5332 = vmatprep.mubr.bf16.mxu0 %v3628_v35  ;;  %v3398_v6 = vld [vmem:[#allocation2 + $0x240] sm:$0xff]  ;;  %v3399_v3 = vld [vmem:[#allocation2 + $0x248] sm:$0xff]  ;;  %v2605_v62 = vadd.f32 %v8188_v4, %v7340_v16  ;;  %v8192_v16 = vld [vmem:[#allocation36_spill] sm:$0xff] }
 0x34b   : > { %v3026_v36 = vpop.f32.mrf.mxu1  ;;  %v7464_v10 = vpop.f32.mrf.mxu0  ;;  %v3496_v35 = vld [vmem:[#allocation2 + $0x259] sm:$0xff]  ;;  %v3442_v39 = vpack.c.bf16 %v3399_v3, %v3398_v6 }
 0x34c   : > { %8183 = vst [vmem:[#allocation70_spill] sm:$0xff] %v7462_v14  ;;  %v2600_v36 = vadd.f32 %v8186_v42, %v7330_v15  ;;  %v3400_v6 = vld [vmem:[#allocation2 + $0x258] sm:$0xff] }
 0x34d   : > { %v3029_v20 = vpop.f32.mrf.mxu1  ;;  %3975 = vmatmul.mubr.bf16.gmra.mxu1 %v3441_v18  ;;  %v7468_v24 = vpop.f32.mrf.mxu0  ;;  %v3499_v42 = vld [vmem:[#allocation2 + $0x279] sm:$0xff] }
 0x34e   : > { %v7470_v22 = vadd.f32 %v3029_v20, %v2597_v7  ;;  %3982 = vmatprep.mubr.bf16.mxu1 %v3538_v21  ;;  %v3539_v7 = vpack.c.bf16 %v3497_v52, %v3496_v35  ;;  %v3498_v52 = vld [vmem:[#allocation2 + $0x271] sm:$0xff]  ;;  %v8193_v4 = vld [vmem:[#allocation13_spill] sm:$0xff] }
 0x34f   : > { %v3031_v26 = vpop.f32.mrf.mxu1  ;;  %v7472_v31 = vpop.f32.mrf.mxu0 }
 0x350   : > { %8185 = vst [vmem:[#allocation27_spill] sm:$0xff] %v7470_v22  ;;  %v8189_v26 = vld [vmem:[#allocation12_spill] sm:$0xff] }
 0x351   : > { %v3032_v14 = vpop.f32.mrf.mxu1  ;;  %v7476_v32 = vpop.f32.mrf.mxu0  ;;  %5333 = vmatmul.mubr.bf16.gmra.mxu0 %v3629_v0  ;;  %v2389_v22 = vadd.f32 %v7393_v61, %v8189_v26  ;;  %v8190_v0 = vld [vmem:[#allocation10_spill] sm:$0xff]  ;;  %v2608_v61 = vadd.f32 %v8192_v16, %v7348_v17  ;;  %v8194_v26 = vld [vmem:[#allocation47_spill] sm:$0xff] }
 0x352   : > { %v7478_v18 = vadd.f32 %v3032_v14, %v2600_v36  ;;  %5336 = vmatprep.mubr.bf16.mxu0 %v7229_v53  ;;  %v2381_v14 = vadd.f32 %v7397_v28, %v8190_v0  ;;  %v3401_v53 = vld [vmem:[#allocation2 + $0x260] sm:$0xff]  ;;  %v3540_v28 = vpack.c.bf16 %v3499_v42, %v3498_v52 }
 0x353   : > { %v3034_v20 = vpop.f32.mrf.mxu1  ;;  %v7481_v21 = vpop.f32.mrf.mxu0  ;;  %v3443_v50 = vpack.c.bf16 %v3401_v53, %v3400_v6  ;;  %v8198_v53 = vld [vmem:[#allocation16_spill] sm:$0xff]  ;;  %v8199_v42 = vld [vmem:[#allocation49_spill] sm:$0xff] }
 0x354   : > { %8187 = vst [vmem:[#allocation30_spill] sm:$0xff] %v7478_v18  ;;  %v2822_v18 = vadd.f32 %v8194_v26, %v2389_v22  ;;  %v8197_v22 = vld [vmem:[#allocation31_spill] sm:$0xff]  ;;  %v2405_v52 = vadd.f32 %v7409_v9, %v8198_v53  ;;  %v8201_v9 = vld [vmem:[#allocation45_spill] sm:$0xff] }
 0x355   : > { %v3037_v15 = vpop.f32.mrf.mxu1  ;;  %3983 = vmatmul.mubr.bf16.gmra.mxu1 %v3442_v39  ;;  %v7487_v3 = vpop.f32.mrf.mxu0  ;;  %v2392_v39 = vadd.f32 %v7401_v33, %v8193_v4  ;;  %v2613_v6 = vadd.f32 %v8197_v22, %v7356_v48  ;;  %v8200_v4 = vld [vmem:[#allocation14_spill] sm:$0xff]  ;;  %v3501_v48 = vld [vmem:[#allocation2 + $0x291] sm:$0xff] }
 0x356   : > { %v7491_v35 = vadd.f32 %v3037_v15, %v2605_v62  ;;  %3990 = vmatprep.mubr.bf16.mxu1 %v3539_v7  ;;  %v8195_v7 = vld [vmem:[#allocation11_spill] sm:$0xff] }
 0x357   : > { %v3039_v36 = vpop.f32.mrf.mxu1  ;;  %v7493_v20 = vpop.f32.mrf.mxu0  ;;  %v2384_v15 = vadd.f32 %v7405_v12, %v8195_v7  ;;  %v2825_v12 = vadd.f32 %v8199_v42, %v2392_v39  ;;  %v3500_v26 = vld [vmem:[#allocation2 + $0x289] sm:$0xff] }
 0x358   : > { %8191 = vst [vmem:[#allocation73_spill] sm:$0xff] %v7491_v35  ;;  %v8196_v35 = vld [vmem:[#allocation43_spill] sm:$0xff]  ;;  %v8202_v39 = vld [vmem:[#allocation34_spill] sm:$0xff] }
 0x359   : > { %v3040_v56 = vpop.f32.mrf.mxu1  ;;  %v5226_v62 = vpop.f32.mrf.mxu0  ;;  %5337 = vmatmul.mubr.bf16.gmra.mxu0 %v7242_v59  ;;  %v2814_v17 = vadd.f32 %v8196_v35, %v2381_v14  ;;  %v2397_v14 = vadd.f32 %v7413_v44, %v8200_v4  ;;  %v3403_v35 = vld [vmem:[#allocation2 + $0x278] sm:$0xff]  ;;  %v2817_v7 = vadd.f32 %v8201_v9, %v2384_v15  ;;  %v8204_v44 = vld [vmem:[#allocation54_spill] sm:$0xff] }
 0x35a   : > { %v7503_v0 = vadd.f32 %v3040_v56, %v2608_v61  ;;  %v7505_v36 = vadd.f32 %v5226_v62, %v2822_v18  ;;  %5340 = vmatprep.mubr.bf16.mxu0 %v7246_v60  ;;  %v3402_v18 = vld [vmem:[#allocation2 + $0x270] sm:$0xff] }
 0x35b   : > { %v3042_v33 = vpop.f32.mrf.mxu1  ;;  %v3102_v16 = vpop.f32.mrf.mxu0  ;;  %v3444_v42 = vpack.c.bf16 %v3403_v35, %v3402_v18  ;;  %v8208_v35 = vld [vmem:[#allocation20_spill] sm:$0xff] }
 0x35c   : > { %v7513_v59 = vadd.f32 %v3102_v16, %v2814_v17  ;;  %v8203_v16 = vld [vmem:[#allocation17_spill] sm:$0xff] }
 0x35d   : > { %v3045_v56 = vpop.f32.mrf.mxu1  ;;  %3991 = vmatmul.mubr.bf16.gmra.mxu1 %v3443_v50  ;;  %v5227_v61 = vpop.f32.mrf.mxu0  ;;  %v2616_v50 = vadd.f32 %v8202_v39, %v7363_v11  ;;  %v2408_v22 = vadd.f32 %v7417_v2, %v8203_v16  ;;  %v8206_v11 = vld [vmem:[#allocation51_spill] sm:$0xff]  ;;  %v8210_v16 = vld [vmem:[#allocation18_spill] sm:$0xff] }
 0x35e   : > { %v7518_v60 = vadd.f32 %v3045_v56, %v2613_v6  ;;  %3998 = vmatprep.mubr.bf16.mxu1 %v3540_v28  ;;  %v7520_v62 = vadd.f32 %v5227_v61, %v2825_v12  ;;  %v2838_v6 = vadd.f32 %v8204_v44, %v2405_v52  ;;  %v3541_v56 = vpack.c.bf16 %v3501_v48, %v3500_v26  ;;  %v8205_v12 = vld [vmem:[#allocation15_spill] sm:$0xff] }
 0x35f   : > { %v3047_v17 = vpop.f32.mrf.mxu1  ;;  %v3105_v33 = vpop.f32.mrf.mxu0  ;;  %v2400_v15 = vadd.f32 %v7421_v27, %v8205_v12  ;;  %v8207_v52 = vld [vmem:[#allocation39_spill] sm:$0xff]  ;;  %v2421_v26 = vadd.f32 %v7425_v58, %v8208_v35  ;;  %v8211_v58 = vld [vmem:[#allocation53_spill] sm:$0xff] }
 0x360   : > { %v7527_v53 = vadd.f32 %v3105_v33, %v2817_v7  ;;  %v2830_v17 = vadd.f32 %v8206_v11, %v2397_v14  ;;  %v2621_v18 = vadd.f32 %v8207_v52, %v7369_v45  ;;  %v8209_v48 = vld [vmem:[#allocation55_spill] sm:$0xff]  ;;  %v2413_v14 = vadd.f32 %v7429_v46, %v8210_v16  ;;  %v8214_v46 = vld [vmem:[#allocation58_spill] sm:$0xff] }
 0x361   : > { %v3048_v28 = vpop.f32.mrf.mxu1  ;;  %v5230_v4 = vpop.f32.mrf.mxu0  ;;  %5341 = vmatmul.mubr.bf16.gmra.mxu0 %v7260_v23  ;;  %v2841_v27 = vadd.f32 %v8209_v48, %v2408_v22  ;;  %v3404_v39 = vld [vmem:[#allocation2 + $0x288] sm:$0xff]  ;;  %v3405_v44 = vld [vmem:[#allocation2 + $0x290] sm:$0xff]  ;;  %v2854_v52 = vadd.f32 %v8214_v46, %v2421_v26  ;;  %v8217_v26 = vld [vmem:[#allocation37_spill] sm:$0xff] }
 0x362   : > { %v7533_v61 = vadd.f32 %v3048_v28, %v2616_v50  ;;  %v7535_v9 = vadd.f32 %v5230_v4, %v2838_v6  ;;  %5344 = vmatprep.mubr.bf16.mxu0 %v7264_v37  ;;  %v3502_v6 = vld [vmem:[#allocation2 + $0x2a1] sm:$0xff]  ;;  %v3503_v45 = vld [vmem:[#allocation2 + $0x2a9] sm:$0xff]  ;;  %v2833_v4 = vadd.f32 %v8211_v58, %v2400_v15 }
 0x363   : > { %v3050_v2 = vpop.f32.mrf.mxu1  ;;  %v3118_v7 = vpop.f32.mrf.mxu0  ;;  %v8212_v22 = vld [vmem:[#allocation42_spill] sm:$0xff]  ;;  %v3542_v35 = vpack.c.bf16 %v3503_v45, %v3502_v6  ;;  %v8219_v45 = vld [vmem:[#allocation59_spill] sm:$0xff] }
 0x364   : > { %v7543_v23 = vadd.f32 %v3118_v7, %v2830_v17  ;;  %v8213_v17 = vld [vmem:[#allocation22_spill] sm:$0xff] }
 0x365   : > { %v3053_v33 = vpop.f32.mrf.mxu1  ;;  %3999 = vmatmul.mubr.bf16.gmra.mxu1 %v3444_v42  ;;  %v5231_v50 = vpop.f32.mrf.mxu0  ;;  %v2624_v42 = vadd.f32 %v8212_v22, %v7375_v54  ;;  %v2424_v2 = vadd.f32 %v7433_v5, %v8213_v17  ;;  %v8216_v54 = vld [vmem:[#allocation56_spill] sm:$0xff] }
 0x366   : > { %v7548_v37 = vadd.f32 %v3053_v33, %v2621_v18  ;;  %4006 = vmatprep.mubr.bf16.mxu1 %v3541_v56  ;;  %v7550_v28 = vadd.f32 %v5231_v50, %v2841_v27  ;;  %v3445_v18 = vpack.c.bf16 %v3405_v44, %v3404_v39  ;;  %v8215_v27 = vld [vmem:[#allocation19_spill] sm:$0xff]  ;;  %v2846_v16 = vadd.f32 %v8216_v54, %v2413_v14  ;;  %v8218_v44 = vld [vmem:[#allocation29_spill] sm:$0xff]  ;;  %v8220_v22 = vld [vmem:[#allocation24_spill] sm:$0xff] }
 0x367   : > { %v3055_v12 = vpop.f32.mrf.mxu1  ;;  %v3121_v11 = vpop.f32.mrf.mxu0  ;;  %v2416_v15 = vadd.f32 %v7437_v57, %v8215_v27  ;;  %v2629_v39 = vadd.f32 %v8217_v26, %v7381_v49  ;;  %v2437_v6 = vadd.f32 %v7441_v34, %v8218_v44  ;;  %v2857_v57 = vadd.f32 %v8219_v45, %v2424_v2  ;;  %v3504_v17 = vld [vmem:[#allocation2 + $0x2b9] sm:$0xff]  ;;  %v3505_v49 = vld [vmem:[#allocation2 + $0x2c1] sm:$0xff] }
 0x368   : > { %v7557_v7 = vadd.f32 %v3121_v11, %v2833_v4  ;;  %v3406_v12 = vld [vmem:[#allocation2 + $0x2a0] sm:$0xff]  ;;  %v2429_v14 = vadd.f32 %v7447_v55, %v8220_v22  ;;  %v8222_v2 = vld [vmem:[#allocation40_spill] sm:$0xff]  ;;  %v3543_v26 = vpack.c.bf16 %v3505_v49, %v3504_v17  ;;  %v8229_v49 = vld [vmem:[#allocation35_spill] sm:$0xff] }
 0x369   : > { %v3056_v56 = vpop.f32.mrf.mxu1  ;;  %v5234_v48 = vpop.f32.mrf.mxu0  ;;  %5345 = vmatmul.mubr.bf16.gmra.mxu0 %v7278_v43  ;;  %v8221_v34 = vld [vmem:[#allocation57_spill] sm:$0xff]  ;;  %v8223_v27 = vld [vmem:[#allocation32_spill] sm:$0xff]  ;;  %v8224_v55 = vld [vmem:[#allocation62_spill] sm:$0xff] }
 0x36a   : > { %v7563_v33 = vadd.f32 %v3056_v56, %v2624_v42  ;;  %v7565_v50 = vadd.f32 %v5234_v48, %v2854_v52  ;;  %5348 = vmatprep.mubr.bf16.mxu0 %v7282_v30  ;;  %v3407_v42 = vld [vmem:[#allocation2 + $0x2a8] sm:$0xff]  ;;  %v2849_v52 = vadd.f32 %v8221_v34, %v2416_v15  ;;  %v2440_v54 = vadd.f32 %v7451_v25, %v8223_v27 }
 0x36b   : > { %v3058_v5 = vpop.f32.mrf.mxu1  ;;  %v3134_v58 = vpop.f32.mrf.mxu0  ;;  %v8225_v44 = vld [vmem:[#allocation26_spill] sm:$0xff]  ;;  %v2445_v34 = vadd.f32 %v7464_v10, %v8229_v49 }
 0x36c   : > { %v7573_v43 = vadd.f32 %v3134_v58, %v2846_v16  ;;  %v2870_v5 = vadd.f32 %v8224_v55, %v2437_v6  ;;  %v3446_v58 = vpack.c.bf16 %v3407_v42, %v3406_v12  ;;  %v2432_v15 = vadd.f32 %v7455_v47, %v8225_v44  ;;  %v8227_v6 = vld [vmem:[#allocation41_spill] sm:$0xff]  ;;  %v8228_v42 = vld [vmem:[#allocation63_spill] sm:$0xff]  ;;  %v8231_v55 = vld [vmem:[#allocation44_spill] sm:$0xff] }
 0x36d   : > { %v3061_v4 = vpop.f32.mrf.mxu1  ;;  %4007 = vmatmul.mubr.bf16.gmra.mxu1 %v3445_v18  ;;  %v5235_v11 = vpop.f32.mrf.mxu0  ;;  %v2632_v18 = vadd.f32 %v8222_v2, %v7387_v41  ;;  %v8226_v41 = vld [vmem:[#allocation60_spill] sm:$0xff]  ;;  %v2453_v12 = vadd.f32 %v7459_v51, %v8227_v6  ;;  %v8233_v44 = vld [vmem:[#allocation38_spill] sm:$0xff] }
 0x36e   : > { %v7578_v30 = vadd.f32 %v3061_v4, %v2629_v39  ;;  %4014 = vmatprep.mubr.bf16.mxu1 %v3542_v35  ;;  %v7580_v46 = vadd.f32 %v5235_v11, %v2857_v57  ;;  %v2862_v4 = vadd.f32 %v8226_v41, %v2429_v14  ;;  %v3408_v14 = vld [vmem:[#allocation2 + $0x2b8] sm:$0xff] }
 0x36f   : > { %v3063_v56 = vpop.f32.mrf.mxu1  ;;  %v3137_v48 = vpop.f32.mrf.mxu0  ;;  %v3506_v51 = vld [vmem:[#allocation2 + $0x2d1] sm:$0xff] }
 0x370   : > { %v7587_v16 = vadd.f32 %v3137_v48, %v2849_v52  ;;  %v3409_v52 = vld [vmem:[#allocation2 + $0x2c0] sm:$0xff] }
 0x371   : > { %v3064_v35 = vpop.f32.mrf.mxu1  ;;  %v5238_v39 = vpop.f32.mrf.mxu0  ;;  %5349 = vmatmul.mubr.bf16.gmra.mxu0 %v7296_v1  ;;  %v2873_v1 = vadd.f32 %v8228_v42, %v2440_v54  ;;  %v8230_v56 = vld [vmem:[#allocation61_spill] sm:$0xff]  ;;  %v2456_v54 = vadd.f32 %v7468_v24, %v8231_v55  ;;  %v3447_v10 = vpack.c.bf16 %v3409_v52, %v3408_v14  ;;  %v8235_v42 = vld [vmem:[#allocation50_spill] sm:$0xff]  ;;  %v8239_v55 = vld [vmem:[#allocation52_spill] sm:$0xff] }
 0x372   : > { %v7593_v45 = vadd.f32 %v3064_v35, %v2632_v18  ;;  %v7595_v57 = vadd.f32 %v5238_v39, %v2870_v5  ;;  %5352 = vmatprep.mubr.bf16.mxu0 %v7300_v8  ;;  %v2865_v48 = vadd.f32 %v8230_v56, %v2432_v15  ;;  %v3507_v18 = vld [vmem:[#allocation2 + $0x2d9] sm:$0xff]  ;;  %v8232_v35 = vld [vmem:[#allocation66_spill] sm:$0xff]  ;;  %v2448_v15 = vadd.f32 %v7472_v31, %v8233_v44 }
 0x373   : > { %v3066_v25 = vpop.f32.mrf.mxu1  ;;  %v3150_v11 = vpop.f32.mrf.mxu0  ;;  %v3544_v41 = vpack.c.bf16 %v3507_v18, %v3506_v51  ;;  %v8237_v14 = vld [vmem:[#allocation46_spill] sm:$0xff]  ;;  %v3411_v56 = vld [vmem:[#allocation2 + $0x2d8] sm:$0xff] }
 0x374   : > { %v7601_v22 = vadd.f32 %v3150_v11, %v2862_v4  ;;  %v8234_v25 = vld [vmem:[#allocation64_spill] sm:$0xff]  ;;  %v2461_v52 = vadd.f32 %v7481_v21, %v8237_v14 }
 0x375   : > { %v7604_v17 = vpop.f32.mrf.mxu1  ;;  %4015 = vmatmul.mubr.bf16.gmra.mxu1 %v3446_v58  ;;  %v5239_v47 = vpop.f32.mrf.mxu0  ;;  %v2886_v58 = vadd.f32 %v8232_v35, %v2453_v12  ;;  %v2878_v11 = vadd.f32 %v8234_v25, %v2445_v34  ;;  %v2469_v12 = vadd.f32 %v7476_v32, %v8235_v42  ;;  %v3410_v34 = vld [vmem:[#allocation2 + $0x2d0] sm:$0xff] }
 0x376   : > { %4022 = vmatprep.mubr.bf16.mxu1 %v3543_v26  ;;  %v7608_v8 = vadd.f32 %v5239_v47, %v2873_v1  ;;  %v8236_v47 = vld [vmem:[#allocation67_spill] sm:$0xff]  ;;  %v3448_v21 = vpack.c.bf16 %v3411_v56, %v3410_v34 }
 0x377   : > { %v3826_v2 = vpop.f32.mrf.mxu1  ;;  %v3153_v27 = vpop.f32.mrf.mxu0  ;;  %v2889_v49 = vadd.f32 %v8236_v47, %v2456_v54  ;;  %v3508_v32 = vld [vmem:[#allocation2 + $0x2e9] sm:$0xff]  ;;  %v3509_v18 = vld [vmem:[#allocation2 + $0x2f1] sm:$0xff]  ;;  %v2472_v54 = vadd.f32 %v7487_v3, %v8239_v55 }
 0x378   : > { %v7613_v5 = vadd.f32 %v3153_v27, %v2865_v48  ;;  %v8238_v48 = vld [vmem:[#allocation65_spill] sm:$0xff]  ;;  %v3545_v25 = vpack.c.bf16 %v3509_v18, %v3508_v32  ;;  %v3610_v47 = vld [vmem:[#allocation2 + $0x332] sm:$0xff]  ;;  %v3511_v18 = vld [vmem:[#allocation2 + $0x309] sm:$0xff] }
 0x379   : > { %v7616_v39 = vpop.f32.mrf.mxu1  ;;  %v5242_v26 = vpop.f32.mrf.mxu0  ;;  %5353 = vmatmul.mubr.bf16.gmra.mxu0 %v7314_v29  ;;  %v2881_v2 = vadd.f32 %v8238_v48, %v2448_v15  ;;  %v3413_v56 = vld [vmem:[#allocation2 + $0x2f0] sm:$0xff]  ;;  %v3510_v32 = vld [vmem:[#allocation2 + $0x301] sm:$0xff] }
 0x37a   : > { %v7621_v4 = vadd.f32 %v5242_v26, %v2886_v58  ;;  %5356 = vmatprep.mubr.bf16.mxu0 %v7318_v63  ;;  %v8240_v58 = vld [vmem:[#allocation72_spill] sm:$0xff] }
 0x37b   : > { %v3829_v24 = vpop.f32.mrf.mxu1  ;;  %v3166_v6 = vpop.f32.mrf.mxu0 }
 0x37c   : > { %v7627_v1 = vadd.f32 %v3166_v6, %v2878_v11  ;;  %v8242_v24 = vld [vmem:[#allocation68_spill] sm:$0xff] }
 0x37d   : > { %v7630_v29 = vpop.f32.mrf.mxu1  ;;  %4023 = vmatmul.mubr.bf16.gmra.mxu1 %v3447_v10  ;;  %v5243_v31 = vpop.f32.mrf.mxu0  ;;  %v2902_v10 = vadd.f32 %v8240_v58, %v2469_v12  ;;  %v2894_v6 = vadd.f32 %v8242_v24, %v2461_v52  ;;  %v3611_v12 = vld [vmem:[#allocation2 + $0x33a] sm:$0xff]  ;;  %v8246_v52 = vld [vmem:[#allocation71_spill] sm:$0xff] }
 0x37e   : > { %4030 = vmatprep.mubr.bf16.mxu1 %v3544_v41  ;;  %v7634_v63 = vadd.f32 %v5243_v31, %v2889_v49  ;;  %v8241_v41 = vld [vmem:[#allocation48_spill] sm:$0xff]  ;;  %v8244_v31 = vld [vmem:[#allocation74_spill] sm:$0xff] }
 0x37f   : > { %v3834_v51 = vpop.f32.mrf.mxu1  ;;  %v3169_v27 = vpop.f32.mrf.mxu0  ;;  %v2464_v15 = vadd.f32 %v7493_v20, %v8241_v41  ;;  %v2905_v14 = vadd.f32 %v8244_v31, %v2472_v54  ;;  %v3412_v20 = vld [vmem:[#allocation2 + $0x2e8] sm:$0xff]  ;;  %v3414_v31 = vld [vmem:[#allocation2 + $0x300] sm:$0xff] }
 0x380   : > { %v7639_v35 = vadd.f32 %v3169_v27, %v2881_v2  ;;  %v3449_v54 = vpack.c.bf16 %v3413_v56, %v3412_v20  ;;  %v3612_v41 = vld [vmem:[#allocation2 + $0x34a] sm:$0xff]  ;;  %v3512_v20 = vld [vmem:[#allocation2 + $0x319] sm:$0xff]  ;;  %v3513_v56 = vld [vmem:[#allocation2 + $0x321] sm:$0xff] }
 0x381   : > { %v7642_v26 = vpop.f32.mrf.mxu1  ;;  %v5246_v44 = vpop.f32.mrf.mxu0  ;;  %5357 = vmatmul.mubr.bf16.gmra.mxu0 %v7332_v19  ;;  %v2897_v2 = vadd.f32 %v8246_v52, %v2464_v15  ;;  %v3613_v15 = vld [vmem:[#allocation2 + $0x352] sm:$0xff] }
 0x382   : > { %v7647_v11 = vadd.f32 %v5246_v44, %v2902_v10  ;;  %5360 = vmatprep.mubr.bf16.mxu0 %v7336_v40  ;;  %v3644_v40 = vpack.c.bf16 %v3611_v12, %v3610_v47  ;;  %v3645_v12 = vpack.c.bf16 %v3613_v15, %v3612_v41  ;;  %v8257_v15 = vld [vmem:[#allocation78_spill] sm:$0xff] }
 0x383   : > { %v3837_v3 = vpop.f32.mrf.mxu1  ;;  %v3182_v42 = vpop.f32.mrf.mxu0 }
 0x384   : > { %v7651_v49 = vadd.f32 %v3182_v42, %v2894_v6  ;;  %v8249_v6 = vld [vmem:[#allocation75_spill] sm:$0xff] }
 0x385   : > { %v7654_v34 = vpop.f32.mrf.mxu1  ;;  %4031 = vmatmul.mubr.bf16.gmra.mxu1 %v3448_v21  ;;  %v5247_v19 = vpop.f32.mrf.mxu0  ;;  %v3546_v21 = vpack.c.bf16 %v3511_v18, %v3510_v32 }
 0x386   : > { %8243 = vst [vmem:[#allocation25_spill] sm:$0xff] %v7651_v49  ;;  %4038 = vmatprep.mubr.bf16.mxu1 %v3545_v25  ;;  %v7656_v48 = vadd.f32 %v5247_v19, %v2905_v14  ;;  %v8251_v14 = vld [vmem:[#allocation77_spill] sm:$0xff] }
 0x387   : > { %v3842_v51 = vpop.f32.mrf.mxu1  ;;  %v3185_v27 = vpop.f32.mrf.mxu0 }
 0x388   : > { %8245 = vst [vmem:[#allocation28_spill] sm:$0xff] %v7656_v48  ;;  %v7659_v55 = vadd.f32 %v3185_v27, %v2897_v2  ;;  %v8253_v2 = vld [vmem:[#allocation76_spill] sm:$0xff]  ;;  %v3547_v27 = vpack.c.bf16 %v3513_v56, %v3512_v20 }
 0x389   : > { %v7661_v58 = vpop.f32.mrf.mxu1  ;;  %v5250_v10 = vpop.f32.mrf.mxu0  ;;  %5361 = vmatmul.mubr.bf16.gmra.mxu0 %v7350_v38  ;;  %v3415_v38 = vld [vmem:[#allocation2 + $0x308] sm:$0xff]  ;;  %v3515_v20 = vld [vmem:[#allocation2 + $0x339] sm:$0xff] }
 0x38a   : > { %8247 = vst [vmem:[#allocation33_spill] sm:$0xff] %v7659_v55  ;;  %v7665_v44 = vadd.f32 %v5250_v10, %v7244_v13  ;;  %5364 = vmatprep.mubr.bf16.mxu0 %v3644_v40  ;;  %v3450_v32 = vpack.c.bf16 %v3415_v38, %v3414_v31  ;;  %v3514_v38 = vld [vmem:[#allocation2 + $0x331] sm:$0xff] }
 0x38b   : > { %v3845_v25 = vpop.f32.mrf.mxu1  ;;  %v3198_v24 = vpop.f32.mrf.mxu0 }
 0x38c   : > { %8248 = vst [vmem:[#allocation12_spill] sm:$0xff] %v7665_v44  ;;  %v7668_v3 = vadd.f32 %v3198_v24, %v8249_v6 }
 0x38d   : > { %v7670_v42 = vpop.f32.mrf.mxu1  ;;  %4039 = vmatmul.mubr.bf16.gmra.mxu1 %v3449_v54  ;;  %v5251_v47 = vpop.f32.mrf.mxu0  ;;  %v8255_v54 = vld [vmem:[#allocation80_spill] sm:$0xff] }
 0x38e   : > { %8250 = vst [vmem:[#allocation10_spill] sm:$0xff] %v7668_v3  ;;  %4046 = vmatprep.mubr.bf16.mxu1 %v3546_v21  ;;  %v7673_v19 = vadd.f32 %v5251_v47, %v8251_v14  ;;  %v3416_v47 = vld [vmem:[#allocation2 + $0x318] sm:$0xff]  ;;  %v3417_v14 = vld [vmem:[#allocation2 + $0x320] sm:$0xff] }
 0x38f   : > { %v3850_v13 = vpop.f32.mrf.mxu1  ;;  %v3201_v52 = vpop.f32.mrf.mxu0 }
 0x390   : > { %8252 = vst [vmem:[#allocation36_spill] sm:$0xff] %v7673_v19  ;;  %v7676_v40 = vadd.f32 %v3201_v52, %v8253_v2  ;;  %v8259_v13 = vld [vmem:[#allocation81_spill] sm:$0xff]  ;;  %v8261_v52 = vld [vmem:[#allocation79_spill] sm:$0xff]  ;;  %v8273_v19 = vld [vmem:[#allocation86_spill] sm:$0xff] }
 0x391   : > { %v7678_v51 = vpop.f32.mrf.mxu1  ;;  %v5254_v18 = vpop.f32.mrf.mxu0  ;;  %5365 = vmatmul.mubr.bf16.gmra.mxu0 %v3645_v12 }
 0x392   : > { %8254 = vst [vmem:[#allocation13_spill] sm:$0xff] %v7676_v40  ;;  %v7681_v10 = vadd.f32 %v5254_v18, %v8255_v54  ;;  %v3451_v54 = vpack.c.bf16 %v3417_v14, %v3416_v47  ;;  %v3516_v14 = vld [vmem:[#allocation2 + $0x349] sm:$0xff] }
 0x393   : > { %v3853_v21 = vpop.f32.mrf.mxu1  ;;  %v3214_v41 = vpop.f32.mrf.mxu0 }
 0x394   : > { %8256 = vst [vmem:[#allocation47_spill] sm:$0xff] %v7681_v10  ;;  %v7684_v25 = vadd.f32 %v3214_v41, %v8257_v15  ;;  %v3548_v41 = vpack.c.bf16 %v3515_v20, %v3514_v38  ;;  %v8265_v10 = vld [vmem:[#allocation82_spill] sm:$0xff]  ;;  %v3517_v38 = vld [vmem:[#allocation2 + $0x351] sm:$0xff] }
 0x395   : > { %v7686_v24 = vpop.f32.mrf.mxu1  ;;  %4047 = vmatmul.mubr.bf16.gmra.mxu1 %v3450_v32  ;;  %v5255_v6 = vpop.f32.mrf.mxu0  ;;  %v8263_v32 = vld [vmem:[#allocation84_spill] sm:$0xff] }
 0x396   : > { %8258 = vst [vmem:[#allocation11_spill] sm:$0xff] %v7684_v25  ;;  %4054 = vmatprep.mubr.bf16.mxu1 %v3547_v27  ;;  %v7689_v31 = vadd.f32 %v5255_v6, %v8259_v13 }
 0x397   : > { %v3858_v12 = vpop.f32.mrf.mxu1  ;;  %v3217_v56 = vpop.f32.mrf.mxu0 }
 0x398   : > { %8260 = vst [vmem:[#allocation43_spill] sm:$0xff] %v7689_v31  ;;  %v7692_v2 = vadd.f32 %v3217_v56, %v8261_v52  ;;  %v3418_v56 = vld [vmem:[#allocation2 + $0x330] sm:$0xff]  ;;  %v3419_v52 = vld [vmem:[#allocation2 + $0x338] sm:$0xff] }
 0x399   : > { %v7694_v18 = vpop.f32.mrf.mxu1  ;;  %v5258_v21 = vpop.f32.mrf.mxu0 }
 0x39a   : > { %8262 = vst [vmem:[#allocation31_spill] sm:$0xff] %v7692_v2  ;;  %v7697_v15 = vadd.f32 %v5258_v21, %v8263_v32  ;;  %v8267_v2 = vld [vmem:[#allocation85_spill] sm:$0xff]  ;;  %v8269_v21 = vld [vmem:[#allocation83_spill] sm:$0xff] }
 0x39b   : > { %v3861_v27 = vpop.f32.mrf.mxu1  ;;  %v3230_v25 = vpop.f32.mrf.mxu0 }
 0x39c   : > { %8264 = vst [vmem:[#allocation16_spill] sm:$0xff] %v7697_v15  ;;  %v7700_v6 = vadd.f32 %v3230_v25, %v8265_v10  ;;  %v3452_v10 = vpack.c.bf16 %v3419_v52, %v3418_v56 }
 0x39d   : > { %v7702_v13 = vpop.f32.mrf.mxu1  ;;  %4055 = vmatmul.mubr.bf16.gmra.mxu1 %v3451_v54  ;;  %v5259_v12 = vpop.f32.mrf.mxu0  ;;  %v8271_v54 = vld [vmem:[#allocation88_spill] sm:$0xff] }
 0x39e   : > { %8266 = vst [vmem:[#allocation49_spill] sm:$0xff] %v7700_v6  ;;  %4062 = vmatprep.mubr.bf16.mxu1 %v3548_v41  ;;  %v7705_v31 = vadd.f32 %v5259_v12, %v8267_v2  ;;  %v3549_v6 = vpack.c.bf16 %v3517_v38, %v3516_v14  ;;  %v8277_v14 = vld [vmem:[#allocation87_spill] sm:$0xff] }
 0x39f   : > { %v3866_v47 = vpop.f32.mrf.mxu1  ;;  %v3233_v20 = vpop.f32.mrf.mxu0 }
 0x3a0   : > { %8268 = vst [vmem:[#allocation14_spill] sm:$0xff] %v7705_v31  ;;  %v7708_v32 = vadd.f32 %v3233_v20, %v8269_v21  ;;  %v3420_v20 = vld [vmem:[#allocation2 + $0x348] sm:$0xff]  ;;  %v3421_v21 = vld [vmem:[#allocation2 + $0x350] sm:$0xff] }
 0x3a1   : > { %v7710_v27 = vpop.f32.mrf.mxu1  ;;  %v5262_v25 = vpop.f32.mrf.mxu0 }
 0x3a2   : > { %8270 = vst [vmem:[#allocation45_spill] sm:$0xff] %v7708_v32  ;;  %v7713_v15 = vadd.f32 %v5262_v25, %v8271_v54  ;;  %v8275_v32 = vld [vmem:[#allocation89_spill] sm:$0xff]  ;;  %v3453_v54 = vpack.c.bf16 %v3421_v21, %v3420_v20 }
 0x3a3   : > { %v3869_v41 = vpop.f32.mrf.mxu1  ;;  %v3246_v40 = vpop.f32.mrf.mxu0 }
 0x3a4   : > { %8272 = vst [vmem:[#allocation34_spill] sm:$0xff] %v7713_v15  ;;  %v7716_v2 = vadd.f32 %v3246_v40, %v8273_v19  ;;  %v8279_v40 = vld [vmem:[#allocation92_spill] sm:$0xff] }
 0x3a5   : > { %v7718_v12 = vpop.f32.mrf.mxu1  ;;  %4063 = vmatmul.mubr.bf16.gmra.mxu1 %v3452_v10  ;;  %v5263_v47 = vpop.f32.mrf.mxu0 }
 0x3a6   : > { %8274 = vst [vmem:[#allocation17_spill] sm:$0xff] %v7716_v2  ;;  %4070 = vmatprep.mubr.bf16.mxu1 %v3549_v6  ;;  %v7721_v31 = vadd.f32 %v5263_v47, %v8275_v32  ;;  %v8281_v6 = vld [vmem:[#allocation90_spill] sm:$0xff]  ;;  %v8283_v47 = vld [vmem:[#allocation93_spill] sm:$0xff] }
 0x3a7   : > { %v3874_v56 = vpop.f32.mrf.mxu1  ;;  %v3249_v52 = vpop.f32.mrf.mxu0 }
 0x3a8   : > { %8276 = vst [vmem:[#allocation54_spill] sm:$0xff] %v7721_v31  ;;  %v7724_v38 = vadd.f32 %v3249_v52, %v8277_v14 }
 0x3a9   : > { %v7726_v25 = vpop.f32.mrf.mxu1  ;;  %v5266_v19 = vpop.f32.mrf.mxu0 }
 0x3aa   : > { %8278 = vst [vmem:[#allocation15_spill] sm:$0xff] %v7724_v38  ;;  %v7729_v41 = vadd.f32 %v5266_v19, %v8279_v40  ;;  %v8285_v38 = vld [vmem:[#allocation91_spill] sm:$0xff]  ;;  %v8287_v40 = vld [vmem:[#allocation96_spill] sm:$0xff] }
 0x3ab   : > { %v3877_v10 = vpop.f32.mrf.mxu1  ;;  %v3262_v2 = vpop.f32.mrf.mxu0 }
 0x3ac   : > { %8280 = vst [vmem:[#allocation51_spill] sm:$0xff] %v7729_v41  ;;  %v7732_v15 = vadd.f32 %v3262_v2, %v8281_v6 }
 0x3ad   : > { %v7734_v3 = vpop.f32.mrf.mxu1  ;;  %4071 = vmatmul.mubr.bf16.gmra.mxu1 %v3453_v54  ;;  %v5267_v32 = vpop.f32.mrf.mxu0 }
 0x3ae   : > { %8282 = vst [vmem:[#allocation39_spill] sm:$0xff] %v7732_v15  ;;  %v7737_v56 = vadd.f32 %v5267_v32, %v8283_v47  ;;  %v8289_v15 = vld [vmem:[#allocation94_spill] sm:$0xff]  ;;  %v8291_v47 = vld [vmem:[#allocation97_spill] sm:$0xff] }
 0x3af   : > { %v3882_v52 = vpop.f32.mrf.mxu1  ;;  %v3265_v14 = vpop.f32.mrf.mxu0 }
 0x3b0   : > { %8284 = vst [vmem:[#allocation20_spill] sm:$0xff] %v7737_v56  ;;  %v7740_v20 = vadd.f32 %v3265_v14, %v8285_v38  ;;  %v8293_v14 = vld [vmem:[#allocation95_spill] sm:$0xff] }
 0x3b1   : > { %v7742_v21 = vpop.f32.mrf.mxu1  ;;  %v5270_v19 = vpop.f32.mrf.mxu0 }
 0x3b2   : > { %8286 = vst [vmem:[#allocation55_spill] sm:$0xff] %v7740_v20  ;;  %v7745_v10 = vadd.f32 %v5270_v19, %v8287_v40  ;;  %v8295_v40 = vld [vmem:[#allocation21_spill] sm:$0xff] }
 0x3b3   : > { %v3885_v2 = vpop.f32.mrf.mxu1  ;;  %v3278_v6 = vpop.f32.mrf.mxu0 }
 0x3b4   : > { %8288 = vst [vmem:[#allocation18_spill] sm:$0xff] %v7745_v10  ;;  %v7748_v41 = vadd.f32 %v3278_v6, %v8289_v15  ;;  %v8297_v6 = vld [vmem:[#allocation98_spill] sm:$0xff] }
 0x3b5   : > { %v7750_v54 = vpop.f32.mrf.mxu1  ;;  %v5271_v32 = vpop.f32.mrf.mxu0 }
 0x3b6   : > { %8290 = vst [vmem:[#allocation53_spill] sm:$0xff] %v7748_v41  ;;  %v7753_v52 = vadd.f32 %v5271_v32, %v8291_v47  ;;  %v8299_v47 = vld [vmem:[#allocation23_spill] sm:$0xff] }
 0x3b7   : > { %v3890_v56 = vpop.f32.mrf.mxu1  ;;  %v3281_v38 = vpop.f32.mrf.mxu0 }
 0x3b8   : > { %8292 = vst [vmem:[#allocation42_spill] sm:$0xff] %v7753_v52  ;;  %v7756_v20 = vadd.f32 %v3281_v38, %v8293_v14  ;;  %v8301_v14 = vld [vmem:[#allocation99_spill] sm:$0xff] }
 0x3b9   : > { %v7758_v31 = vpop.f32.mrf.mxu1  ;;  %v5274_v19 = vpop.f32.mrf.mxu0 }
 0x3ba   : > { %8294 = vst [vmem:[#allocation22_spill] sm:$0xff] %v7756_v20  ;;  %v7761_v2 = vadd.f32 %v5274_v19, %v8295_v40  ;;  %v8303_v40 = vld [vmem:[#allocation27_spill] sm:$0xff] }
 0x3bb   : > { %v3893_v10 = vpop.f32.mrf.mxu1  ;;  %v3294_v15 = vpop.f32.mrf.mxu0 }
 0x3bc   : > { %8296 = vst [vmem:[#allocation58_spill] sm:$0xff] %v7761_v2  ;;  %v7764_v41 = vadd.f32 %v3294_v15, %v8297_v6  ;;  %v8305_v6 = vld [vmem:[#allocation69_spill] sm:$0xff] }
 0x3bd   : > { %v7766_v44 = vpop.f32.mrf.mxu1  ;;  %v5275_v32 = vpop.f32.mrf.mxu0 }
 0x3be   : > { %8298 = vst [vmem:[#allocation19_spill] sm:$0xff] %v7764_v41  ;;  %v7769_v56 = vadd.f32 %v5275_v32, %v8299_v47  ;;  %v8307_v47 = vld [vmem:[#allocation30_spill] sm:$0xff] }
 0x3bf   : > { %v3898_v52 = vpop.f32.mrf.mxu1  ;;  %v3297_v38 = vpop.f32.mrf.mxu0 }
 0x3c0   : > { %8300 = vst [vmem:[#allocation56_spill] sm:$0xff] %v7769_v56  ;;  %v7772_v20 = vadd.f32 %v3297_v38, %v8301_v14  ;;  %v8309_v14 = vld [vmem:[#allocation70_spill] sm:$0xff] }
 0x3c1   : > { %v7774_v55 = vpop.f32.mrf.mxu1  ;;  %v5278_v19 = vpop.f32.mrf.mxu0 }
 0x3c2   : > { %8302 = vst [vmem:[#allocation37_spill] sm:$0xff] %v7772_v20  ;;  %v7777_v10 = vadd.f32 %v5278_v19, %v8303_v40 }
 0x3c3   : > { %v3901_v2 = vpop.f32.mrf.mxu1  ;;  %v3310_v15 = vpop.f32.mrf.mxu0 }
 0x3c4   : > { %8304 = vst [vmem:[#allocation29_spill] sm:$0xff] %v7777_v10  ;;  %v7780_v41 = vadd.f32 %v3310_v15, %v8305_v6  ;;  %v8312_v6 = vld [vmem:[#allocation73_spill] sm:$0xff] }
 0x3c5   : > { %v7782_v48 = vpop.f32.mrf.mxu1  ;;  %v5279_v32 = vpop.f32.mrf.mxu0 }
 0x3c6   : > { %8306 = vst [vmem:[#allocation59_spill] sm:$0xff] %v7780_v41  ;;  %v7785_v52 = vadd.f32 %v5279_v32, %v8307_v47 }
 0x3c7   : > { %v3906_v56 = vpop.f32.mrf.mxu1  ;;  %v3313_v38 = vpop.f32.mrf.mxu0 }
 0x3c8   : > { %8308 = vst [vmem:[#allocation24_spill] sm:$0xff] %v7785_v52  ;;  %v7788_v20 = vadd.f32 %v3313_v38, %v8309_v14 }
 0x3c9   : > { %v7790_v49 = vpop.f32.mrf.mxu1  ;;  %v5282_v19 = vpop.f32.mrf.mxu0 }
 0x3ca   : > { %8310 = vst [vmem:[#allocation57_spill] sm:$0xff] %v7788_v20  ;;  %v7793_v2 = vadd.f32 %v5282_v19, %v7518_v60 }
 0x3cb   : > { %v3909_v40 = vpop.f32.mrf.mxu1  ;;  %v3326_v15 = vpop.f32.mrf.mxu0 }
 0x3cc   : > { %8311 = vst [vmem:[#allocation40_spill] sm:$0xff] %v7793_v2  ;;  %v7796_v10 = vadd.f32 %v3326_v15, %v8312_v6 }
 0x3cd   : > { %v7798_v41 = vpop.f32.mrf.mxu1  ;;  %v5283_v32 = vpop.f32.mrf.mxu0 }
 0x3ce   : > { %8313 = vst [vmem:[#allocation32_spill] sm:$0xff] %v7796_v10  ;;  %v7801_v56 = vadd.f32 %v5283_v32, %v7533_v61 }
 0x3cf   : > { %v3914_v47 = vpop.f32.mrf.mxu1  ;;  %v3329_v38 = vpop.f32.mrf.mxu0 }
 0x3d0   : > { %8314 = vst [vmem:[#allocation62_spill] sm:$0xff] %v7801_v56  ;;  %v7804_v14 = vadd.f32 %v3329_v38, %v7503_v0 }
 0x3d1   : > { %v7806_v52 = vpop.f32.mrf.mxu1  ;;  %v5286_v60 = vpop.f32.mrf.mxu0 }
 0x3d2   : > { %8315 = vst [vmem:[#allocation26_spill] sm:$0xff] %v7804_v14  ;;  %v7809_v19 = vadd.f32 %v5286_v60, %v7578_v30 }
 0x3d3   : > { %v3917_v40 = vpop.f32.mrf.mxu1  ;;  %v3342_v15 = vpop.f32.mrf.mxu0 }
 0x3d4   : > { %8316 = vst [vmem:[#allocation60_spill] sm:$0xff] %v7809_v19  ;;  %v7812_v6 = vadd.f32 %v3342_v15, %v7548_v37  ;;  %v7826_v19 = vld [vmem:[%s5810_s27] ss:$0 sm:$0xff] }
 0x3d5   : > { %v7814_v2 = vpop.f32.mrf.mxu1  ;;  %v5287_v61 = vpop.f32.mrf.mxu0 }
 0x3d6   : > { %8317 = vst [vmem:[#allocation41_spill] sm:$0xff] %v7812_v6  ;;  %v7817_v32 = vadd.f32 %v5287_v61, %v7593_v45 }
 0x3d7   : > { %v3922_v0 = vpop.f32.mrf.mxu1  ;;  %v3345_v47 = vpop.f32.mrf.mxu0 }
 0x3d8   : > { %8318 = vst [vmem:[#allocation63_spill] sm:$0xff] %v7817_v32  ;;  %v7820_v38 = vadd.f32 %v3345_v47, %v7563_v33 }
 0x3d9   : > { %v7822_v56 = vpop.f32.mrf.mxu1  ;;  %v5306_v30 = vpop.f32.mrf.mxu0 }
 0x3da   : > { %8319 = vst [vmem:[#allocation35_spill] sm:$0xff] %v7820_v38  ;;  %v4122_v60 = vadd.f32 %v5306_v30, %v7630_v29  ;;  %v5514_v29 = vld [vmem:[#allocation7 + $0x10] sm:$0xff] }
 0x3db   : > { %v3925_v40 = vpop.f32.mrf.mxu1  ;;  %v4113_v37 = vpop.f32.mrf.mxu0 }
 0x3dc   : > { %v4370_v15 = vadd.f32 %v4122_v60, %v7505_v36  ;;  %v4114_v6 = vadd.f32 %v4113_v37, %v7604_v17  ;;  %v5515_v37 = vld [vmem:[#allocation7] sm:$0xff] }
 0x3dd   : > { %v7830_v45 = vpop.f32.mrf.mxu1  ;;  %v5307_v61 = vpop.f32.mrf.mxu0 }
 0x3de   : > { %v4441_v0 = vadd.f32 %v7826_v19, %v4370_v15  ;;  %v4368_v33 = vadd.f32 %v4114_v6, %v7513_v59  ;;  %v4125_v47 = vadd.f32 %v5307_v61, %v7642_v26 }
 0x3df   : > { %v3930_v32 = vpop.f32.mrf.mxu1  ;;  %v4116_v38 = vpop.f32.mrf.mxu0 }
 0x3e0   : > { %v4505_v30 = vadd.f32 %v5514_v29, %v4441_v0  ;;  %v4439_v40 = vadd.f32 %v7826_v19, %v4368_v33  ;;  %v4371_v14 = vadd.f32 %v4125_v47, %v7520_v62  ;;  %v4117_v17 = vadd.f32 %v4116_v38, %v7616_v39  ;;  %v5516_v33 = vld [vmem:[#allocation7 + $0x18] sm:$0xff] }
 0x3e1   : > { %v7837_v36 = vpop.f32.mrf.mxu1  ;;  %v5310_v60 = vpop.f32.mrf.mxu0 }
 0x3e2   : > { %4569 = vst [vmem:[#allocation7 + $0x10] sm:$0xff] %v4505_v30  ;;  %v4503_v15 = vadd.f32 %v5515_v37, %v4439_v40  ;;  %v4442_v59 = vadd.f32 %v7826_v19, %v4371_v14  ;;  %v4138_v26 = vadd.f32 %v5310_v60, %v7670_v42  ;;  %v4369_v32 = vadd.f32 %v4117_v17, %v7527_v53  ;;  %v5517_v37 = vld [vmem:[#allocation7 + $0x8] sm:$0xff] }
 0x3e3   : > { %v3933_v6 = vpop.f32.mrf.mxu1  ;;  %v4129_v61 = vpop.f32.mrf.mxu0  ;;  %v4704_v60 = vmul.f32 %v4439_v40, %v4439_v40 }
 0x3e4   : > { %4567 = vst [vmem:[#allocation7] sm:$0xff] %v4503_v15  ;;  %v4506_v29 = vadd.f32 %v5516_v33, %v4442_v59  ;;  %v4374_v62 = vadd.f32 %v4138_v26, %v7535_v9  ;;  %v4130_v47 = vadd.f32 %v4129_v61, %v7654_v34  ;;  %v4440_v38 = vadd.f32 %v7826_v19, %v4369_v32  ;;  %v5518_v34 = vld [vmem:[#allocation7 + $0x30] sm:$0xff] }
 0x3e5   : > { %v7845_v39 = vpop.f32.mrf.mxu1  ;;  %v5311_v30 = vpop.f32.mrf.mxu0 }
 0x3e6   : > { %4570 = vst [vmem:[#allocation7 + $0x18] sm:$0xff] %v4506_v29  ;;  %v4445_v14 = vadd.f32 %v7826_v19, %v4374_v62  ;;  %v4372_v42 = vadd.f32 %v4130_v47, %v7543_v23  ;;  %v4141_v53 = vadd.f32 %v5311_v30, %v7678_v51  ;;  %v4504_v15 = vadd.f32 %v5517_v37, %v4440_v38 }
 0x3e7   : > { %v3938_v17 = vpop.f32.mrf.mxu1  ;;  %v4632_v6 = vadd.f32 %v4440_v38, %v4439_v40  ;;  %v4705_v9 = vmul.f32 %v4440_v38, %v4440_v38  ;;  %v4132_v26 = vpop.f32.mrf.mxu0  ;;  %v4706_v62 = vmul.f32 %v4441_v0, %v4441_v0 }
 0x3e8   : > { %v4509_v61 = vadd.f32 %v5518_v34, %v4445_v14  ;;  %v4443_v33 = vadd.f32 %v7826_v19, %v4372_v42  ;;  %v4375_v32 = vadd.f32 %v4141_v53, %v7550_v28  ;;  %4568 = vst [vmem:[#allocation7 + $0x8] sm:$0xff] %v4504_v15  ;;  %v4133_v51 = vadd.f32 %v4132_v26, %v7661_v58  ;;  %v5519_v17 = vld [vmem:[#allocation7 + $0x20] sm:$0xff] }
 0x3e9   : > { %v7853_v29 = vpop.f32.mrf.mxu1  ;;  %v4633_v23 = vadd.f32 %v4632_v6, %v4441_v0  ;;  %v4768_v47 = vadd.f32 %v4705_v9, %v4704_v60  ;;  %v5314_v30 = vpop.f32.mrf.mxu0  ;;  %v4707_v42 = vmul.f32 %v4442_v59, %v4442_v59  ;;  %v5520_v0 = vld [vmem:[#allocation7 + $0x38] sm:$0xff] }
 0x3ea   : > { %4573 = vst [vmem:[#allocation7 + $0x30] sm:$0xff] %v4509_v61  ;;  %v4507_v40 = vadd.f32 %v5519_v17, %v4443_v33  ;;  %v4446_v38 = vadd.f32 %v7826_v19, %v4375_v32  ;;  %v4154_v37 = vadd.f32 %v5314_v30, %v7702_v13  ;;  %v4373_v53 = vadd.f32 %v4133_v51, %v7557_v7  ;;  %v5522_v17 = vld [vmem:[#allocation7 + $0x50] sm:$0xff] }
 0x3eb   : > { %v3941_v34 = vpop.f32.mrf.mxu1  ;;  %v4634_v10 = vadd.f32 %v4633_v23, %v4442_v59  ;;  %v4769_v28 = vadd.f32 %v4768_v47, %v4706_v62  ;;  %v4145_v20 = vpop.f32.mrf.mxu0  ;;  %v4708_v61 = vmul.f32 %v4443_v33, %v4443_v33 }
 0x3ec   : > { %4571 = vst [vmem:[#allocation7 + $0x20] sm:$0xff] %v4507_v40  ;;  %v4510_v60 = vadd.f32 %v5520_v0, %v4446_v38  ;;  %v4378_v58 = vadd.f32 %v4154_v37, %v7565_v50  ;;  %v4146_v15 = vadd.f32 %v4145_v20, %v7686_v24  ;;  %v4444_v13 = vadd.f32 %v7826_v19, %v4373_v53  ;;  %v5521_v50 = vld [vmem:[#allocation7 + $0x28] sm:$0xff]  ;;  %v5523_v53 = vld [vmem:[#allocation7 + $0x40] sm:$0xff] }
 0x3ed   : > { %v7861_v6 = vpop.f32.mrf.mxu1  ;;  %v4770_v9 = vadd.f32 %v4769_v28, %v4707_v42  ;;  %v4635_v26 = vadd.f32 %v4634_v10, %v4443_v33  ;;  %v5315_v32 = vpop.f32.mrf.mxu0  ;;  %v4710_v34 = vmul.f32 %v4445_v14, %v4445_v14 }
 0x3ee   : > { %4574 = vst [vmem:[#allocation7 + $0x38] sm:$0xff] %v4510_v60  ;;  %v4449_v59 = vadd.f32 %v7826_v19, %v4378_v58  ;;  %v4376_v7 = vadd.f32 %v4146_v15, %v7573_v43  ;;  %v4157_v62 = vadd.f32 %v5315_v32, %v7710_v27  ;;  %v4508_v51 = vadd.f32 %v5521_v50, %v4444_v13 }
 0x3ef   : > { %v3946_v23 = vpop.f32.mrf.mxu1  ;;  %v4771_v47 = vadd.f32 %v4770_v9, %v4708_v61  ;;  %v4636_v24 = vadd.f32 %v4635_v26, %v4444_v13  ;;  %v4709_v20 = vmul.f32 %v4444_v13, %v4444_v13  ;;  %v4148_v30 = vpop.f32.mrf.mxu0  ;;  %v4711_v9 = vmul.f32 %v4446_v38, %v4446_v38 }
 0x3f0   : > { %v4513_v10 = vadd.f32 %v5522_v17, %v4449_v59  ;;  %v4447_v33 = vadd.f32 %v7826_v19, %v4376_v7  ;;  %v4379_v40 = vadd.f32 %v4157_v62, %v7580_v46  ;;  %4572 = vst [vmem:[#allocation7 + $0x28] sm:$0xff] %v4508_v51  ;;  %v4149_v27 = vadd.f32 %v4148_v30, %v7694_v18 }
 0x3f1   : > { %v7869_v37 = vpop.f32.mrf.mxu1  ;;  %v4637_v43 = vadd.f32 %v4636_v24, %v4445_v14  ;;  %v4772_v42 = vadd.f32 %v4771_v47, %v4709_v20  ;;  %v5318_v28 = vpop.f32.mrf.mxu0  ;;  %v5524_v14 = vld [vmem:[#allocation7 + $0x58] sm:$0xff] }
 0x3f2   : > { %4577 = vst [vmem:[#allocation7 + $0x50] sm:$0xff] %v4513_v10  ;;  %v4511_v0 = vadd.f32 %v5523_v53, %v4447_v33  ;;  %v4450_v60 = vadd.f32 %v7826_v19, %v4379_v40  ;;  %v4170_v58 = vadd.f32 %v5318_v28, %v7734_v3  ;;  %v4377_v61 = vadd.f32 %v4149_v27, %v7587_v16 }
 0x3f3   : > { %v3949_v15 = vpop.f32.mrf.mxu1  ;;  %v4773_v26 = vadd.f32 %v4772_v42, %v4710_v34  ;;  %v4638_v46 = vadd.f32 %v4637_v43, %v4446_v38  ;;  %v4161_v13 = vpop.f32.mrf.mxu0  ;;  %v4712_v47 = vmul.f32 %v4447_v33, %v4447_v33  ;;  %v5526_v34 = vld [vmem:[#allocation7 + $0x70] sm:$0xff]  ;;  %v4714_v28 = vmul.f32 %v4449_v59, %v4449_v59 }
 0x3f4   : > { %4575 = vst [vmem:[#allocation7 + $0x40] sm:$0xff] %v4511_v0  ;;  %v4514_v32 = vadd.f32 %v5524_v14, %v4450_v60  ;;  %v4382_v18 = vadd.f32 %v4170_v58, %v7595_v57  ;;  %v4162_v7 = vadd.f32 %v4161_v13, %v7718_v12  ;;  %v4448_v3 = vadd.f32 %v7826_v19, %v4377_v61  ;;  %v5525_v57 = vld [vmem:[#allocation7 + $0x48] sm:$0xff]  ;;  %v5527_v58 = vld [vmem:[#allocation7 + $0x60] sm:$0xff] }
 0x3f5   : > { %v7877_v62 = vpop.f32.mrf.mxu1  ;;  %v4639_v23 = vadd.f32 %v4638_v46, %v4447_v33  ;;  %v4774_v50 = vadd.f32 %v4773_v26, %v4711_v9  ;;  %v5319_v51 = vpop.f32.mrf.mxu0  ;;  %v4715_v61 = vmul.f32 %v4450_v60, %v4450_v60 }
 0x3f6   : > { %4578 = vst [vmem:[#allocation7 + $0x58] sm:$0xff] %v4514_v32  ;;  %v4453_v38 = vadd.f32 %v7826_v19, %v4382_v18  ;;  %v4380_v16 = vadd.f32 %v4162_v7, %v7601_v22  ;;  %v4173_v24 = vadd.f32 %v5319_v51, %v7742_v21  ;;  %v4512_v17 = vadd.f32 %v5525_v57, %v4448_v3 }
 0x3f7   : > { %v3954_v20 = vpop.f32.mrf.mxu1  ;;  %v4775_v30 = vadd.f32 %v4774_v50, %v4712_v47  ;;  %v4640_v12 = vadd.f32 %v4639_v23, %v4448_v3  ;;  %v4713_v10 = vmul.f32 %v4448_v3, %v4448_v3  ;;  %v4164_v40 = vpop.f32.mrf.mxu0 }
 0x3f8   : > { %v4517_v33 = vadd.f32 %v5526_v34, %v4453_v38  ;;  %v4451_v43 = vadd.f32 %v7826_v19, %v4380_v16  ;;  %v4383_v42 = vadd.f32 %v4173_v24, %v7608_v8  ;;  %4576 = vst [vmem:[#allocation7 + $0x48] sm:$0xff] %v4512_v17  ;;  %v4165_v21 = vadd.f32 %v4164_v40, %v7726_v25 }
 0x3f9   : > { %v7885_v27 = vpop.f32.mrf.mxu1  ;;  %v4641_v22 = vadd.f32 %v4640_v12, %v4449_v59  ;;  %v4776_v53 = vadd.f32 %v4775_v30, %v4713_v10  ;;  %v5322_v0 = vpop.f32.mrf.mxu0  ;;  %v5528_v59 = vld [vmem:[#allocation7 + $0x78] sm:$0xff]  ;;  %v5530_v12 = vld [vmem:[#allocation7 + $0x90] sm:$0xff] }
 0x3fa   : > { %4581 = vst [vmem:[#allocation7 + $0x70] sm:$0xff] %v4517_v33  ;;  %v4515_v15 = vadd.f32 %v5527_v58, %v4451_v43  ;;  %v4454_v9 = vadd.f32 %v7826_v19, %v4383_v42  ;;  %v4186_v26 = vadd.f32 %v5322_v0, %v7766_v44  ;;  %v4381_v14 = vadd.f32 %v4165_v21, %v7613_v5 }
 0x3fb   : > { %v3957_v46 = vpop.f32.mrf.mxu1  ;;  %v4777_v13 = vadd.f32 %v4776_v53, %v4714_v28  ;;  %v4642_v8 = vadd.f32 %v4641_v22, %v4450_v60  ;;  %v4177_v32 = vpop.f32.mrf.mxu0  ;;  %v4716_v50 = vmul.f32 %v4451_v43, %v4451_v43  ;;  %v5531_v22 = vld [vmem:[#allocation7 + $0x80] sm:$0xff] }
 0x3fc   : > { %4579 = vst [vmem:[#allocation7 + $0x60] sm:$0xff] %v4515_v15  ;;  %v4518_v18 = vadd.f32 %v5528_v59, %v4454_v9  ;;  %v4386_v25 = vadd.f32 %v4186_v26, %v7621_v4  ;;  %v4178_v7 = vadd.f32 %v4177_v32, %v7750_v54  ;;  %v4452_v44 = vadd.f32 %v7826_v19, %v4381_v14  ;;  %v5529_v4 = vld [vmem:[#allocation7 + $0x68] sm:$0xff] }
 0x3fd   : > { %v7893_v23 = vpop.f32.mrf.mxu1  ;;  %v4643_v47 = vadd.f32 %v4642_v8, %v4451_v43  ;;  %v4778_v3 = vadd.f32 %v4777_v13, %v4715_v61  ;;  %v5323_v51 = vpop.f32.mrf.mxu0  ;;  %v4718_v43 = vmul.f32 %v4453_v38, %v4453_v38  ;;  %v4719_v15 = vmul.f32 %v4454_v9, %v4454_v9 }
 0x3fe   : > { %4582 = vst [vmem:[#allocation7 + $0x78] sm:$0xff] %v4518_v18  ;;  %v4457_v60 = vadd.f32 %v7826_v19, %v4386_v25  ;;  %v4384_v5 = vadd.f32 %v4178_v7, %v7627_v1  ;;  %v4189_v16 = vadd.f32 %v5323_v51, %v7774_v55  ;;  %v4516_v30 = vadd.f32 %v5529_v4, %v4452_v44  ;;  %v8321_v4 = vld [vmem:[#allocation28_spill] sm:$0xff] }
 0x3ff   : > { %v3962_v24 = vpop.f32.mrf.mxu1  ;;  %v4779_v20 = vadd.f32 %v4778_v3, %v4716_v50  ;;  %v4644_v54 = vadd.f32 %v4643_v47, %v4452_v44  ;;  %v4717_v57 = vmul.f32 %v4452_v44, %v4452_v44  ;;  %v4180_v17 = vpop.f32.mrf.mxu0 }
 0x400   : > { %v4521_v10 = vadd.f32 %v5530_v12, %v4457_v60  ;;  %v4455_v40 = vadd.f32 %v7826_v19, %v4384_v5  ;;  %v4387_v34 = vadd.f32 %v4189_v16, %v7634_v63  ;;  %4580 = vst [vmem:[#allocation7 + $0x68] sm:$0xff] %v4516_v30  ;;  %v4181_v55 = vadd.f32 %v4180_v17, %v7758_v31  ;;  %v5534_v16 = vld [vmem:[#allocation7 + $0xb0] sm:$0xff] }
 0x401   : > { %v7901_v33 = vpop.f32.mrf.mxu1  ;;  %v4645_v1 = vadd.f32 %v4644_v54, %v4453_v38  ;;  %v4780_v42 = vadd.f32 %v4779_v20, %v4717_v57  ;;  %v5326_v28 = vpop.f32.mrf.mxu0  ;;  %v5532_v38 = vld [vmem:[#allocation7 + $0x98] sm:$0xff]  ;;  %v4722_v57 = vmul.f32 %v4457_v60, %v4457_v60 }
 0x402   : > { %4585 = vst [vmem:[#allocation7 + $0x90] sm:$0xff] %v4521_v10  ;;  %v4519_v53 = vadd.f32 %v5531_v22, %v4455_v40  ;;  %v4458_v21 = vadd.f32 %v7826_v19, %v4387_v34  ;;  %v4202_v0 = vadd.f32 %v5326_v28, %v7798_v41  ;;  %v4385_v46 = vadd.f32 %v4181_v55, %v7639_v35  ;;  %v8320_v35 = vld [vmem:[#allocation25_spill] sm:$0xff] }
 0x403   : > { %v3965_v58 = vpop.f32.mrf.mxu1  ;;  %v4781_v26 = vadd.f32 %v4780_v42, %v4718_v43  ;;  %v4646_v63 = vadd.f32 %v4645_v1, %v4454_v9  ;;  %v4193_v61 = vpop.f32.mrf.mxu0  ;;  %v4720_v59 = vmul.f32 %v4455_v40, %v4455_v40 }
 0x404   : > { %4583 = vst [vmem:[#allocation7 + $0x80] sm:$0xff] %v4519_v53  ;;  %v4522_v13 = vadd.f32 %v5532_v38, %v4458_v21  ;;  %v4390_v31 = vadd.f32 %v4202_v0, %v7647_v11  ;;  %v4194_v8 = vadd.f32 %v4193_v61, %v7782_v48  ;;  %v4456_v41 = vadd.f32 %v7826_v19, %v4385_v46  ;;  %v5533_v11 = vld [vmem:[#allocation7 + $0x88] sm:$0xff]  ;;  %v8322_v53 = vld [vmem:[#allocation33_spill] sm:$0xff] }
 0x405   : > { %v7909_v14 = vpop.f32.mrf.mxu1  ;;  %v4647_v32 = vadd.f32 %v4646_v63, %v4455_v40  ;;  %v4782_v18 = vadd.f32 %v4781_v26, %v4719_v15  ;;  %v5327_v25 = vpop.f32.mrf.mxu0  ;;  %v5535_v40 = vld [vmem:[#allocation7 + $0xa0] sm:$0xff]  ;;  %v4723_v55 = vmul.f32 %v4458_v21, %v4458_v21  ;;  %v8323_v26 = vld [vmem:[#allocation12_spill] sm:$0xff] }
 0x406   : > { %4586 = vst [vmem:[#allocation7 + $0x98] sm:$0xff] %v4522_v13  ;;  %v4461_v9 = vadd.f32 %v7826_v19, %v4390_v31  ;;  %v4388_v7 = vadd.f32 %v4194_v8, %v8320_v35  ;;  %v4205_v47 = vadd.f32 %v5327_v25, %v7806_v52  ;;  %v4520_v44 = vadd.f32 %v5533_v11, %v4456_v41  ;;  %v8324_v8 = vld [vmem:[#allocation10_spill] sm:$0xff]  ;;  %v5537_v25 = vld [vmem:[#allocation7 + $0xa8] sm:$0xff] }
 0x407   : > { %v3970_v50 = vpop.f32.mrf.mxu1  ;;  %v4783_v3 = vadd.f32 %v4782_v18, %v4720_v59  ;;  %v4648_v48 = vadd.f32 %v4647_v32, %v4456_v41  ;;  %v4721_v51 = vmul.f32 %v4456_v41, %v4456_v41  ;;  %v4196_v5 = vpop.f32.mrf.mxu0 }
 0x408   : > { %v4525_v24 = vadd.f32 %v5534_v16, %v4461_v9  ;;  %v4459_v20 = vadd.f32 %v7826_v19, %v4388_v7  ;;  %v4391_v30 = vadd.f32 %v4205_v47, %v8321_v4  ;;  %4584 = vst [vmem:[#allocation7 + $0x88] sm:$0xff] %v4520_v44  ;;  %v4197_v52 = vadd.f32 %v4196_v5, %v7790_v49  ;;  %v5538_v50 = vld [vmem:[#allocation7 + $0xd0] sm:$0xff]  ;;  %v5539_v4 = vld [vmem:[#allocation7 + $0xc0] sm:$0xff] }
 0x409   : > { %v7917_v54 = vpop.f32.mrf.mxu1  ;;  %v4649_v17 = vadd.f32 %v4648_v48, %v4457_v60  ;;  %v4784_v12 = vadd.f32 %v4783_v3, %v4721_v51  ;;  %v5330_v10 = vpop.f32.mrf.mxu0  ;;  %v5536_v60 = vld [vmem:[#allocation7 + $0xb8] sm:$0xff]  ;;  %v8325_v44 = vld [vmem:[#allocation36_spill] sm:$0xff]  ;;  %v4726_v5 = vmul.f32 %v4461_v9, %v4461_v9 }
 0x40a   : > { %4589 = vst [vmem:[#allocation7 + $0xb0] sm:$0xff] %v4525_v24  ;;  %v4523_v34 = vadd.f32 %v5535_v40, %v4459_v20  ;;  %v4462_v43 = vadd.f32 %v7826_v19, %v4391_v30  ;;  %v4218_v1 = vadd.f32 %v5330_v10, %v7830_v45  ;;  %v4389_v0 = vadd.f32 %v4197_v52, %v8322_v53 }
 0x40b   : > { %v3973_v42 = vpop.f32.mrf.mxu1  ;;  %v4785_v28 = vadd.f32 %v4784_v12, %v4722_v57  ;;  %v4650_v22 = vadd.f32 %v4649_v17, %v4458_v21  ;;  %v4209_v58 = vpop.f32.mrf.mxu0  ;;  %v4724_v38 = vmul.f32 %v4459_v20, %v4459_v20 }
 0x40c   : > { %4587 = vst [vmem:[#allocation7 + $0xa0] sm:$0xff] %v4523_v34  ;;  %v4526_v15 = vadd.f32 %v5536_v60, %v4462_v43  ;;  %v4394_v49 = vadd.f32 %v4218_v1, %v8323_v26  ;;  %v4210_v63 = vadd.f32 %v4209_v58, %v7814_v2  ;;  %v4460_v45 = vadd.f32 %v7826_v19, %v4389_v0  ;;  %v8326_v34 = vld [vmem:[#allocation13_spill] sm:$0xff]  ;;  %v8328_v26 = vld [vmem:[#allocation11_spill] sm:$0xff] }
 0x40d   : > { %v7925_v46 = vpop.f32.mrf.mxu1  ;;  %v4651_v61 = vadd.f32 %v4650_v22, %v4459_v20  ;;  %v4786_v13 = vadd.f32 %v4785_v28, %v4723_v55  ;;  %v5331_v31 = vpop.f32.mrf.mxu0  ;;  %v4727_v52 = vmul.f32 %v4462_v43, %v4462_v43  ;;  %v8327_v28 = vld [vmem:[#allocation47_spill] sm:$0xff] }
 0x40e   : > { %4590 = vst [vmem:[#allocation7 + $0xb8] sm:$0xff] %v4526_v15  ;;  %v4465_v21 = vadd.f32 %v7826_v19, %v4394_v49  ;;  %v4392_v32 = vadd.f32 %v4210_v63, %v8324_v8  ;;  %v4221_v59 = vadd.f32 %v5331_v31, %v7837_v36  ;;  %v4524_v35 = vadd.f32 %v5537_v25, %v4460_v45 }
 0x40f   : > { %v3978_v18 = vpop.f32.mrf.mxu1  ;;  %v4787_v41 = vadd.f32 %v4786_v13, %v4724_v38  ;;  %v4652_v2 = vadd.f32 %v4651_v61, %v4460_v45  ;;  %v4725_v7 = vmul.f32 %v4460_v45, %v4460_v45  ;;  %v4212_v47 = vpop.f32.mrf.mxu0  ;;  %v5541_v13 = vld [vmem:[#allocation7 + $0xc8] sm:$0xff] }
 0x410   : > { %v4529_v3 = vadd.f32 %v5538_v50, %v4465_v21  ;;  %v4463_v11 = vadd.f32 %v7826_v19, %v4392_v32  ;;  %v4395_v48 = vadd.f32 %v4221_v59, %v8325_v44  ;;  %4588 = vst [vmem:[#allocation7 + $0xa8] sm:$0xff] %v4524_v35  ;;  %v4213_v36 = vadd.f32 %v4212_v47, %v7822_v56  ;;  %v5542_v32 = vld [vmem:[#allocation7 + $0xf0] sm:$0xff] }
 0x411   : > { %v7933_v51 = vpop.f32.mrf.mxu1  ;;  %v4653_v16 = vadd.f32 %v4652_v2, %v4461_v9  ;;  %v4788_v24 = vadd.f32 %v4787_v41, %v4725_v7  ;;  %v5334_v20 = vpop.f32.mrf.mxu0  ;;  %v5540_v9 = vld [vmem:[#allocation7 + $0xd8] sm:$0xff]  ;;  %v8329_v41 = vld [vmem:[#allocation43_spill] sm:$0xff]  ;;  %v4730_v2 = vmul.f32 %v4465_v21, %v4465_v21 }
 0x412   : > { %4593 = vst [vmem:[#allocation7 + $0xd0] sm:$0xff] %v4529_v3  ;;  %v4527_v30 = vadd.f32 %v5539_v4, %v4463_v11  ;;  %v4466_v57 = vadd.f32 %v7826_v19, %v4395_v48  ;;  %v4234_v17 = vadd.f32 %v5334_v20, %v7861_v6  ;;  %v4393_v1 = vadd.f32 %v4213_v36, %v8326_v34  ;;  %v5543_v3 = vld [vmem:[#allocation7 + $0xe0] sm:$0xff]  ;;  %v8330_v20 = vld [vmem:[#allocation31_spill] sm:$0xff] }
 0x413   : > { %v3981_v12 = vpop.f32.mrf.mxu1  ;;  %v4789_v10 = vadd.f32 %v4788_v24, %v4726_v5  ;;  %v4654_v40 = vadd.f32 %v4653_v16, %v4462_v43  ;;  %v4225_v42 = vpop.f32.mrf.mxu0  ;;  %v4728_v58 = vmul.f32 %v4463_v11, %v4463_v11 }
 0x414   : > { %4591 = vst [vmem:[#allocation7 + $0xc0] sm:$0xff] %v4527_v30  ;;  %v4530_v55 = vadd.f32 %v5540_v9, %v4466_v57  ;;  %v4398_v56 = vadd.f32 %v4234_v17, %v8327_v28  ;;  %v4226_v22 = vadd.f32 %v4225_v42, %v7845_v39  ;;  %v4464_v6 = vadd.f32 %v7826_v19, %v4393_v1  ;;  %v8331_v12 = vld [vmem:[#allocation16_spill] sm:$0xff]  ;;  %v8332_v9 = vld [vmem:[#allocation49_spill] sm:$0xff] }
 0x415   : > { %v7941_v53 = vpop.f32.mrf.mxu1  ;;  %v4655_v0 = vadd.f32 %v4654_v40, %v4463_v11  ;;  %v4790_v60 = vadd.f32 %v4789_v10, %v4727_v52  ;;  %v5335_v15 = vpop.f32.mrf.mxu0  ;;  %v4731_v16 = vmul.f32 %v4466_v57, %v4466_v57 }
 0x416   : > { %4594 = vst [vmem:[#allocation7 + $0xd8] sm:$0xff] %v4530_v55  ;;  %v4469_v43 = vadd.f32 %v7826_v19, %v4398_v56  ;;  %v4396_v49 = vadd.f32 %v4226_v22, %v8328_v26  ;;  %v4237_v63 = vadd.f32 %v5335_v15, %v7869_v37  ;;  %v4528_v45 = vadd.f32 %v5541_v13, %v4464_v6  ;;  %v5546_v15 = vld [vmem:[#allocation7 + $0x110] sm:$0xff] }
 0x417   : > { %v3986_v61 = vpop.f32.mrf.mxu1  ;;  %v4791_v38 = vadd.f32 %v4790_v60, %v4728_v58  ;;  %v4656_v39 = vadd.f32 %v4655_v0, %v4464_v6  ;;  %v4729_v31 = vmul.f32 %v4464_v6, %v4464_v6  ;;  %v4228_v8 = vpop.f32.mrf.mxu0  ;;  %v5545_v0 = vld [vmem:[#allocation7 + $0xe8] sm:$0xff] }
 0x418   : > { %v4533_v59 = vadd.f32 %v5542_v32, %v4469_v43  ;;  %v4467_v18 = vadd.f32 %v7826_v19, %v4396_v49  ;;  %v4399_v25 = vadd.f32 %v4237_v63, %v8329_v41  ;;  %4592 = vst [vmem:[#allocation7 + $0xc8] sm:$0xff] %v4528_v45  ;;  %v4229_v37 = vadd.f32 %v4228_v8, %v7853_v29  ;;  %v8333_v63 = vld [vmem:[#allocation14_spill] sm:$0xff] }
 0x419   : > { %v7949_v35 = vpop.f32.mrf.mxu1  ;;  %v4657_v7 = vadd.f32 %v4656_v39, %v4465_v21  ;;  %v4792_v47 = vadd.f32 %v4791_v38, %v4729_v31  ;;  %v5338_v50 = vpop.f32.mrf.mxu0  ;;  %v5544_v21 = vld [vmem:[#allocation7 + $0xf8] sm:$0xff]  ;;  %v4734_v13 = vmul.f32 %v4469_v43, %v4469_v43  ;;  %v5547_v8 = vld [vmem:[#allocation7 + $0x100] sm:$0xff] }
 0x41a   : > { %4597 = vst [vmem:[#allocation7 + $0xf0] sm:$0xff] %v4533_v59  ;;  %v4531_v11 = vadd.f32 %v5543_v3, %v4467_v18  ;;  %v4470_v44 = vadd.f32 %v7826_v19, %v4399_v25  ;;  %v4250_v48 = vadd.f32 %v5338_v50, %v7893_v23  ;;  %v4397_v4 = vadd.f32 %v4229_v37, %v8330_v20 }
 0x41b   : > { %v3989_v5 = vpop.f32.mrf.mxu1  ;;  %v4793_v24 = vadd.f32 %v4792_v47, %v4730_v2  ;;  %v4658_v36 = vadd.f32 %v4657_v7, %v4466_v57  ;;  %v4241_v30 = vpop.f32.mrf.mxu0  ;;  %v4732_v34 = vmul.f32 %v4467_v18, %v4467_v18  ;;  %v8334_v47 = vld [vmem:[#allocation45_spill] sm:$0xff] }
 0x41c   : > { %4595 = vst [vmem:[#allocation7 + $0xe0] sm:$0xff] %v4531_v11  ;;  %v4534_v17 = vadd.f32 %v5544_v21, %v4470_v44  ;;  %v4402_v29 = vadd.f32 %v4250_v48, %v8331_v12  ;;  %v4242_v52 = vadd.f32 %v4241_v30, %v7877_v62  ;;  %v4468_v23 = vadd.f32 %v7826_v19, %v4397_v4  ;;  %v8335_v11 = vld [vmem:[#allocation34_spill] sm:$0xff]  ;;  %v8336_v4 = vld [vmem:[#allocation17_spill] sm:$0xff] }
 0x41d   : > { %v7957_v10 = vpop.f32.mrf.mxu1  ;;  %v4659_v40 = vadd.f32 %v4658_v36, %v4467_v18  ;;  %v4794_v1 = vadd.f32 %v4793_v24, %v4731_v16  ;;  %v5339_v42 = vpop.f32.mrf.mxu0  ;;  %v4735_v25 = vmul.f32 %v4470_v44, %v4470_v44 }
 0x41e   : > { %4598 = vst [vmem:[#allocation7 + $0xf8] sm:$0xff] %v4534_v17  ;;  %v4473_v57 = vadd.f32 %v7826_v19, %v4402_v29  ;;  %v4400_v55 = vadd.f32 %v4242_v52, %v8332_v9  ;;  %v4253_v28 = vadd.f32 %v5339_v42, %v7901_v33  ;;  %v4532_v58 = vadd.f32 %v5545_v0, %v4468_v23  ;;  %v5549_v29 = vld [vmem:[#allocation7 + $0x108] sm:$0xff]  ;;  %v8337_v9 = vld [vmem:[#allocation54_spill] sm:$0xff] }
 0x41f   : > { %v3994_v56 = vpop.f32.mrf.mxu1  ;;  %v4795_v22 = vadd.f32 %v4794_v1, %v4732_v34  ;;  %v4660_v62 = vadd.f32 %v4659_v40, %v4468_v23  ;;  %v4733_v60 = vmul.f32 %v4468_v23, %v4468_v23  ;;  %v4244_v6 = vpop.f32.mrf.mxu0  ;;  %v5550_v1 = vld [vmem:[#allocation7 + $0x130] sm:$0xff] }
 0x420   : > { %v4537_v26 = vadd.f32 %v5546_v15, %v4473_v57  ;;  %v4471_v49 = vadd.f32 %v7826_v19, %v4400_v55  ;;  %v4403_v61 = vadd.f32 %v4253_v28, %v8333_v63  ;;  %4596 = vst [vmem:[#allocation7 + $0xe8] sm:$0xff] %v4532_v58  ;;  %v4245_v33 = vadd.f32 %v4244_v6, %v7885_v27 }
 0x421   : > { %v7965_v38 = vpop.f32.mrf.mxu1  ;;  %v4661_v45 = vadd.f32 %v4660_v62, %v4469_v43  ;;  %v4796_v39 = vadd.f32 %v4795_v22, %v4733_v60  ;;  %v5342_v31 = vpop.f32.mrf.mxu0  ;;  %v5548_v43 = vld [vmem:[#allocation7 + $0x118] sm:$0xff]  ;;  %v4738_v56 = vmul.f32 %v4473_v57, %v4473_v57  ;;  %v5551_v62 = vld [vmem:[#allocation7 + $0x120] sm:$0xff] }
 0x422   : > { %4601 = vst [vmem:[#allocation7 + $0x110] sm:$0xff] %v4537_v26  ;;  %v4535_v32 = vadd.f32 %v5547_v8, %v4471_v49  ;;  %v4474_v59 = vadd.f32 %v7826_v19, %v4403_v61  ;;  %v4266_v18 = vadd.f32 %v5342_v31, %v7925_v46  ;;  %v4401_v37 = vadd.f32 %v4245_v33, %v8334_v47  ;;  %v8339_v31 = vld [vmem:[#allocation51_spill] sm:$0xff] }
 0x423   : > { %v3997_v41 = vpop.f32.mrf.mxu1  ;;  %v4797_v2 = vadd.f32 %v4796_v39, %v4734_v13  ;;  %v4662_v7 = vadd.f32 %v4661_v45, %v4470_v44  ;;  %v4257_v50 = vpop.f32.mrf.mxu0  ;;  %v4736_v24 = vmul.f32 %v4471_v49, %v4471_v49  ;;  %v8338_v13 = vld [vmem:[#allocation15_spill] sm:$0xff] }
 0x424   : > { %4599 = vst [vmem:[#allocation7 + $0x100] sm:$0xff] %v4535_v32  ;;  %v4538_v3 = vadd.f32 %v5548_v43, %v4474_v59  ;;  %v4406_v27 = vadd.f32 %v4266_v18, %v8335_v11  ;;  %v4258_v48 = vadd.f32 %v4257_v50, %v7909_v14  ;;  %v4472_v46 = vadd.f32 %v7826_v19, %v4401_v37 }
 0x425   : > { %v7973_v5 = vpop.f32.mrf.mxu1  ;;  %v4663_v16 = vadd.f32 %v4662_v7, %v4471_v49  ;;  %v4798_v36 = vadd.f32 %v4797_v2, %v4735_v25  ;;  %v5343_v20 = vpop.f32.mrf.mxu0  ;;  %v4739_v49 = vmul.f32 %v4474_v59, %v4474_v59  ;;  %v8340_v7 = vld [vmem:[#allocation39_spill] sm:$0xff] }
 0x426   : > { %4602 = vst [vmem:[#allocation7 + $0x118] sm:$0xff] %v4538_v3  ;;  %v4477_v44 = vadd.f32 %v7826_v19, %v4406_v27  ;;  %v4404_v30 = vadd.f32 %v4258_v48, %v8336_v4  ;;  %v4269_v21 = vadd.f32 %v5343_v20, %v7933_v51  ;;  %v4536_v52 = vadd.f32 %v5549_v29, %v4472_v46  ;;  %v5553_v3 = vld [vmem:[#allocation7 + $0x128] sm:$0xff]  ;;  %v5555_v29 = vld [vmem:[#allocation7 + $0x140] sm:$0xff] }
 0x427   : > { %v4002_v17 = vpop.f32.mrf.mxu1  ;;  %v4799_v12 = vadd.f32 %v4798_v36, %v4736_v24  ;;  %v4664_v14 = vadd.f32 %v4663_v16, %v4472_v46  ;;  %v4737_v40 = vmul.f32 %v4472_v46, %v4472_v46  ;;  %v4260_v34 = vpop.f32.mrf.mxu0  ;;  %v5554_v16 = vld [vmem:[#allocation7 + $0x150] sm:$0xff] }
 0x428   : > { %v4541_v23 = vadd.f32 %v5550_v1, %v4477_v44  ;;  %v4475_v42 = vadd.f32 %v7826_v19, %v4404_v30  ;;  %v4407_v55 = vadd.f32 %v4269_v21, %v8337_v9  ;;  %4600 = vst [vmem:[#allocation7 + $0x108] sm:$0xff] %v4536_v52  ;;  %v4261_v51 = vadd.f32 %v4260_v34, %v7917_v54  ;;  %v8341_v46 = vld [vmem:[#allocation20_spill] sm:$0xff]  ;;  %v8342_v9 = vld [vmem:[#allocation55_spill] sm:$0xff] }
 0x429   : > { %v7981_v28 = vpop.f32.mrf.mxu1  ;;  %v4665_v22 = vadd.f32 %v4664_v14, %v4473_v57  ;;  %v4800_v0 = vadd.f32 %v4799_v12, %v4737_v40  ;;  %v5346_v58 = vpop.f32.mrf.mxu0  ;;  %v5552_v57 = vld [vmem:[#allocation7 + $0x138] sm:$0xff]  ;;  %v4742_v30 = vmul.f32 %v4477_v44, %v4477_v44 }
 0x42a   : > { %4605 = vst [vmem:[#allocation7 + $0x130] sm:$0xff] %v4541_v23  ;;  %v4539_v60 = vadd.f32 %v5551_v62, %v4475_v42  ;;  %v4478_v6 = vadd.f32 %v7826_v19, %v4407_v55  ;;  %v4282_v15 = vadd.f32 %v5346_v58, %v7957_v10  ;;  %v4405_v45 = vadd.f32 %v4261_v51, %v8338_v13 }
 0x42b   : > { %v4005_v26 = vpop.f32.mrf.mxu1  ;;  %v4801_v63 = vadd.f32 %v4800_v0, %v4738_v56  ;;  %v4666_v61 = vadd.f32 %v4665_v22, %v4474_v59  ;;  %v4273_v39 = vpop.f32.mrf.mxu0  ;;  %v4740_v41 = vmul.f32 %v4475_v42, %v4475_v42  ;;  %v5556_v22 = vld [vmem:[#allocation7 + $0x158] sm:$0xff]  ;;  %v8343_v0 = vld [vmem:[#allocation18_spill] sm:$0xff] }
 0x42c   : > { %4603 = vst [vmem:[#allocation7 + $0x120] sm:$0xff] %v4539_v60  ;;  %v4542_v33 = vadd.f32 %v5552_v57, %v4478_v6  ;;  %v4410_v54 = vadd.f32 %v4282_v15, %v8339_v31  ;;  %v4274_v8 = vadd.f32 %v4273_v39, %v7941_v53  ;;  %v4476_v10 = vadd.f32 %v7826_v19, %v4405_v45  ;;  %v5557_v57 = vld [vmem:[#allocation7 + $0x148] sm:$0xff] }
 0x42d   : > { %v4008_v32 = vpop.f32.mrf.mxu1  ;;  %v4667_v18 = vadd.f32 %v4666_v61, %v4475_v42  ;;  %v4802_v25 = vadd.f32 %v4801_v63, %v4739_v49  ;;  %v5347_v2 = vpop.f32.mrf.mxu0  ;;  %v4743_v1 = vmul.f32 %v4478_v6, %v4478_v6  ;;  %v8344_v63 = vld [vmem:[#allocation53_spill] sm:$0xff] }
 0x42e   : > { %4606 = vst [vmem:[#allocation7 + $0x138] sm:$0xff] %v4542_v33  ;;  %v4481_v59 = vadd.f32 %v7826_v19, %v4410_v54  ;;  %v4408_v47 = vadd.f32 %v4274_v8, %v8340_v7  ;;  %v4285_v37 = vadd.f32 %v5347_v2, %v7965_v38  ;;  %v4540_v11 = vadd.f32 %v5553_v3, %v4476_v10  ;;  %v5558_v8 = vld [vmem:[#allocation7 + $0x170] sm:$0xff] }
 0x42f   : > { %v4010_v50 = vpop.f32.mrf.mxu1  ;;  %v4803_v43 = vadd.f32 %v4802_v25, %v4740_v41  ;;  %v4668_v27 = vadd.f32 %v4667_v18, %v4476_v10  ;;  %v4741_v53 = vmul.f32 %v4476_v10, %v4476_v10  ;;  %v4276_v48 = vpop.f32.mrf.mxu0  ;;  %v8345_v41 = vld [vmem:[#allocation42_spill] sm:$0xff] }
 0x430   : > { %v4545_v24 = vadd.f32 %v5554_v16, %v4481_v59  ;;  %v4479_v36 = vadd.f32 %v7826_v19, %v4408_v47  ;;  %v4411_v20 = vadd.f32 %v4285_v37, %v8341_v46  ;;  %4604 = vst [vmem:[#allocation7 + $0x128] sm:$0xff] %v4540_v11  ;;  %v4277_v38 = vadd.f32 %v4276_v48, %v7949_v35 }
 0x431   : > { %v4011_v4 = vpop.f32.mrf.mxu1  ;;  %v4669_v21 = vadd.f32 %v4668_v27, %v4477_v44  ;;  %v4804_v17 = vadd.f32 %v4803_v43, %v4741_v53  ;;  %v5350_v12 = vpop.f32.mrf.mxu0  ;;  %v4746_v2 = vmul.f32 %v4481_v59, %v4481_v59  ;;  %v5559_v43 = vld [vmem:[#allocation7 + $0x160] sm:$0xff] }
 0x432   : > { %4609 = vst [vmem:[#allocation7 + $0x150] sm:$0xff] %v4545_v24  ;;  %v4543_v52 = vadd.f32 %v5555_v29, %v4479_v36  ;;  %v4482_v14 = vadd.f32 %v7826_v19, %v4411_v20  ;;  %v4298_v40 = vadd.f32 %v5350_v12, %v4008_v32  ;;  %v4409_v55 = vadd.f32 %v4277_v38, %v8342_v9  ;;  %v8346_v24 = vld [vmem:[#allocation22_spill] sm:$0xff]  ;;  %v5560_v20 = vld [vmem:[#allocation7 + $0x178] sm:$0xff] }
 0x433   : > { %v4013_v34 = vpop.f32.mrf.mxu1  ;;  %v4805_v23 = vadd.f32 %v4804_v17, %v4742_v30  ;;  %v4670_v42 = vadd.f32 %v4669_v21, %v4478_v6  ;;  %v4289_v56 = vpop.f32.mrf.mxu0  ;;  %v4744_v60 = vmul.f32 %v4479_v36, %v4479_v36 }
 0x434   : > { %4607 = vst [vmem:[#allocation7 + $0x140] sm:$0xff] %v4543_v52  ;;  %v4546_v44 = vadd.f32 %v5556_v22, %v4482_v14  ;;  %v4414_v51 = vadd.f32 %v4298_v40, %v8343_v0  ;;  %v4290_v35 = vadd.f32 %v4289_v56, %v7973_v5  ;;  %v4480_v26 = vadd.f32 %v7826_v19, %v4409_v55  ;;  %v8347_v52 = vld [vmem:[#allocation19_spill] sm:$0xff]  ;;  %v8348_v56 = vld [vmem:[#allocation58_spill] sm:$0xff] }
 0x435   : > { %v4016_v58 = vpop.f32.mrf.mxu1  ;;  %v4671_v62 = vadd.f32 %v4670_v42, %v4479_v36  ;;  %v4806_v15 = vadd.f32 %v4805_v23, %v4743_v1  ;;  %v5351_v49 = vpop.f32.mrf.mxu0  ;;  %v4747_v53 = vmul.f32 %v4482_v14, %v4482_v14  ;;  %v5561_v1 = vld [vmem:[#allocation7 + $0x168] sm:$0xff] }
 0x436   : > { %4610 = vst [vmem:[#allocation7 + $0x158] sm:$0xff] %v4546_v44  ;;  %v4485_v6 = vadd.f32 %v7826_v19, %v4414_v51  ;;  %v4412_v61 = vadd.f32 %v4290_v35, %v8344_v63  ;;  %v4301_v13 = vadd.f32 %v5351_v49, %v4011_v4  ;;  %v4544_v33 = vadd.f32 %v5557_v57, %v4480_v26  ;;  %v8349_v57 = vld [vmem:[#allocation37_spill] sm:$0xff] }
 0x437   : > { %v4018_v45 = vpop.f32.mrf.mxu1  ;;  %v4807_v39 = vadd.f32 %v4806_v15, %v4744_v60  ;;  %v4672_v31 = vadd.f32 %v4671_v62, %v4480_v26  ;;  %v4745_v54 = vmul.f32 %v4480_v26, %v4480_v26  ;;  %v4292_v5 = vpop.f32.mrf.mxu0  ;;  %v5562_v26 = vld [vmem:[#allocation7 + $0x180] sm:$0xff] }
 0x438   : > { %v4549_v32 = vadd.f32 %v5558_v8, %v4485_v6  ;;  %v4483_v18 = vadd.f32 %v7826_v19, %v4412_v61  ;;  %v4415_v25 = vadd.f32 %v4301_v13, %v8345_v41  ;;  %4608 = vst [vmem:[#allocation7 + $0x148] sm:$0xff] %v4544_v33  ;;  %v4293_v37 = vadd.f32 %v4292_v5, %v7981_v28  ;;  %v8350_v8 = vld [vmem:[#allocation56_spill] sm:$0xff] }
 0x439   : > { %v4019_v10 = vpop.f32.mrf.mxu1  ;;  %v4673_v7 = vadd.f32 %v4672_v31, %v4481_v59  ;;  %v4808_v47 = vadd.f32 %v4807_v39, %v4745_v54  ;;  %v5354_v50 = vpop.f32.mrf.mxu0  ;;  %v4750_v35 = vmul.f32 %v4485_v6, %v4485_v6  ;;  %v5563_v54 = vld [vmem:[#allocation7 + $0x190] sm:$0xff] }
 0x43a   : > { %4613 = vst [vmem:[#allocation7 + $0x170] sm:$0xff] %v4549_v32  ;;  %v4547_v3 = vadd.f32 %v5559_v43, %v4483_v18  ;;  %v4486_v11 = vadd.f32 %v7826_v19, %v4415_v25  ;;  %v4413_v36 = vadd.f32 %v4293_v37, %v8346_v24  ;;  %v4748_v28 = vmul.f32 %v4483_v18, %v4483_v18  ;;  %v5564_v43 = vld [vmem:[#allocation7 + $0x188] sm:$0xff] }
 0x43b   : > { %v4021_v27 = vpop.f32.mrf.mxu1  ;;  %v4809_v48 = vadd.f32 %v4808_v47, %v4746_v2  ;;  %v4674_v16 = vadd.f32 %v4673_v7, %v4482_v14  ;;  %v4305_v46 = vpop.f32.mrf.mxu0  ;;  %v8351_v24 = vld [vmem:[#allocation59_spill] sm:$0xff] }
 0x43c   : > { %4611 = vst [vmem:[#allocation7 + $0x160] sm:$0xff] %v4547_v3  ;;  %v4550_v4 = vadd.f32 %v5560_v20, %v4486_v11  ;;  %v4306_v59 = vadd.f32 %v4305_v46, %v4016_v58  ;;  %v4484_v38 = vadd.f32 %v7826_v19, %v4413_v36  ;;  %v4751_v13 = vmul.f32 %v4486_v11, %v4486_v11 }
 0x43d   : > { %v4024_v30 = vpop.f32.mrf.mxu1  ;;  %v4675_v21 = vadd.f32 %v4674_v16, %v4483_v18  ;;  %v4810_v17 = vadd.f32 %v4809_v48, %v4747_v53  ;;  %v5355_v12 = vpop.f32.mrf.mxu0  ;;  %v5565_v48 = vld [vmem:[#allocation7 + $0x198] sm:$0xff] }
 0x43e   : > { %4614 = vst [vmem:[#allocation7 + $0x178] sm:$0xff] %v4550_v4  ;;  %v4314_v29 = vadd.f32 %v5354_v50, %v4024_v30  ;;  %v4416_v40 = vadd.f32 %v4306_v59, %v8347_v52  ;;  %v4548_v23 = vadd.f32 %v5561_v1, %v4484_v38  ;;  %v4749_v9 = vmul.f32 %v4484_v38, %v4484_v38  ;;  %v5567_v52 = vld [vmem:[#allocation7 + $0x1a0] sm:$0xff] }
 0x43f   : > { %v4026_v34 = vpop.f32.mrf.mxu1  ;;  %v4811_v14 = vadd.f32 %v4810_v17, %v4748_v28  ;;  %v4676_v42 = vadd.f32 %v4675_v21, %v4484_v38  ;;  %v4308_v55 = vpop.f32.mrf.mxu0 }
 0x440   : > { %v4418_v22 = vadd.f32 %v4314_v29, %v8348_v56  ;;  %v4487_v44 = vadd.f32 %v7826_v19, %v4416_v40  ;;  %v4309_v0 = vadd.f32 %v4308_v55, %v4019_v10  ;;  %4612 = vst [vmem:[#allocation7 + $0x168] sm:$0xff] %v4548_v23  ;;  %v8352_v34 = vld [vmem:[#allocation57_spill] sm:$0xff] }
 0x441   : > { %v4027_v51 = vpop.f32.mrf.mxu1  ;;  %v4677_v58 = vadd.f32 %v4676_v42, %v4485_v6  ;;  %v4812_v62 = vadd.f32 %v4811_v14, %v4749_v9  ;;  %v5358_v60 = vpop.f32.mrf.mxu0 }
 0x442   : > { %v4489_v15 = vadd.f32 %v7826_v19, %v4418_v22  ;;  %v4551_v49 = vadd.f32 %v5562_v26, %v4487_v44  ;;  %v4317_v63 = vadd.f32 %v5355_v12, %v4027_v51  ;;  %v4417_v33 = vadd.f32 %v4309_v0, %v8349_v57  ;;  %v8353_v51 = vld [vmem:[#allocation29_spill] sm:$0xff] }
 0x443   : > { %v4029_v61 = vpop.f32.mrf.mxu1  ;;  %v4813_v45 = vadd.f32 %v4812_v62, %v4750_v35  ;;  %v4678_v39 = vadd.f32 %v4677_v58, %v4486_v11  ;;  %v4321_v31 = vpop.f32.mrf.mxu0  ;;  %v4752_v41 = vmul.f32 %v4487_v44, %v4487_v44  ;;  %v5568_v58 = vld [vmem:[#allocation7 + $0x1a8] sm:$0xff] }
 0x444   : > { %v4553_v5 = vadd.f32 %v5563_v54, %v4489_v15  ;;  %4615 = vst [vmem:[#allocation7 + $0x180] sm:$0xff] %v4551_v49  ;;  %v4419_v32 = vadd.f32 %v4317_v63, %v8350_v8  ;;  %v4488_v10 = vadd.f32 %v7826_v19, %v4417_v33  ;;  %v4754_v20 = vmul.f32 %v4489_v15, %v4489_v15 }
 0x445   : > { %v4032_v6 = vpop.f32.mrf.mxu1  ;;  %v4679_v18 = vadd.f32 %v4678_v39, %v4487_v44  ;;  %v4814_v25 = vadd.f32 %v4813_v45, %v4751_v13  ;;  %v5359_v2 = vpop.f32.mrf.mxu0  ;;  %v5569_v39 = vld [vmem:[#allocation7 + $0x1b0] sm:$0xff] }
 0x446   : > { %4617 = vst [vmem:[#allocation7 + $0x190] sm:$0xff] %v4553_v5  ;;  %v4490_v7 = vadd.f32 %v7826_v19, %v4419_v32  ;;  %v4322_v47 = vadd.f32 %v4321_v31, %v4032_v6  ;;  %v4552_v3 = vadd.f32 %v5564_v43, %v4488_v10  ;;  %v4753_v27 = vmul.f32 %v4488_v10, %v4488_v10  ;;  %v8019_v19 = vld [vmem:[%s5810_s27] ss:$0 sm:$0xff]  ;;  %v8354_v31 = vld [vmem:[#allocation24_spill] sm:$0xff] }
 0x447   : > { %v4034_v37 = vpop.f32.mrf.mxu1  ;;  %v4815_v50 = vadd.f32 %v4814_v25, %v4752_v41  ;;  %v4680_v11 = vadd.f32 %v4679_v18, %v4488_v10  ;;  %v4324_v53 = vpop.f32.mrf.mxu0  ;;  %v5570_v10 = vld [vmem:[#allocation7 + $0x1b8] sm:$0xff] }
 0x448   : > { %v4554_v16 = vadd.f32 %v5565_v48, %v4490_v7  ;;  %v4420_v36 = vadd.f32 %v4322_v47, %v8351_v24  ;;  %4616 = vst [vmem:[#allocation7 + $0x188] sm:$0xff] %v4552_v3  ;;  %v4755_v17 = vmul.f32 %v4490_v7, %v4490_v7  ;;  %v8355_v47 = vld [vmem:[#allocation32_spill] sm:$0xff]  ;;  %v5571_v48 = vld [vmem:[#allocation7 + $0x1c0] sm:$0xff] }
 0x449   : > { %v4035_v46 = vpop.f32.mrf.mxu1  ;;  %v4681_v4 = vadd.f32 %v4680_v11, %v4489_v15  ;;  %v4816_v59 = vadd.f32 %v4815_v50, %v4753_v27  ;;  %v5362_v29 = vpop.f32.mrf.mxu0 }
 0x44a   : > { %4618 = vst [vmem:[#allocation7 + $0x198] sm:$0xff] %v4554_v16  ;;  %v4491_v30 = vadd.f32 %v8019_v19, %v4420_v36  ;;  %v4325_v21 = vadd.f32 %v4324_v53, %v4035_v46  ;;  %v8356_v46 = vld [vmem:[#allocation26_spill] sm:$0xff] }
 0x44b   : > { %v4037_v28 = vpop.f32.mrf.mxu1  ;;  %v4817_v38 = vadd.f32 %v4816_v59, %v4754_v20  ;;  %v4682_v12 = vadd.f32 %v4681_v4, %v4490_v7  ;;  %v4337_v0 = vpop.f32.mrf.mxu0 }
 0x44c   : > { %v4555_v40 = vadd.f32 %v5567_v52, %v4491_v30  ;;  %v4421_v14 = vadd.f32 %v4325_v21, %v8352_v34  ;;  %v4756_v42 = vmul.f32 %v4491_v30, %v4491_v30  ;;  %v5572_v52 = vld [vmem:[#allocation7 + $0x1c8] sm:$0xff] }
 0x44d   : > { %v4040_v1 = vpop.f32.mrf.mxu1  ;;  %v4683_v23 = vadd.f32 %v4682_v12, %v4491_v30  ;;  %v4818_v9 = vadd.f32 %v4817_v38, %v4755_v17  ;;  %v8357_v38 = vld [vmem:[#allocation40_spill] sm:$0xff] }
 0x44e   : > { %v4330_v55 = vadd.f32 %v5358_v60, %v4040_v1  ;;  %4619 = vst [vmem:[#allocation7 + $0x1a0] sm:$0xff] %v4555_v40  ;;  %v4492_v56 = vadd.f32 %v8019_v19, %v4421_v14  ;;  %v5363_v60 = vpop.f32.mrf.mxu0 }
 0x44f   : > { %v4042_v22 = vpop.f32.mrf.mxu1  ;;  %v4819_v44 = vadd.f32 %v4818_v9, %v4756_v42 }
 0x450   : > { %v4422_v35 = vadd.f32 %v4330_v55, %v8353_v51  ;;  %v4556_v62 = vadd.f32 %v5568_v58, %v4492_v56  ;;  %v4684_v15 = vadd.f32 %v4683_v23, %v4492_v56  ;;  %v4757_v26 = vmul.f32 %v4492_v56, %v4492_v56  ;;  %v4340_v25 = vpop.f32.mrf.mxu0  ;;  %v5573_v22 = vld [vmem:[#allocation7 + $0x1d0] sm:$0xff] }
 0x451   : > { %v4043_v49 = vpop.f32.mrf.mxu1 }
 0x452   : > { %v4493_v63 = vadd.f32 %v8019_v19, %v4422_v35  ;;  %v4333_v61 = vadd.f32 %v5359_v2, %v4043_v49  ;;  %4620 = vst [vmem:[#allocation7 + $0x1a8] sm:$0xff] %v4556_v62  ;;  %v4820_v13 = vadd.f32 %v4819_v44, %v4757_v26  ;;  %v5366_v59 = vpop.f32.mrf.mxu0 }
 0x453   : > { %v4045_v45 = vpop.f32.mrf.mxu1 }
 0x454   : > { %v4557_v57 = vadd.f32 %v5569_v39, %v4493_v63  ;;  %v4758_v33 = vmul.f32 %v4493_v63, %v4493_v63  ;;  %v4423_v54 = vadd.f32 %v4333_v61, %v8354_v31  ;;  %v4685_v5 = vadd.f32 %v4684_v15, %v4493_v63  ;;  %v4353_v23 = vpop.f32.mrf.mxu0  ;;  %v5574_v61 = vld [vmem:[#allocation7 + $0x1d8] sm:$0xff] }
 0x455   : > { %v4048_v8 = vpop.f32.mrf.mxu1 }
 0x456   : > { %4621 = vst [vmem:[#allocation7 + $0x1b0] sm:$0xff] %v4557_v57  ;;  %v4494_v32 = vadd.f32 %v8019_v19, %v4423_v54  ;;  %v4821_v6 = vadd.f32 %v4820_v13, %v4758_v33  ;;  %v4338_v18 = vadd.f32 %v4337_v0, %v4048_v8  ;;  %v8358_v0 = vld [vmem:[#allocation62_spill] sm:$0xff]  ;;  %v5367_v62 = vpop.f32.mrf.mxu0 }
 0x457   : > { %v4050_v41 = vpop.f32.mrf.mxu1 }
 0x458   : > { %v4558_v2 = vadd.f32 %v5570_v10, %v4494_v32  ;;  %v4759_v7 = vmul.f32 %v4494_v32, %v4494_v32  ;;  %v4424_v37 = vadd.f32 %v4338_v18, %v8355_v47  ;;  %v4686_v50 = vadd.f32 %v4685_v5, %v4494_v32  ;;  %v4356_v33 = vpop.f32.mrf.mxu0  ;;  %v8360_v10 = vld [vmem:[#allocation35_spill] sm:$0xff] }
 0x459   : > { %v4051_v43 = vpop.f32.mrf.mxu1 }
 0x45a   : > { %4622 = vst [vmem:[#allocation7 + $0x1b8] sm:$0xff] %v4558_v2  ;;  %v4495_v3 = vadd.f32 %v8019_v19, %v4424_v37  ;;  %v4822_v11 = vadd.f32 %v4821_v6, %v4759_v7  ;;  %v4341_v27 = vadd.f32 %v4340_v25, %v4051_v43  ;;  %v5575_v6 = vld [vmem:[#allocation7 + $0x1e0] sm:$0xff] }
 0x45b   : > { %v4053_v53 = vpop.f32.mrf.mxu1 }
 0x45c   : > { %v4559_v16 = vadd.f32 %v5571_v48, %v4495_v3  ;;  %v4687_v24 = vadd.f32 %v4686_v50, %v4495_v3  ;;  %v4760_v36 = vmul.f32 %v4495_v3, %v4495_v3  ;;  %v4425_v20 = vadd.f32 %v4341_v27, %v8356_v46  ;;  %v5576_v3 = vld [vmem:[#allocation7 + $0x1e8] sm:$0xff]  ;;  %v8361_v48 = vld [vmem:[#allocation60_spill] sm:$0xff] }
 0x45d   : > { %v4056_v4 = vpop.f32.mrf.mxu1 }
 0x45e   : > { %4623 = vst [vmem:[#allocation7 + $0x1c0] sm:$0xff] %v4559_v16  ;;  %v4823_v30 = vadd.f32 %v4822_v11, %v4760_v36  ;;  %v4346_v21 = vadd.f32 %v5362_v29, %v4056_v4  ;;  %v4496_v28 = vadd.f32 %v8019_v19, %v4425_v20 }
 0x45f   : > { %v4058_v17 = vpop.f32.mrf.mxu1 }
 0x460   : > { %v4426_v12 = vadd.f32 %v4346_v21, %v8357_v38  ;;  %v4560_v40 = vadd.f32 %v5572_v52, %v4496_v28  ;;  %v4688_v34 = vadd.f32 %v4687_v24, %v4496_v28  ;;  %v4761_v14 = vmul.f32 %v4496_v28, %v4496_v28 }
 0x461   : > { %v4059_v1 = vpop.f32.mrf.mxu1 }
 0x462   : > { %v4497_v42 = vadd.f32 %v8019_v19, %v4426_v12  ;;  %4624 = vst [vmem:[#allocation7 + $0x1c8] sm:$0xff] %v4560_v40  ;;  %v4824_v9 = vadd.f32 %v4823_v30, %v4761_v14  ;;  %v4349_v55 = vadd.f32 %v5363_v60, %v4059_v1  ;;  %v8359_v60 = vld [vmem:[#allocation41_spill] sm:$0xff]  ;;  %v5577_v30 = vld [vmem:[#allocation7 + $0x1f0] sm:$0xff] }
 0x463   : > { %v4061_v56 = vpop.f32.mrf.mxu1  ;;  %v5578_v40 = vld [vmem:[#allocation7 + $0x1f8] sm:$0xff] }
 0x464   : > { %v4561_v44 = vadd.f32 %v5573_v22, %v4497_v42  ;;  %v4762_v29 = vmul.f32 %v4497_v42, %v4497_v42  ;;  %v4427_v51 = vadd.f32 %v4349_v55, %v8358_v0  ;;  %v4689_v35 = vadd.f32 %v4688_v34, %v4497_v42 }
 0x465   : > { %v4064_v58 = vpop.f32.mrf.mxu1 }
 0x466   : > { %4625 = vst [vmem:[#allocation7 + $0x1d0] sm:$0xff] %v4561_v44  ;;  %v4498_v15 = vadd.f32 %v8019_v19, %v4427_v51  ;;  %v4825_v26 = vadd.f32 %v4824_v9, %v4762_v29  ;;  %v4354_v49 = vadd.f32 %v4353_v23, %v4064_v58 }
 0x467   : > { %v4066_v63 = vpop.f32.mrf.mxu1 }
 0x468   : > { %v4562_v13 = vadd.f32 %v5574_v61, %v4498_v15  ;;  %v4690_v45 = vadd.f32 %v4689_v35, %v4498_v15  ;;  %v4763_v39 = vmul.f32 %v4498_v15, %v4498_v15  ;;  %v4428_v57 = vadd.f32 %v4354_v49, %v8359_v60 }
 0x469   : > { %v4067_v31 = vpop.f32.mrf.mxu1 }
 0x46a   : > { %4626 = vst [vmem:[#allocation7 + $0x1d8] sm:$0xff] %v4562_v13  ;;  %v4826_v54 = vadd.f32 %v4825_v26, %v4763_v39  ;;  %v4499_v5 = vadd.f32 %v8019_v19, %v4428_v57  ;;  %v4357_v8 = vadd.f32 %v4356_v33, %v4067_v31 }
 0x46b   : > { %v4069_v32 = vpop.f32.mrf.mxu1 }
 0x46c   : > { %v4563_v18 = vadd.f32 %v5575_v6, %v4499_v5  ;;  %v4691_v41 = vadd.f32 %v4690_v45, %v4499_v5  ;;  %v4764_v25 = vmul.f32 %v4499_v5, %v4499_v5  ;;  %v4429_v2 = vadd.f32 %v4357_v8, %v8360_v10 }
 0x46d   : > { %v4072_v7 = vpop.f32.mrf.mxu1 }
 0x46e   : > { %4627 = vst [vmem:[#allocation7 + $0x1e0] sm:$0xff] %v4563_v18  ;;  %v4827_v47 = vadd.f32 %v4826_v54, %v4764_v25  ;;  %v4500_v37 = vadd.f32 %v8019_v19, %v4429_v2  ;;  %v4362_v50 = vadd.f32 %v5366_v59, %v4072_v7  ;;  %v8362_v59 = vld [vmem:[#allocation63_spill] sm:$0xff] }
 0x46f   : > { %v4074_v43 = vpop.f32.mrf.mxu1 }
 0x470   : > { %v4564_v11 = vadd.f32 %v5576_v3, %v4500_v37  ;;  %v4692_v27 = vadd.f32 %v4691_v41, %v4500_v37  ;;  %v4765_v53 = vmul.f32 %v4500_v37, %v4500_v37  ;;  %v4430_v16 = vadd.f32 %v4362_v50, %v8361_v48 }
 0x471   : > { %v4075_v24 = vpop.f32.mrf.mxu1 }
 0x472   : > { %4628 = vst [vmem:[#allocation7 + $0x1e8] sm:$0xff] %v4564_v11  ;;  %v4828_v36 = vadd.f32 %v4827_v47, %v4765_v53  ;;  %v4501_v46 = vadd.f32 %v8019_v19, %v4430_v16  ;;  %v4365_v20 = vadd.f32 %v5367_v62, %v4075_v24 }
 0x473   : > { %v4077_v4 = vpop.f32.mrf.mxu1 }
 0x474   : > { %v4565_v21 = vadd.f32 %v5577_v30, %v4501_v46  ;;  %v4693_v28 = vadd.f32 %v4692_v27, %v4501_v46  ;;  %v4766_v17 = vmul.f32 %v4501_v46, %v4501_v46  ;;  %v4431_v38 = vadd.f32 %v4365_v20, %v8362_v59 }
 0x476   : > { %4629 = vst [vmem:[#allocation7 + $0x1f0] sm:$0xff] %v4565_v21  ;;  %v4829_v12 = vadd.f32 %v4828_v36, %v4766_v17  ;;  %v4502_v52 = vadd.f32 %v8019_v19, %v4431_v38 }
 0x478   : > { %v4566_v34 = vadd.f32 %v5578_v40, %v4502_v52  ;;  %v4694_v14 = vadd.f32 %v4693_v28, %v4502_v52  ;;  %v4767_v1 = vmul.f32 %v4502_v52, %v4502_v52 }
 0x47a   : > { %4630 = vst [vmem:[#allocation7 + $0x1f8] sm:$0xff] %v4566_v34  ;;  %v4695_v23 = vrot.slane %v4694_v14, 4  ;;  %v4830_v42 = vadd.f32 %v4829_v12, %v4767_v1 }
 0x47b   : > { %5620 = shalt.err (!%p5617_p12)
}
 0x47c   : > { %s5677_s16 = smov 128   ;;  %s5678_s27 = smov 8   ;;  %v4696_v19 = vadd.f32 %v4695_v23, %v4694_v14  ;;  %v4831_v9 = vrot.slane %v4830_v42, 4  ;;  %v4631_v51 = vld [vmem:[#allocation3] sm:$0x1] }
 0x47d   : > { %5390 = dma.vmem_to_hbm [thread:$0]  (%p5398_p1), %s4846_s6, 8192, %s8074_s5, [#allocation6], %s5677_s16, %s5677_s16, %s5678_s27   ;;  %v4703_v62 = vld [vmem:[#allocation3 + $0x1] sm:$0x1] }
 0x47e   : > { %v4697_v55 = vrot.slane %v4696_v19, 2  ;;  %v4832_v56 = vadd.f32 %v4831_v9, %v4830_v42 }
 0x480   : > { %v4698_v22 = vadd.f32 %v4697_v55, %v4696_v19  ;;  %v4833_v44 = vrot.slane %v4832_v56, 2 }
 0x482   : > { %v4699_v29 = vrot.slane %v4698_v22, 1  ;;  %v4834_v0 = vadd.f32 %v4833_v44, %v4832_v56 }
 0x484   : > { %v4700_v35 = vadd.f32 %v4699_v29, %v4698_v22  ;;  %v4835_v58 = vrot.slane %v4834_v0, 1 }
 0x486   : > { %v4701_v15 = vadd.f32 %v4700_v35, %v4631_v51  ;;  %v4836_v26 = vadd.f32 %v4835_v58, %v4834_v0 }
 0x488   : > { %4702 = vst [vmem:[#allocation3] sm:$0x1] %v4701_v15  ;;  %v4837_v49 = vadd.f32 %v4836_v26, %v4703_v62 }
 0x48a   : > { %4838 = vst [vmem:[#allocation3 + $0x1] sm:$0x1] %v4837_v49 }
 0x48b   : > { %5652 = dma.done.wait (%p5398_p1), [#allocation6], 8192  }
 0x48c   : > { %5654 = vsyncadd (%p5398_p1), [#allocation6], 4294959104 }
 0x48d PF: > { %p16_p11 = scmp.ge.s32.totalorder %s5731_s23, 4   ;;  %s8363_s18 = smov %s5661_s19 }
 0x48e   : > { %s8364_s19 = smov %s5665_s20  ;;  %s8365_s20 = smov %s5741_s26 }
 0x48f   : > { %s8366_s21 = smov %s5731_s23  ;;  %18 = sbr.rel (!%p16_p11) target bundleno = 4 (0x4), region = 92 }
 0x494   :  { %4861 = vsyncpa [#allocation5], 1 }
 0x495   :  { %4863 = vsyncpa [#allocation5 + $0x1], 1 }
 0x496   :  { %4864 = vsyncpa [#allocation6], 1 }
 0x497   :  { %4866 = vsyncpa [#allocation6 + $0x1], 1 }

</bundles_post_ra>
